<compile_context>
chip_gen: v7x
topology: tpu7x:2x2x1
jax: 0.10.0
libtpu: 0.0.40
codegen_flags: <defaults>
</compile_context>

<pallas_src>
import functools

import jax
import jax.numpy as jnp
import numpy as np
from jax import lax
from jax.experimental import pallas as pl
from jax.experimental.pallas import tpu as pltpu


def _round_up(x, m):
    return ((x + m - 1) // m) * m


# ----------------------------------------------------------------------------
# Fused kernel: one time-chunk through [depth x GRU layer] + head per grid step.
# ----------------------------------------------------------------------------
def _fused_rnn_kernel(depth, T, Tc, B_pad, H_pad, x_ref, h0_ref, *rest):
    """rest = [wih_t, whh_rz, whh_n, bi, bhn] * depth + [w1_t, b1, w2_t, b2]
              + [out_ref, hT_ref] + [h_scr, gi_scr, feat_scr]."""
    n_layer = 5 * depth
    layer_refs = rest[:n_layer]
    w1_ref, b1_ref, w2_ref, b2_ref = rest[n_layer:n_layer + 4]
    out_ref, hT_ref = rest[n_layer + 4:n_layer + 6]
    h_scr, gi_scr, feat_scr = rest[n_layer + 6:]

    chunk = pl.program_id(0)
    n_chunks = pl.num_programs(0)
    t0 = chunk * Tc                       # global timestep offset of this chunk
    has_tail = (T % Tc) != 0              # Python bool: last chunk has padded steps

    # Initialize the carried hidden state from h0 on the first chunk.
    @pl.when(chunk == 0)
    def _():
        h_scr[...] = h0_ref[...]

    cur_in = x_ref[...]                                      # (Tc*B_pad, Din_pad) bf16
    for l in range(depth):                                   # unrolled at trace time
        wih_t = layer_refs[5 * l][...]                       # bf16 (din_pad, 3*H_pad)
        whh_rz = layer_refs[5 * l + 1][...]                  # bf16 (H_pad, 2*H_pad)
        whh_n = layer_refs[5 * l + 2][...]                   # bf16 (H_pad, H_pad)
        bi = layer_refs[5 * l + 3][...]                      # f32  (1, 3*H_pad)  r/z folded
        bhn = layer_refs[5 * l + 4][...]                     # f32  (1, H_pad)    n hidden bias

        # Hoisted input projection for all Tc timesteps: one lane-dense bf16 MXU matmul.
        gi_scr[...] = jnp.dot(cur_in, wih_t,
                              preferred_element_type=jnp.float32) + bi

        # n-gate hidden bias broadcast hoisted out of the (unrolled) time loop.
        bhn_b = jnp.broadcast_to(bhn, (B_pad, H_pad))

        def step(t, h, _rz=whh_rz, _n=whh_n, _bhn=bhn_b):
            off = pl.multiple_of(t * B_pad, B_pad)
            gi = gi_scr[pl.ds(off, B_pad), :]                # (B_pad, 3*H_pad) f32
            h_b = h.astype(jnp.bfloat16)
            gh_rz = jnp.dot(h_b, _rz, preferred_element_type=jnp.float32)
            gh_n = jnp.dot(h_b, _n, preferred_element_type=jnp.float32)
            r = jax.nn.sigmoid(gi[:, :H_pad] + gh_rz[:, :H_pad])
            z = jax.nn.sigmoid(gi[:, H_pad:2 * H_pad] + gh_rz[:, H_pad:])
            n = jnp.tanh(gi[:, 2 * H_pad:] + r * (gh_n + _bhn))
            h_new = (1.0 - z) * n + z * h
            if has_tail:                                     # freeze h on padded timesteps
                m = ((t0 + t) < T).astype(jnp.float32)
                h_new = m * h_new + (1.0 - m) * h
            feat_scr[pl.ds(off, B_pad), :] = h_new           # aligned f32 store
            return h_new

        h_T = lax.fori_loop(0, Tc, step, h_scr[l], unroll=min(8, Tc))
        h_scr[l] = h_T                                       # carried to next chunk
        cur_in = feat_scr[...].astype(jnp.bfloat16)          # (Tc*B_pad, H_pad)

    # TODO(synk): nn.Dropout is identity in eval/inference mode; training-mode dropout
    # (pltpu.prng_random_bits mask on cur_in) is not implemented here.

    # Head: Linear(latent->in) -> ReLU -> Linear(in->in) on the VMEM-resident chunk.
    h1 = jnp.maximum(
        jnp.dot(cur_in, w1_ref[...], preferred_element_type=jnp.float32) + b1_ref[...],
        0.0)
    out_ref[...] = jnp.dot(h1.astype(jnp.bfloat16), w2_ref[...],
                           preferred_element_type=jnp.float32) + b2_ref[...]

    # Final hidden state written once (output block index constant across the grid).
    @pl.when(chunk == n_chunks - 1)
    def _():
        hT_ref[...] = h_scr[...]


# ----------------------------------------------------------------------------
# Wrapper helpers: padding / weight prep / chunk & VMEM sizing.
# ----------------------------------------------------------------------------
def _prep_gru_layer(p, din, H, din_pad, H_pad):
    """Split per-gate, transpose, pad to lane width, fold r/z hidden biases, cast bf16."""
    wih, whh, bih, bhh = p["wih"], p["whh"], p["bih"], p["bhh"]

    def pad_gate_w(w, rows, rows_pad):               # (H, rows) -> (rows_pad, H_pad)
        return jnp.pad(w.T, ((0, rows_pad - rows), (0, H_pad - H)))

    wih_t = jnp.concatenate(
        [pad_gate_w(wih[g * H:(g + 1) * H], din, din_pad) for g in range(3)],
        axis=1).astype(jnp.bfloat16)
    whh_rz = jnp.concatenate(
        [pad_gate_w(whh[g * H:(g + 1) * H], H, H_pad) for g in range(2)],
        axis=1).astype(jnp.bfloat16)
    whh_n = pad_gate_w(whh[2 * H:], H, H_pad).astype(jnp.bfloat16)

    def pad_b(b):
        return jnp.pad(b, (0, H_pad - H))

    # Fold b_hr / b_hz into the input-side bias; b_hn must stay inside r*(...).
    bi = jnp.concatenate([pad_b(bih[:H] + bhh[:H]),
                          pad_b(bih[H:2 * H] + bhh[H:2 * H]),
                          pad_b(bih[2 * H:])]).reshape(1, 3 * H_pad).astype(jnp.float32)
    bhn = pad_b(bhh[2 * H:]).reshape(1, H_pad).astype(jnp.float32)
    return wih_t, whh_rz, whh_n, bi, bhn


def _pick_time_chunk(T, B_pad, H_pad, Din_pad, budget_bytes=8 << 20):
    """Largest Tc whose chunk-resident slabs fit a fixed VMEM budget (T-independent)."""
    per_t = B_pad * (3 * H_pad * 4 + H_pad * 4            # gi_scr + feat_scr (f32)
                     + 2 * Din_pad * 2 + 2 * Din_pad * 4  # x (bf16) / out (f32), 2-buffered
                     + Din_pad * 4)                       # head intermediate
    return int(max(1, min(T, budget_bytes // per_t)))


def _vmem_limit_bytes(depth, Tc, B_pad, H_pad, Din_pad):
    rows = Tc * B_pad
    est = 0
    est += 2 * rows * Din_pad * 2                        # x chunk bf16, double-buffered
    est += 2 * rows * Din_pad * 4                        # out chunk f32, double-buffered
    est += 3 * depth * B_pad * H_pad * 4                 # h0 in + hT out + h_scr
    est += rows * 3 * H_pad * 4                          # gi_scr
    est += rows * H_pad * 4                              # feat_scr
    est += depth * (Din_pad + H_pad) * 3 * H_pad * 2     # GRU weights (bf16, upper bound)
    est += (H_pad + Din_pad) * Din_pad * 2               # head weights bf16
    est += rows * (Din_pad * 4 + Din_pad * 2 + H_pad * 2)  # in-kernel temps (h1, casts)
    # Explicit limit: above v5e/v6e scoped defaults when needed, safely under v7x's 64 MiB.
    return int(min(48 << 20, max(24 << 20, 2 * est)))


# ----------------------------------------------------------------------------
# Wrapper: padding / pallas_call.
# ----------------------------------------------------------------------------
def rnn_regressor_forward(x, params, inH=None, time_chunk=None):
    """x: (B, T, in_size) batch_first. Returns (out (B,T,in_size), H (depth,B,latent))."""
    B, T, Din = x.shape
    depth = len(params["gru"])
    H = params["gru"][0]["whh"].shape[1]

    B_pad = _round_up(B, 8)          # sublane alignment
    H_pad = _round_up(H, 128)        # lane alignment
    Din_pad = _round_up(Din, 128)

    Tc = time_chunk if time_chunk is not None else _pick_time_chunk(T, B_pad, H_pad, Din_pad)
    Tc = int(min(max(Tc, 1), T))
    n_chunks = -(-T // Tc)
    T_pad = n_chunks * Tc

    # Time-major, batch/lane zero-padded, flattened to lane-dense (T_pad*B_pad, Dpad) bf16.
    x_tb = jnp.transpose(x, (1, 0, 2)).astype(jnp.float32)
    x_flat = jnp.pad(
        x_tb, ((0, T_pad - T), (0, B_pad - B), (0, Din_pad - Din))
    ).reshape(T_pad * B_pad, Din_pad).astype(jnp.bfloat16)

    if inH is None:
        h0 = jnp.zeros((depth, B_pad, H_pad), jnp.float32)
    else:
        h0 = jnp.pad(inH.astype(jnp.float32),
                     ((0, 0), (0, B_pad - B), (0, H_pad - H)))

    layer_args = []
    for l in range(depth):
        din = Din if l == 0 else H
        din_pad = Din_pad if l == 0 else H_pad
        layer_args += list(_prep_gru_layer(params["gru"][l], din, H, din_pad, H_pad))

    hp = params["head"]
    w1_t = jnp.pad(hp["w1"].T, ((0, H_pad - H), (0, Din_pad - Din))).astype(jnp.bfloat16)
    b1 = jnp.pad(hp["b1"], (0, Din_pad - Din)).reshape(1, Din_pad).astype(jnp.float32)
    w2_t = jnp.pad(hp["w2"].T, ((0, Din_pad - Din), (0, Din_pad - Din))).astype(jnp.bfloat16)
    b2 = jnp.pad(hp["b2"], (0, Din_pad - Din)).reshape(1, Din_pad).astype(jnp.float32)

    inputs = [x_flat, h0] + layer_args + [w1_t, b1, w2_t, b2]

    def _const_spec(shape):
        nd = len(shape)
        return pl.BlockSpec(shape, lambda i, _nd=nd: (0,) * _nd)

    in_specs = ([pl.BlockSpec((Tc * B_pad, Din_pad), lambda i: (i, 0))]      # x: per-chunk
                + [_const_spec(a.shape) for a in inputs[1:]])                # weights/h0

    kernel = functools.partial(_fused_rnn_kernel, depth, T, Tc, B_pad, H_pad)
    out_flat, hT = pl.pallas_call(
        kernel,
        out_shape=(
            jax.ShapeDtypeStruct((T_pad * B_pad, Din_pad), jnp.float32),
            jax.ShapeDtypeStruct((depth, B_pad, H_pad), jnp.float32),
        ),
        grid=(n_chunks,),
        in_specs=in_specs,
        out_specs=(
            pl.BlockSpec((Tc * B_pad, Din_pad), lambda i: (i, 0)),
            pl.BlockSpec((depth, B_pad, H_pad), lambda i: (0, 0, 0)),
        ),
        scratch_shapes=[
            pltpu.VMEM((depth, B_pad, H_pad), jnp.float32),    # carried hidden state
            pltpu.VMEM((Tc * B_pad, 3 * H_pad), jnp.float32),  # gi for the chunk
            pltpu.VMEM((Tc * B_pad, H_pad), jnp.float32),      # layer features for the chunk
        ],
        compiler_params=pltpu.CompilerParams(
            dimension_semantics=("arbitrary",),
            vmem_limit_bytes=_vmem_limit_bytes(depth, Tc, B_pad, H_pad, Din_pad)),
    )(*inputs)

    out = out_flat.reshape(T_pad, B_pad, Din_pad)[:T, :B, :Din].transpose(1, 0, 2)
    H_stack = hT[:, :B, :H]
    return out, H_stack


# ----------------------------------------------------------------------------
# Pure-JAX f32 reference (for correctness check only).
# ----------------------------------------------------------------------------
def _gru_layer_ref(x_tbd, h0, wih, whh, bih, bhh):
    H = h0.shape[-1]

    def step(h, x_t):
        gi = x_t @ wih.T + bih
        gh = h @ whh.T + bhh
        r = jax.nn.sigmoid(gi[:, :H] + gh[:, :H])
        z = jax.nn.sigmoid(gi[:, H:2 * H] + gh[:, H:2 * H])
        n = jnp.tanh(gi[:, 2 * H:] + r * gh[:, 2 * H:])
        h_new = (1.0 - z) * n + z * h
        return h_new, h_new

    h_T, feats = jax.lax.scan(step, h0, x_tbd)
    return feats, h_T


def rnn_regressor_ref(x, params, inH=None):
    B, T, Din = x.shape
    depth = len(params["gru"])
    latent = params["gru"][0]["whh"].shape[1]
    if inH is None:
        inH = jnp.zeros((depth, B, latent), jnp.float32)
    layer_in = jnp.transpose(x, (1, 0, 2))
    h_finals = []
    for l in range(depth):
        p = params["gru"][l]
        layer_in, h_T = _gru_layer_ref(layer_in, inH[l], p["wih"], p["whh"],
                                       p["bih"], p["bhh"])
        h_finals.append(h_T)
    hp = params["head"]
    h1 = jnp.maximum(layer_in.reshape(T * B, latent) @ hp["w1"].T + hp["b1"], 0.0)
    out = (h1 @ hp["w2"].T + hp["b2"]).reshape(T, B, Din).transpose(1, 0, 2)
    return out, jnp.stack(h_finals, axis=0)


# ----------------------------------------------------------------------------
# Deterministic parameter init (PyTorch-style shapes / U(-1/sqrt(H), 1/sqrt(H))).
# ----------------------------------------------------------------------------
def init_params(key, in_size, latent_size, depth):
    k = 1.0 / np.sqrt(latent_size)
    params = {"gru": [], "head": {}}
    for l in range(depth):
        din = in_size if l == 0 else latent_size
        key, k1, k2, k3, k4 = jax.random.split(key, 5)
        params["gru"].append({
            "wih": jax.random.uniform(k1, (3 * latent_size, din), jnp.float32, -k, k),
            "whh": jax.random.uniform(k2, (3 * latent_size, latent_size), jnp.float32, -k, k),
            "bih": jax.random.uniform(k3, (3 * latent_size,), jnp.float32, -k, k),
            "bhh": jax.random.uniform(k4, (3 * latent_size,), jnp.float32, -k, k),
        })
    key, k1, k2, k3, k4 = jax.random.split(key, 5)
    params["head"] = {
        "w1": jax.random.uniform(k1, (in_size, latent_size), jnp.float32, -k, k),
        "b1": jax.random.uniform(k2, (in_size,), jnp.float32, -k, k),
        "w2": jax.random.uniform(k3, (in_size, in_size), jnp.float32, -k, k),
        "b2": jax.random.uniform(k4, (in_size,), jnp.float32, -k, k),
    }
    return params


if __name__ == "__main__":
    B, T, IN_SIZE, LATENT, DEPTH = 2, 8, 16, 32, 2

    root = jax.random.PRNGKey(0)
    kx, kp = jax.random.split(root)
    x = jax.random.normal(kx, (B, T, IN_SIZE), jnp.float32)
    params = init_params(kp, IN_SIZE, LATENT, DEPTH)

    out_ref, H_ref = jax.block_until_ready(rnn_regressor_ref(x, params))

    # Single-chunk path (Tc == T).
    fwd = jax.jit(rnn_regressor_forward)
    out, H = jax.block_until_ready(fwd(x, params))
    assert out.shape == (B, T, IN_SIZE), out.shape
    assert H.shape == (DEPTH, B, LATENT), H.shape
    # bf16 MXU operands with f32 accumulation -> bf16-level tolerance vs f32 reference.
    np.testing.assert_allclose(np.asarray(out), np.asarray(out_ref), rtol=3e-2, atol=3e-2)
    np.testing.assert_allclose(np.asarray(H), np.asarray(H_ref), rtol=3e-2, atol=3e-2)

    # Multi-chunk path with a ragged tail (T=8, Tc=3 -> 3 chunks, last chunk masked).
    fwd_chunked = jax.jit(functools.partial(rnn_regressor_forward, time_chunk=3))
    out_c, H_c = jax.block_until_ready(fwd_chunked(x, params))
    np.testing.assert_allclose(np.asarray(out_c), np.asarray(out_ref), rtol=3e-2, atol=3e-2)
    np.testing.assert_allclose(np.asarray(H_c), np.asarray(H_ref), rtol=3e-2, atol=3e-2)

    print("KERNEL_OK")
</pallas_src>

<mosaic_0001>
module attributes {stable_mosaic.version = 11 : i64} {
  func.func @_fused_rnn_kernel(%arg0: i32, %arg1: memref<64x128xbf16, #tpu.memory_space<vmem>>, %arg2: memref<2x8x128xf32, #tpu.memory_space<vmem>>, %arg3: memref<128x384xbf16, #tpu.memory_space<vmem>>, %arg4: memref<128x256xbf16, #tpu.memory_space<vmem>>, %arg5: memref<128x128xbf16, #tpu.memory_space<vmem>>, %arg6: memref<1x384xf32, #tpu.memory_space<vmem>>, %arg7: memref<1x128xf32, #tpu.memory_space<vmem>>, %arg8: memref<128x384xbf16, #tpu.memory_space<vmem>>, %arg9: memref<128x256xbf16, #tpu.memory_space<vmem>>, %arg10: memref<128x128xbf16, #tpu.memory_space<vmem>>, %arg11: memref<1x384xf32, #tpu.memory_space<vmem>>, %arg12: memref<1x128xf32, #tpu.memory_space<vmem>>, %arg13: memref<128x128xbf16, #tpu.memory_space<vmem>>, %arg14: memref<1x128xf32, #tpu.memory_space<vmem>>, %arg15: memref<128x128xbf16, #tpu.memory_space<vmem>>, %arg16: memref<1x128xf32, #tpu.memory_space<vmem>>, %arg17: memref<64x128xf32, #tpu.memory_space<vmem>>, %arg18: memref<2x8x128xf32, #tpu.memory_space<vmem>>, %arg19: memref<2x8x128xf32, #tpu.memory_space<vmem>>, %arg20: memref<64x384xf32, #tpu.memory_space<vmem>>, %arg21: memref<64x128xf32, #tpu.memory_space<vmem>>) attributes {dimension_semantics = [#tpu.dimension_semantics<arbitrary>], iteration_bounds = array<i64: 1>, scalar_prefetch = 0 : i64, scratch_operands = 3 : i64, tpu.core_type = #tpu.core_type<tc>, window_params = [{transform_indices = @transform_0, window_bounds = array<i64: 64, 128>}, {pipeline_mode = #tpu.pipeline_mode<synchronous>, transform_indices = @transform_1, window_bounds = array<i64: 2, 8, 128>}, {pipeline_mode = #tpu.pipeline_mode<synchronous>, transform_indices = @transform_2, window_bounds = array<i64: 128, 384>}, {pipeline_mode = #tpu.pipeline_mode<synchronous>, transform_indices = @transform_3, window_bounds = array<i64: 128, 256>}, {pipeline_mode = #tpu.pipeline_mode<synchronous>, transform_indices = @transform_4, window_bounds = array<i64: 128, 128>}, {pipeline_mode = #tpu.pipeline_mode<synchronous>, transform_indices = @transform_5, window_bounds = array<i64: 1, 384>}, {pipeline_mode = #tpu.pipeline_mode<synchronous>, transform_indices = @transform_6, window_bounds = array<i64: 1, 128>}, {pipeline_mode = #tpu.pipeline_mode<synchronous>, transform_indices = @transform_7, window_bounds = array<i64: 128, 384>}, {pipeline_mode = #tpu.pipeline_mode<synchronous>, transform_indices = @transform_8, window_bounds = array<i64: 128, 256>}, {pipeline_mode = #tpu.pipeline_mode<synchronous>, transform_indices = @transform_9, window_bounds = array<i64: 128, 128>}, {pipeline_mode = #tpu.pipeline_mode<synchronous>, transform_indices = @transform_10, window_bounds = array<i64: 1, 384>}, {pipeline_mode = #tpu.pipeline_mode<synchronous>, transform_indices = @transform_11, window_bounds = array<i64: 1, 128>}, {pipeline_mode = #tpu.pipeline_mode<synchronous>, transform_indices = @transform_12, window_bounds = array<i64: 128, 128>}, {pipeline_mode = #tpu.pipeline_mode<synchronous>, transform_indices = @transform_13, window_bounds = array<i64: 1, 128>}, {pipeline_mode = #tpu.pipeline_mode<synchronous>, transform_indices = @transform_14, window_bounds = array<i64: 128, 128>}, {pipeline_mode = #tpu.pipeline_mode<synchronous>, transform_indices = @transform_15, window_bounds = array<i64: 1, 128>}, {transform_indices = @transform_16, window_bounds = array<i64: 64, 128>}, {pipeline_mode = #tpu.pipeline_mode<synchronous>, transform_indices = @transform_17, window_bounds = array<i64: 2, 8, 128>}]} {
    %c0_i32 = arith.constant 0 : i32
    %0 = arith.cmpi eq, %arg0, %c0_i32 : i32
    %1 = arith.extui %0 : i1 to i32
    %c0_i32_0 = arith.constant 0 : i32
    %2 = arith.cmpi ne, %1, %c0_i32_0 : i32
    scf.if %2 {
      %c0_195 = arith.constant 0 : index
      %c0_196 = arith.constant 0 : index
      %c0_197 = arith.constant 0 : index
      %617 = vector.load %arg2[%c0_195, %c0_196, %c0_197] : memref<2x8x128xf32, #tpu.memory_space<vmem>>, vector<2x8x128xf32>
      %c0_198 = arith.constant 0 : index
      %c0_199 = arith.constant 0 : index
      %c0_200 = arith.constant 0 : index
      %618 = vector.load %arg19[%c0_198, %c0_199, %c0_200] : memref<2x8x128xf32, #tpu.memory_space<vmem>>, vector<2x8x128xf32>
      tpu.vector_store %arg19[%c0_198, %c0_199, %c0_200], %617 {strides = array<i32>} : memref<2x8x128xf32, #tpu.memory_space<vmem>>, vector<2x8x128xf32>,
    } else {
    }
    %c0 = arith.constant 0 : index
    %c0_1 = arith.constant 0 : index
    %3 = vector.load %arg1[%c0, %c0_1] : memref<64x128xbf16, #tpu.memory_space<vmem>>, vector<64x128xbf16>
    %c0_2 = arith.constant 0 : index
    %c0_3 = arith.constant 0 : index
    %4 = vector.load %arg3[%c0_2, %c0_3] : memref<128x384xbf16, #tpu.memory_space<vmem>>, vector<128x384xbf16>
    %c0_4 = arith.constant 0 : index
    %c0_5 = arith.constant 0 : index
    %5 = vector.load %arg4[%c0_4, %c0_5] : memref<128x256xbf16, #tpu.memory_space<vmem>>, vector<128x256xbf16>
    %c0_6 = arith.constant 0 : index
    %c0_7 = arith.constant 0 : index
    %6 = vector.load %arg5[%c0_6, %c0_7] : memref<128x128xbf16, #tpu.memory_space<vmem>>, vector<128x128xbf16>
    %c0_8 = arith.constant 0 : index
    %c0_9 = arith.constant 0 : index
    %7 = vector.load %arg6[%c0_8, %c0_9] : memref<1x384xf32, #tpu.memory_space<vmem>>, vector<1x384xf32>
    %c0_10 = arith.constant 0 : index
    %c0_11 = arith.constant 0 : index
    %8 = vector.load %arg7[%c0_10, %c0_11] : memref<1x128xf32, #tpu.memory_space<vmem>>, vector<1x128xf32>
    %cst = arith.constant dense<0.000000e+00> : vector<64x384xf32>
    %9 = tpu.matmul %3, %4, %cst {dimension_numbers = #tpu.dot_dimension_numbers<[1], [0], [0], [1], [0, 0, 1, 1], [], []>} : vector<64x128xbf16>, vector<128x384xbf16>, vector<64x384xf32> -> vector<64x384xf32>
    %10 = vector.broadcast %7 : vector<1x384xf32> to vector<64x384xf32>
    %11 = arith.addf %9, %10 : vector<64x384xf32>
    %c0_12 = arith.constant 0 : index
    %c0_13 = arith.constant 0 : index
    %12 = vector.load %arg20[%c0_12, %c0_13] : memref<64x384xf32, #tpu.memory_space<vmem>>, vector<64x384xf32>
    tpu.vector_store %arg20[%c0_12, %c0_13], %11 {strides = array<i32>} : memref<64x384xf32, #tpu.memory_space<vmem>>, vector<64x384xf32>,
    %13 = vector.shape_cast %8 : vector<1x128xf32> to vector<1x128xf32>
    %14 = vector.broadcast %13 : vector<1x128xf32> to vector<8x128xf32>
    %c0_14 = arith.constant 0 : index
    %c0_15 = arith.constant 0 : index
    %c0_16 = arith.constant 0 : index
    %15 = vector.load %arg19[%c0_14, %c0_15, %c0_16] : memref<2x8x128xf32, #tpu.memory_space<vmem>>, vector<1x8x128xf32>
    %16 = vector.shape_cast %15 : vector<1x8x128xf32> to vector<8x128xf32>
    %c0_i32_17 = arith.constant 0 : i32
    %c8_i32 = arith.constant 8 : i32
    %17 = arith.muli %c0_i32_17, %c8_i32 : i32
    %18 = tpu.assume_multiple %17, 8 : i32
    %19 = arith.index_cast %18 : i32 to index
    %c0_18 = arith.constant 0 : index
    %20 = vector.load %arg20[%19, %c0_18] : memref<64x384xf32, #tpu.memory_space<vmem>>, vector<8x384xf32>
    %21 = arith.truncf %16 : vector<8x128xf32> to vector<8x128xbf16>
    %cst_19 = arith.constant dense<0.000000e+00> : vector<8x256xf32>
    %22 = tpu.matmul %21, %5, %cst_19 {dimension_numbers = #tpu.dot_dimension_numbers<[1], [0], [0], [1], [0, 0, 1, 1], [], []>} : vector<8x128xbf16>, vector<128x256xbf16>, vector<8x256xf32> -> vector<8x256xf32>
    %cst_20 = arith.constant dense<0.000000e+00> : vector<8x128xf32>
    %23 = tpu.matmul %21, %6, %cst_20 {dimension_numbers = #tpu.dot_dimension_numbers<[1], [0], [0], [1], [0, 0, 1, 1], [], []>} : vector<8x128xbf16>, vector<128x128xbf16>, vector<8x128xf32> -> vector<8x128xf32>
    %24 = vector.extract_strided_slice %20 {offsets = [0, 0], sizes = [8, 128], strides = [1, 1]} : vector<8x384xf32> to vector<8x128xf32>
    %25 = vector.extract_strided_slice %22 {offsets = [0, 0], sizes = [8, 128], strides = [1, 1]} : vector<8x256xf32> to vector<8x128xf32>
    %26 = arith.addf %24, %25 : vector<8x128xf32>
    %27 = arith.negf %26 : vector<8x128xf32>
    %28 = math.exp %27 : vector<8x128xf32>
    %cst_21 = arith.constant 1.000000e+00 : f32
    %29 = vector.broadcast %cst_21 : f32 to vector<8x128xf32>
    %30 = arith.addf %29, %28 : vector<8x128xf32>
    %31 = arith.divf %29, %30 : vector<8x128xf32>
    %32 = vector.extract_strided_slice %20 {offsets = [0, 128], sizes = [8, 128], strides = [1, 1]} : vector<8x384xf32> to vector<8x128xf32>
    %33 = vector.extract_strided_slice %22 {offsets = [0, 128], sizes = [8, 128], strides = [1, 1]} : vector<8x256xf32> to vector<8x128xf32>
    %34 = arith.addf %32, %33 : vector<8x128xf32>
    %35 = arith.negf %34 : vector<8x128xf32>
    %36 = math.exp %35 : vector<8x128xf32>
    %cst_22 = arith.constant 1.000000e+00 : f32
    %37 = vector.broadcast %cst_22 : f32 to vector<8x128xf32>
    %38 = arith.addf %37, %36 : vector<8x128xf32>
    %39 = arith.divf %37, %38 : vector<8x128xf32>
    %40 = vector.extract_strided_slice %20 {offsets = [0, 256], sizes = [8, 128], strides = [1, 1]} : vector<8x384xf32> to vector<8x128xf32>
    %41 = arith.addf %23, %14 : vector<8x128xf32>
    %42 = arith.mulf %31, %41 : vector<8x128xf32>
    %43 = arith.addf %40, %42 : vector<8x128xf32>
    %44 = math.tanh %43 : vector<8x128xf32>
    %cst_23 = arith.constant 1.000000e+00 : f32
    %45 = vector.broadcast %cst_23 : f32 to vector<8x128xf32>
    %46 = arith.subf %45, %39 : vector<8x128xf32>
    %47 = arith.mulf %46, %44 : vector<8x128xf32>
    %48 = arith.mulf %39, %16 : vector<8x128xf32>
    %49 = arith.addf %47, %48 : vector<8x128xf32>
    %50 = arith.index_cast %18 : i32 to index
    %c0_24 = arith.constant 0 : index
    %51 = vector.load %arg21[%50, %c0_24] : memref<64x128xf32, #tpu.memory_space<vmem>>, vector<8x128xf32>
    tpu.vector_store %arg21[%50, %c0_24], %49 {strides = array<i32>} : memref<64x128xf32, #tpu.memory_space<vmem>>, vector<8x128xf32>,
    %c1_i32 = arith.constant 1 : i32
    %c8_i32_25 = arith.constant 8 : i32
    %52 = arith.muli %c1_i32, %c8_i32_25 : i32
    %53 = tpu.assume_multiple %52, 8 : i32
    %54 = arith.index_cast %53 : i32 to index
    %c0_26 = arith.constant 0 : index
    %55 = vector.load %arg20[%54, %c0_26] : memref<64x384xf32, #tpu.memory_space<vmem>>, vector<8x384xf32>
    %56 = arith.truncf %49 : vector<8x128xf32> to vector<8x128xbf16>
    %cst_27 = arith.constant dense<0.000000e+00> : vector<8x256xf32>
    %57 = tpu.matmul %56, %5, %cst_27 {dimension_numbers = #tpu.dot_dimension_numbers<[1], [0], [0], [1], [0, 0, 1, 1], [], []>} : vector<8x128xbf16>, vector<128x256xbf16>, vector<8x256xf32> -> vector<8x256xf32>
    %cst_28 = arith.constant dense<0.000000e+00> : vector<8x128xf32>
    %58 = tpu.matmul %56, %6, %cst_28 {dimension_numbers = #tpu.dot_dimension_numbers<[1], [0], [0], [1], [0, 0, 1, 1], [], []>} : vector<8x128xbf16>, vector<128x128xbf16>, vector<8x128xf32> -> vector<8x128xf32>
    %59 = vector.extract_strided_slice %55 {offsets = [0, 0], sizes = [8, 128], strides = [1, 1]} : vector<8x384xf32> to vector<8x128xf32>
    %60 = vector.extract_strided_slice %57 {offsets = [0, 0], sizes = [8, 128], strides = [1, 1]} : vector<8x256xf32> to vector<8x128xf32>
    %61 = arith.addf %59, %60 : vector<8x128xf32>
    %62 = arith.negf %61 : vector<8x128xf32>
    %63 = math.exp %62 : vector<8x128xf32>
    %cst_29 = arith.constant 1.000000e+00 : f32
    %64 = vector.broadcast %cst_29 : f32 to vector<8x128xf32>
    %65 = arith.addf %64, %63 : vector<8x128xf32>
    %66 = arith.divf %64, %65 : vector<8x128xf32>
    %67 = vector.extract_strided_slice %55 {offsets = [0, 128], sizes = [8, 128], strides = [1, 1]} : vector<8x384xf32> to vector<8x128xf32>
    %68 = vector.extract_strided_slice %57 {offsets = [0, 128], sizes = [8, 128], strides = [1, 1]} : vector<8x256xf32> to vector<8x128xf32>
    %69 = arith.addf %67, %68 : vector<8x128xf32>
    %70 = arith.negf %69 : vector<8x128xf32>
    %71 = math.exp %70 : vector<8x128xf32>
    %cst_30 = arith.constant 1.000000e+00 : f32
    %72 = vector.broadcast %cst_30 : f32 to vector<8x128xf32>
    %73 = arith.addf %72, %71 : vector<8x128xf32>
    %74 = arith.divf %72, %73 : vector<8x128xf32>
    %75 = vector.extract_strided_slice %55 {offsets = [0, 256], sizes = [8, 128], strides = [1, 1]} : vector<8x384xf32> to vector<8x128xf32>
    %76 = arith.addf %58, %14 : vector<8x128xf32>
    %77 = arith.mulf %66, %76 : vector<8x128xf32>
    %78 = arith.addf %75, %77 : vector<8x128xf32>
    %79 = math.tanh %78 : vector<8x128xf32>
    %cst_31 = arith.constant 1.000000e+00 : f32
    %80 = vector.broadcast %cst_31 : f32 to vector<8x128xf32>
    %81 = arith.subf %80, %74 : vector<8x128xf32>
    %82 = arith.mulf %81, %79 : vector<8x128xf32>
    %83 = arith.mulf %74, %49 : vector<8x128xf32>
    %84 = arith.addf %82, %83 : vector<8x128xf32>
    %85 = arith.index_cast %53 : i32 to index
    %c0_32 = arith.constant 0 : index
    %86 = vector.load %arg21[%85, %c0_32] : memref<64x128xf32, #tpu.memory_space<vmem>>, vector<8x128xf32>
    tpu.vector_store %arg21[%85, %c0_32], %84 {strides = array<i32>} : memref<64x128xf32, #tpu.memory_space<vmem>>, vector<8x128xf32>,
    %c2_i32 = arith.constant 2 : i32
    %c8_i32_33 = arith.constant 8 : i32
    %87 = arith.muli %c2_i32, %c8_i32_33 : i32
    %88 = tpu.assume_multiple %87, 8 : i32
    %89 = arith.index_cast %88 : i32 to index
    %c0_34 = arith.constant 0 : index
    %90 = vector.load %arg20[%89, %c0_34] : memref<64x384xf32, #tpu.memory_space<vmem>>, vector<8x384xf32>
    %91 = arith.truncf %84 : vector<8x128xf32> to vector<8x128xbf16>
    %cst_35 = arith.constant dense<0.000000e+00> : vector<8x256xf32>
    %92 = tpu.matmul %91, %5, %cst_35 {dimension_numbers = #tpu.dot_dimension_numbers<[1], [0], [0], [1], [0, 0, 1, 1], [], []>} : vector<8x128xbf16>, vector<128x256xbf16>, vector<8x256xf32> -> vector<8x256xf32>
    %cst_36 = arith.constant dense<0.000000e+00> : vector<8x128xf32>
    %93 = tpu.matmul %91, %6, %cst_36 {dimension_numbers = #tpu.dot_dimension_numbers<[1], [0], [0], [1], [0, 0, 1, 1], [], []>} : vector<8x128xbf16>, vector<128x128xbf16>, vector<8x128xf32> -> vector<8x128xf32>
    %94 = vector.extract_strided_slice %90 {offsets = [0, 0], sizes = [8, 128], strides = [1, 1]} : vector<8x384xf32> to vector<8x128xf32>
    %95 = vector.extract_strided_slice %92 {offsets = [0, 0], sizes = [8, 128], strides = [1, 1]} : vector<8x256xf32> to vector<8x128xf32>
    %96 = arith.addf %94, %95 : vector<8x128xf32>
    %97 = arith.negf %96 : vector<8x128xf32>
    %98 = math.exp %97 : vector<8x128xf32>
    %cst_37 = arith.constant 1.000000e+00 : f32
    %99 = vector.broadcast %cst_37 : f32 to vector<8x128xf32>
    %100 = arith.addf %99, %98 : vector<8x128xf32>
    %101 = arith.divf %99, %100 : vector<8x128xf32>
    %102 = vector.extract_strided_slice %90 {offsets = [0, 128], sizes = [8, 128], strides = [1, 1]} : vector<8x384xf32> to vector<8x128xf32>
    %103 = vector.extract_strided_slice %92 {offsets = [0, 128], sizes = [8, 128], strides = [1, 1]} : vector<8x256xf32> to vector<8x128xf32>
    %104 = arith.addf %102, %103 : vector<8x128xf32>
    %105 = arith.negf %104 : vector<8x128xf32>
    %106 = math.exp %105 : vector<8x128xf32>
    %cst_38 = arith.constant 1.000000e+00 : f32
    %107 = vector.broadcast %cst_38 : f32 to vector<8x128xf32>
    %108 = arith.addf %107, %106 : vector<8x128xf32>
    %109 = arith.divf %107, %108 : vector<8x128xf32>
    %110 = vector.extract_strided_slice %90 {offsets = [0, 256], sizes = [8, 128], strides = [1, 1]} : vector<8x384xf32> to vector<8x128xf32>
    %111 = arith.addf %93, %14 : vector<8x128xf32>
    %112 = arith.mulf %101, %111 : vector<8x128xf32>
    %113 = arith.addf %110, %112 : vector<8x128xf32>
    %114 = math.tanh %113 : vector<8x128xf32>
    %cst_39 = arith.constant 1.000000e+00 : f32
    %115 = vector.broadcast %cst_39 : f32 to vector<8x128xf32>
    %116 = arith.subf %115, %109 : vector<8x128xf32>
    %117 = arith.mulf %116, %114 : vector<8x128xf32>
    %118 = arith.mulf %109, %84 : vector<8x128xf32>
    %119 = arith.addf %117, %118 : vector<8x128xf32>
    %120 = arith.index_cast %88 : i32 to index
    %c0_40 = arith.constant 0 : index
    %121 = vector.load %arg21[%120, %c0_40] : memref<64x128xf32, #tpu.memory_space<vmem>>, vector<8x128xf32>
    tpu.vector_store %arg21[%120, %c0_40], %119 {strides = array<i32>} : memref<64x128xf32, #tpu.memory_space<vmem>>, vector<8x128xf32>,
    %c3_i32 = arith.constant 3 : i32
    %c8_i32_41 = arith.constant 8 : i32
    %122 = arith.muli %c3_i32, %c8_i32_41 : i32
    %123 = tpu.assume_multiple %122, 8 : i32
    %124 = arith.index_cast %123 : i32 to index
    %c0_42 = arith.constant 0 : index
    %125 = vector.load %arg20[%124, %c0_42] : memref<64x384xf32, #tpu.memory_space<vmem>>, vector<8x384xf32>
    %126 = arith.truncf %119 : vector<8x128xf32> to vector<8x128xbf16>
    %cst_43 = arith.constant dense<0.000000e+00> : vector<8x256xf32>
    %127 = tpu.matmul %126, %5, %cst_43 {dimension_numbers = #tpu.dot_dimension_numbers<[1], [0], [0], [1], [0, 0, 1, 1], [], []>} : vector<8x128xbf16>, vector<128x256xbf16>, vector<8x256xf32> -> vector<8x256xf32>
    %cst_44 = arith.constant dense<0.000000e+00> : vector<8x128xf32>
    %128 = tpu.matmul %126, %6, %cst_44 {dimension_numbers = #tpu.dot_dimension_numbers<[1], [0], [0], [1], [0, 0, 1, 1], [], []>} : vector<8x128xbf16>, vector<128x128xbf16>, vector<8x128xf32> -> vector<8x128xf32>
    %129 = vector.extract_strided_slice %125 {offsets = [0, 0], sizes = [8, 128], strides = [1, 1]} : vector<8x384xf32> to vector<8x128xf32>
    %130 = vector.extract_strided_slice %127 {offsets = [0, 0], sizes = [8, 128], strides = [1, 1]} : vector<8x256xf32> to vector<8x128xf32>
    %131 = arith.addf %129, %130 : vector<8x128xf32>
    %132 = arith.negf %131 : vector<8x128xf32>
    %133 = math.exp %132 : vector<8x128xf32>
    %cst_45 = arith.constant 1.000000e+00 : f32
    %134 = vector.broadcast %cst_45 : f32 to vector<8x128xf32>
    %135 = arith.addf %134, %133 : vector<8x128xf32>
    %136 = arith.divf %134, %135 : vector<8x128xf32>
    %137 = vector.extract_strided_slice %125 {offsets = [0, 128], sizes = [8, 128], strides = [1, 1]} : vector<8x384xf32> to vector<8x128xf32>
    %138 = vector.extract_strided_slice %127 {offsets = [0, 128], sizes = [8, 128], strides = [1, 1]} : vector<8x256xf32> to vector<8x128xf32>
    %139 = arith.addf %137, %138 : vector<8x128xf32>
    %140 = arith.negf %139 : vector<8x128xf32>
    %141 = math.exp %140 : vector<8x128xf32>
    %cst_46 = arith.constant 1.000000e+00 : f32
    %142 = vector.broadcast %cst_46 : f32 to vector<8x128xf32>
    %143 = arith.addf %142, %141 : vector<8x128xf32>
    %144 = arith.divf %142, %143 : vector<8x128xf32>
    %145 = vector.extract_strided_slice %125 {offsets = [0, 256], sizes = [8, 128], strides = [1, 1]} : vector<8x384xf32> to vector<8x128xf32>
    %146 = arith.addf %128, %14 : vector<8x128xf32>
    %147 = arith.mulf %136, %146 : vector<8x128xf32>
    %148 = arith.addf %145, %147 : vector<8x128xf32>
    %149 = math.tanh %148 : vector<8x128xf32>
    %cst_47 = arith.constant 1.000000e+00 : f32
    %150 = vector.broadcast %cst_47 : f32 to vector<8x128xf32>
    %151 = arith.subf %150, %144 : vector<8x128xf32>
    %152 = arith.mulf %151, %149 : vector<8x128xf32>
    %153 = arith.mulf %144, %119 : vector<8x128xf32>
    %154 = arith.addf %152, %153 : vector<8x128xf32>
    %155 = arith.index_cast %123 : i32 to index
    %c0_48 = arith.constant 0 : index
    %156 = vector.load %arg21[%155, %c0_48] : memref<64x128xf32, #tpu.memory_space<vmem>>, vector<8x128xf32>
    tpu.vector_store %arg21[%155, %c0_48], %154 {strides = array<i32>} : memref<64x128xf32, #tpu.memory_space<vmem>>, vector<8x128xf32>,
    %c4_i32 = arith.constant 4 : i32
    %c8_i32_49 = arith.constant 8 : i32
    %157 = arith.muli %c4_i32, %c8_i32_49 : i32
    %158 = tpu.assume_multiple %157, 8 : i32
    %159 = arith.index_cast %158 : i32 to index
    %c0_50 = arith.constant 0 : index
    %160 = vector.load %arg20[%159, %c0_50] : memref<64x384xf32, #tpu.memory_space<vmem>>, vector<8x384xf32>
    %161 = arith.truncf %154 : vector<8x128xf32> to vector<8x128xbf16>
    %cst_51 = arith.constant dense<0.000000e+00> : vector<8x256xf32>
    %162 = tpu.matmul %161, %5, %cst_51 {dimension_numbers = #tpu.dot_dimension_numbers<[1], [0], [0], [1], [0, 0, 1, 1], [], []>} : vector<8x128xbf16>, vector<128x256xbf16>, vector<8x256xf32> -> vector<8x256xf32>
    %cst_52 = arith.constant dense<0.000000e+00> : vector<8x128xf32>
    %163 = tpu.matmul %161, %6, %cst_52 {dimension_numbers = #tpu.dot_dimension_numbers<[1], [0], [0], [1], [0, 0, 1, 1], [], []>} : vector<8x128xbf16>, vector<128x128xbf16>, vector<8x128xf32> -> vector<8x128xf32>
    %164 = vector.extract_strided_slice %160 {offsets = [0, 0], sizes = [8, 128], strides = [1, 1]} : vector<8x384xf32> to vector<8x128xf32>
    %165 = vector.extract_strided_slice %162 {offsets = [0, 0], sizes = [8, 128], strides = [1, 1]} : vector<8x256xf32> to vector<8x128xf32>
    %166 = arith.addf %164, %165 : vector<8x128xf32>
    %167 = arith.negf %166 : vector<8x128xf32>
    %168 = math.exp %167 : vector<8x128xf32>
    %cst_53 = arith.constant 1.000000e+00 : f32
    %169 = vector.broadcast %cst_53 : f32 to vector<8x128xf32>
    %170 = arith.addf %169, %168 : vector<8x128xf32>
    %171 = arith.divf %169, %170 : vector<8x128xf32>
    %172 = vector.extract_strided_slice %160 {offsets = [0, 128], sizes = [8, 128], strides = [1, 1]} : vector<8x384xf32> to vector<8x128xf32>
    %173 = vector.extract_strided_slice %162 {offsets = [0, 128], sizes = [8, 128], strides = [1, 1]} : vector<8x256xf32> to vector<8x128xf32>
    %174 = arith.addf %172, %173 : vector<8x128xf32>
    %175 = arith.negf %174 : vector<8x128xf32>
    %176 = math.exp %175 : vector<8x128xf32>
    %cst_54 = arith.constant 1.000000e+00 : f32
    %177 = vector.broadcast %cst_54 : f32 to vector<8x128xf32>
    %178 = arith.addf %177, %176 : vector<8x128xf32>
    %179 = arith.divf %177, %178 : vector<8x128xf32>
    %180 = vector.extract_strided_slice %160 {offsets = [0, 256], sizes = [8, 128], strides = [1, 1]} : vector<8x384xf32> to vector<8x128xf32>
    %181 = arith.addf %163, %14 : vector<8x128xf32>
    %182 = arith.mulf %171, %181 : vector<8x128xf32>
    %183 = arith.addf %180, %182 : vector<8x128xf32>
    %184 = math.tanh %183 : vector<8x128xf32>
    %cst_55 = arith.constant 1.000000e+00 : f32
    %185 = vector.broadcast %cst_55 : f32 to vector<8x128xf32>
    %186 = arith.subf %185, %179 : vector<8x128xf32>
    %187 = arith.mulf %186, %184 : vector<8x128xf32>
    %188 = arith.mulf %179, %154 : vector<8x128xf32>
    %189 = arith.addf %187, %188 : vector<8x128xf32>
    %190 = arith.index_cast %158 : i32 to index
    %c0_56 = arith.constant 0 : index
    %191 = vector.load %arg21[%190, %c0_56] : memref<64x128xf32, #tpu.memory_space<vmem>>, vector<8x128xf32>
    tpu.vector_store %arg21[%190, %c0_56], %189 {strides = array<i32>} : memref<64x128xf32, #tpu.memory_space<vmem>>, vector<8x128xf32>,
    %c5_i32 = arith.constant 5 : i32
    %c8_i32_57 = arith.constant 8 : i32
    %192 = arith.muli %c5_i32, %c8_i32_57 : i32
    %193 = tpu.assume_multiple %192, 8 : i32
    %194 = arith.index_cast %193 : i32 to index
    %c0_58 = arith.constant 0 : index
    %195 = vector.load %arg20[%194, %c0_58] : memref<64x384xf32, #tpu.memory_space<vmem>>, vector<8x384xf32>
    %196 = arith.truncf %189 : vector<8x128xf32> to vector<8x128xbf16>
    %cst_59 = arith.constant dense<0.000000e+00> : vector<8x256xf32>
    %197 = tpu.matmul %196, %5, %cst_59 {dimension_numbers = #tpu.dot_dimension_numbers<[1], [0], [0], [1], [0, 0, 1, 1], [], []>} : vector<8x128xbf16>, vector<128x256xbf16>, vector<8x256xf32> -> vector<8x256xf32>
    %cst_60 = arith.constant dense<0.000000e+00> : vector<8x128xf32>
    %198 = tpu.matmul %196, %6, %cst_60 {dimension_numbers = #tpu.dot_dimension_numbers<[1], [0], [0], [1], [0, 0, 1, 1], [], []>} : vector<8x128xbf16>, vector<128x128xbf16>, vector<8x128xf32> -> vector<8x128xf32>
    %199 = vector.extract_strided_slice %195 {offsets = [0, 0], sizes = [8, 128], strides = [1, 1]} : vector<8x384xf32> to vector<8x128xf32>
    %200 = vector.extract_strided_slice %197 {offsets = [0, 0], sizes = [8, 128], strides = [1, 1]} : vector<8x256xf32> to vector<8x128xf32>
    %201 = arith.addf %199, %200 : vector<8x128xf32>
    %202 = arith.negf %201 : vector<8x128xf32>
    %203 = math.exp %202 : vector<8x128xf32>
    %cst_61 = arith.constant 1.000000e+00 : f32
    %204 = vector.broadcast %cst_61 : f32 to vector<8x128xf32>
    %205 = arith.addf %204, %203 : vector<8x128xf32>
    %206 = arith.divf %204, %205 : vector<8x128xf32>
    %207 = vector.extract_strided_slice %195 {offsets = [0, 128], sizes = [8, 128], strides = [1, 1]} : vector<8x384xf32> to vector<8x128xf32>
    %208 = vector.extract_strided_slice %197 {offsets = [0, 128], sizes = [8, 128], strides = [1, 1]} : vector<8x256xf32> to vector<8x128xf32>
    %209 = arith.addf %207, %208 : vector<8x128xf32>
    %210 = arith.negf %209 : vector<8x128xf32>
    %211 = math.exp %210 : vector<8x128xf32>
    %cst_62 = arith.constant 1.000000e+00 : f32
    %212 = vector.broadcast %cst_62 : f32 to vector<8x128xf32>
    %213 = arith.addf %212, %211 : vector<8x128xf32>
    %214 = arith.divf %212, %213 : vector<8x128xf32>
    %215 = vector.extract_strided_slice %195 {offsets = [0, 256], sizes = [8, 128], strides = [1, 1]} : vector<8x384xf32> to vector<8x128xf32>
    %216 = arith.addf %198, %14 : vector<8x128xf32>
    %217 = arith.mulf %206, %216 : vector<8x128xf32>
    %218 = arith.addf %215, %217 : vector<8x128xf32>
    %219 = math.tanh %218 : vector<8x128xf32>
    %cst_63 = arith.constant 1.000000e+00 : f32
    %220 = vector.broadcast %cst_63 : f32 to vector<8x128xf32>
    %221 = arith.subf %220, %214 : vector<8x128xf32>
    %222 = arith.mulf %221, %219 : vector<8x128xf32>
    %223 = arith.mulf %214, %189 : vector<8x128xf32>
    %224 = arith.addf %222, %223 : vector<8x128xf32>
    %225 = arith.index_cast %193 : i32 to index
    %c0_64 = arith.constant 0 : index
    %226 = vector.load %arg21[%225, %c0_64] : memref<64x128xf32, #tpu.memory_space<vmem>>, vector<8x128xf32>
    tpu.vector_store %arg21[%225, %c0_64], %224 {strides = array<i32>} : memref<64x128xf32, #tpu.memory_space<vmem>>, vector<8x128xf32>,
    %c6_i32 = arith.constant 6 : i32
    %c8_i32_65 = arith.constant 8 : i32
    %227 = arith.muli %c6_i32, %c8_i32_65 : i32
    %228 = tpu.assume_multiple %227, 8 : i32
    %229 = arith.index_cast %228 : i32 to index
    %c0_66 = arith.constant 0 : index
    %230 = vector.load %arg20[%229, %c0_66] : memref<64x384xf32, #tpu.memory_space<vmem>>, vector<8x384xf32>
    %231 = arith.truncf %224 : vector<8x128xf32> to vector<8x128xbf16>
    %cst_67 = arith.constant dense<0.000000e+00> : vector<8x256xf32>
    %232 = tpu.matmul %231, %5, %cst_67 {dimension_numbers = #tpu.dot_dimension_numbers<[1], [0], [0], [1], [0, 0, 1, 1], [], []>} : vector<8x128xbf16>, vector<128x256xbf16>, vector<8x256xf32> -> vector<8x256xf32>
    %cst_68 = arith.constant dense<0.000000e+00> : vector<8x128xf32>
    %233 = tpu.matmul %231, %6, %cst_68 {dimension_numbers = #tpu.dot_dimension_numbers<[1], [0], [0], [1], [0, 0, 1, 1], [], []>} : vector<8x128xbf16>, vector<128x128xbf16>, vector<8x128xf32> -> vector<8x128xf32>
    %234 = vector.extract_strided_slice %230 {offsets = [0, 0], sizes = [8, 128], strides = [1, 1]} : vector<8x384xf32> to vector<8x128xf32>
    %235 = vector.extract_strided_slice %232 {offsets = [0, 0], sizes = [8, 128], strides = [1, 1]} : vector<8x256xf32> to vector<8x128xf32>
    %236 = arith.addf %234, %235 : vector<8x128xf32>
    %237 = arith.negf %236 : vector<8x128xf32>
    %238 = math.exp %237 : vector<8x128xf32>
    %cst_69 = arith.constant 1.000000e+00 : f32
    %239 = vector.broadcast %cst_69 : f32 to vector<8x128xf32>
    %240 = arith.addf %239, %238 : vector<8x128xf32>
    %241 = arith.divf %239, %240 : vector<8x128xf32>
    %242 = vector.extract_strided_slice %230 {offsets = [0, 128], sizes = [8, 128], strides = [1, 1]} : vector<8x384xf32> to vector<8x128xf32>
    %243 = vector.extract_strided_slice %232 {offsets = [0, 128], sizes = [8, 128], strides = [1, 1]} : vector<8x256xf32> to vector<8x128xf32>
    %244 = arith.addf %242, %243 : vector<8x128xf32>
    %245 = arith.negf %244 : vector<8x128xf32>
    %246 = math.exp %245 : vector<8x128xf32>
    %cst_70 = arith.constant 1.000000e+00 : f32
    %247 = vector.broadcast %cst_70 : f32 to vector<8x128xf32>
    %248 = arith.addf %247, %246 : vector<8x128xf32>
    %249 = arith.divf %247, %248 : vector<8x128xf32>
    %250 = vector.extract_strided_slice %230 {offsets = [0, 256], sizes = [8, 128], strides = [1, 1]} : vector<8x384xf32> to vector<8x128xf32>
    %251 = arith.addf %233, %14 : vector<8x128xf32>
    %252 = arith.mulf %241, %251 : vector<8x128xf32>
    %253 = arith.addf %250, %252 : vector<8x128xf32>
    %254 = math.tanh %253 : vector<8x128xf32>
    %cst_71 = arith.constant 1.000000e+00 : f32
    %255 = vector.broadcast %cst_71 : f32 to vector<8x128xf32>
    %256 = arith.subf %255, %249 : vector<8x128xf32>
    %257 = arith.mulf %256, %254 : vector<8x128xf32>
    %258 = arith.mulf %249, %224 : vector<8x128xf32>
    %259 = arith.addf %257, %258 : vector<8x128xf32>
    %260 = arith.index_cast %228 : i32 to index
    %c0_72 = arith.constant 0 : index
    %261 = vector.load %arg21[%260, %c0_72] : memref<64x128xf32, #tpu.memory_space<vmem>>, vector<8x128xf32>
    tpu.vector_store %arg21[%260, %c0_72], %259 {strides = array<i32>} : memref<64x128xf32, #tpu.memory_space<vmem>>, vector<8x128xf32>,
    %c7_i32 = arith.constant 7 : i32
    %c8_i32_73 = arith.constant 8 : i32
    %262 = arith.muli %c7_i32, %c8_i32_73 : i32
    %263 = tpu.assume_multiple %262, 8 : i32
    %264 = arith.index_cast %263 : i32 to index
    %c0_74 = arith.constant 0 : index
    %265 = vector.load %arg20[%264, %c0_74] : memref<64x384xf32, #tpu.memory_space<vmem>>, vector<8x384xf32>
    %266 = arith.truncf %259 : vector<8x128xf32> to vector<8x128xbf16>
    %cst_75 = arith.constant dense<0.000000e+00> : vector<8x256xf32>
    %267 = tpu.matmul %266, %5, %cst_75 {dimension_numbers = #tpu.dot_dimension_numbers<[1], [0], [0], [1], [0, 0, 1, 1], [], []>} : vector<8x128xbf16>, vector<128x256xbf16>, vector<8x256xf32> -> vector<8x256xf32>
    %cst_76 = arith.constant dense<0.000000e+00> : vector<8x128xf32>
    %268 = tpu.matmul %266, %6, %cst_76 {dimension_numbers = #tpu.dot_dimension_numbers<[1], [0], [0], [1], [0, 0, 1, 1], [], []>} : vector<8x128xbf16>, vector<128x128xbf16>, vector<8x128xf32> -> vector<8x128xf32>
    %269 = vector.extract_strided_slice %265 {offsets = [0, 0], sizes = [8, 128], strides = [1, 1]} : vector<8x384xf32> to vector<8x128xf32>
    %270 = vector.extract_strided_slice %267 {offsets = [0, 0], sizes = [8, 128], strides = [1, 1]} : vector<8x256xf32> to vector<8x128xf32>
    %271 = arith.addf %269, %270 : vector<8x128xf32>
    %272 = arith.negf %271 : vector<8x128xf32>
    %273 = math.exp %272 : vector<8x128xf32>
    %cst_77 = arith.constant 1.000000e+00 : f32
    %274 = vector.broadcast %cst_77 : f32 to vector<8x128xf32>
    %275 = arith.addf %274, %273 : vector<8x128xf32>
    %276 = arith.divf %274, %275 : vector<8x128xf32>
    %277 = vector.extract_strided_slice %265 {offsets = [0, 128], sizes = [8, 128], strides = [1, 1]} : vector<8x384xf32> to vector<8x128xf32>
    %278 = vector.extract_strided_slice %267 {offsets = [0, 128], sizes = [8, 128], strides = [1, 1]} : vector<8x256xf32> to vector<8x128xf32>
    %279 = arith.addf %277, %278 : vector<8x128xf32>
    %280 = arith.negf %279 : vector<8x128xf32>
    %281 = math.exp %280 : vector<8x128xf32>
    %cst_78 = arith.constant 1.000000e+00 : f32
    %282 = vector.broadcast %cst_78 : f32 to vector<8x128xf32>
    %283 = arith.addf %282, %281 : vector<8x128xf32>
    %284 = arith.divf %282, %283 : vector<8x128xf32>
    %285 = vector.extract_strided_slice %265 {offsets = [0, 256], sizes = [8, 128], strides = [1, 1]} : vector<8x384xf32> to vector<8x128xf32>
    %286 = arith.addf %268, %14 : vector<8x128xf32>
    %287 = arith.mulf %276, %286 : vector<8x128xf32>
    %288 = arith.addf %285, %287 : vector<8x128xf32>
    %289 = math.tanh %288 : vector<8x128xf32>
    %cst_79 = arith.constant 1.000000e+00 : f32
    %290 = vector.broadcast %cst_79 : f32 to vector<8x128xf32>
    %291 = arith.subf %290, %284 : vector<8x128xf32>
    %292 = arith.mulf %291, %289 : vector<8x128xf32>
    %293 = arith.mulf %284, %259 : vector<8x128xf32>
    %294 = arith.addf %292, %293 : vector<8x128xf32>
    %295 = arith.index_cast %263 : i32 to index
    %c0_80 = arith.constant 0 : index
    %296 = vector.load %arg21[%295, %c0_80] : memref<64x128xf32, #tpu.memory_space<vmem>>, vector<8x128xf32>
    tpu.vector_store %arg21[%295, %c0_80], %294 {strides = array<i32>} : memref<64x128xf32, #tpu.memory_space<vmem>>, vector<8x128xf32>,
    %c8_i32_81 = arith.constant 8 : i32
    %c0_82 = arith.constant 0 : index
    %c0_83 = arith.constant 0 : index
    %c0_84 = arith.constant 0 : index
    %297 = vector.load %arg19[%c0_82, %c0_83, %c0_84] : memref<2x8x128xf32, #tpu.memory_space<vmem>>, vector<1x8x128xf32>
    %298 = vector.shape_cast %297 : vector<1x8x128xf32> to vector<8x128xf32>
    %299 = vector.shape_cast %294 : vector<8x128xf32> to vector<1x8x128xf32>
    tpu.vector_store %arg19[%c0_82, %c0_83, %c0_84], %299 {strides = array<i32>} : memref<2x8x128xf32, #tpu.memory_space<vmem>>, vector<1x8x128xf32>,
    %c0_85 = arith.constant 0 : index
    %c0_86 = arith.constant 0 : index
    %300 = vector.load %arg21[%c0_85, %c0_86] : memref<64x128xf32, #tpu.memory_space<vmem>>, vector<64x128xf32>
    %301 = arith.truncf %300 : vector<64x128xf32> to vector<64x128xbf16>
    %c0_87 = arith.constant 0 : index
    %c0_88 = arith.constant 0 : index
    %302 = vector.load %arg8[%c0_87, %c0_88] : memref<128x384xbf16, #tpu.memory_space<vmem>>, vector<128x384xbf16>
    %c0_89 = arith.constant 0 : index
    %c0_90 = arith.constant 0 : index
    %303 = vector.load %arg9[%c0_89, %c0_90] : memref<128x256xbf16, #tpu.memory_space<vmem>>, vector<128x256xbf16>
    %c0_91 = arith.constant 0 : index
    %c0_92 = arith.constant 0 : index
    %304 = vector.load %arg10[%c0_91, %c0_92] : memref<128x128xbf16, #tpu.memory_space<vmem>>, vector<128x128xbf16>
    %c0_93 = arith.constant 0 : index
    %c0_94 = arith.constant 0 : index
    %305 = vector.load %arg11[%c0_93, %c0_94] : memref<1x384xf32, #tpu.memory_space<vmem>>, vector<1x384xf32>
    %c0_95 = arith.constant 0 : index
    %c0_96 = arith.constant 0 : index
    %306 = vector.load %arg12[%c0_95, %c0_96] : memref<1x128xf32, #tpu.memory_space<vmem>>, vector<1x128xf32>
    %cst_97 = arith.constant dense<0.000000e+00> : vector<64x384xf32>
    %307 = tpu.matmul %301, %302, %cst_97 {dimension_numbers = #tpu.dot_dimension_numbers<[1], [0], [0], [1], [0, 0, 1, 1], [], []>} : vector<64x128xbf16>, vector<128x384xbf16>, vector<64x384xf32> -> vector<64x384xf32>
    %308 = vector.broadcast %305 : vector<1x384xf32> to vector<64x384xf32>
    %309 = arith.addf %307, %308 : vector<64x384xf32>
    %c0_98 = arith.constant 0 : index
    %c0_99 = arith.constant 0 : index
    %310 = vector.load %arg20[%c0_98, %c0_99] : memref<64x384xf32, #tpu.memory_space<vmem>>, vector<64x384xf32>
    tpu.vector_store %arg20[%c0_98, %c0_99], %309 {strides = array<i32>} : memref<64x384xf32, #tpu.memory_space<vmem>>, vector<64x384xf32>,
    %311 = vector.shape_cast %306 : vector<1x128xf32> to vector<1x128xf32>
    %312 = vector.broadcast %311 : vector<1x128xf32> to vector<8x128xf32>
    %c1 = arith.constant 1 : index
    %c0_100 = arith.constant 0 : index
    %c0_101 = arith.constant 0 : index
    %313 = vector.load %arg19[%c1, %c0_100, %c0_101] : memref<2x8x128xf32, #tpu.memory_space<vmem>>, vector<1x8x128xf32>
    %314 = vector.shape_cast %313 : vector<1x8x128xf32> to vector<8x128xf32>
    %c0_i32_102 = arith.constant 0 : i32
    %c8_i32_103 = arith.constant 8 : i32
    %315 = arith.muli %c0_i32_102, %c8_i32_103 : i32
    %316 = tpu.assume_multiple %315, 8 : i32
    %317 = arith.index_cast %316 : i32 to index
    %c0_104 = arith.constant 0 : index
    %318 = vector.load %arg20[%317, %c0_104] : memref<64x384xf32, #tpu.memory_space<vmem>>, vector<8x384xf32>
    %319 = arith.truncf %314 : vector<8x128xf32> to vector<8x128xbf16>
    %cst_105 = arith.constant dense<0.000000e+00> : vector<8x256xf32>
    %320 = tpu.matmul %319, %303, %cst_105 {dimension_numbers = #tpu.dot_dimension_numbers<[1], [0], [0], [1], [0, 0, 1, 1], [], []>} : vector<8x128xbf16>, vector<128x256xbf16>, vector<8x256xf32> -> vector<8x256xf32>
    %cst_106 = arith.constant dense<0.000000e+00> : vector<8x128xf32>
    %321 = tpu.matmul %319, %304, %cst_106 {dimension_numbers = #tpu.dot_dimension_numbers<[1], [0], [0], [1], [0, 0, 1, 1], [], []>} : vector<8x128xbf16>, vector<128x128xbf16>, vector<8x128xf32> -> vector<8x128xf32>
    %322 = vector.extract_strided_slice %318 {offsets = [0, 0], sizes = [8, 128], strides = [1, 1]} : vector<8x384xf32> to vector<8x128xf32>
    %323 = vector.extract_strided_slice %320 {offsets = [0, 0], sizes = [8, 128], strides = [1, 1]} : vector<8x256xf32> to vector<8x128xf32>
    %324 = arith.addf %322, %323 : vector<8x128xf32>
    %325 = arith.negf %324 : vector<8x128xf32>
    %326 = math.exp %325 : vector<8x128xf32>
    %cst_107 = arith.constant 1.000000e+00 : f32
    %327 = vector.broadcast %cst_107 : f32 to vector<8x128xf32>
    %328 = arith.addf %327, %326 : vector<8x128xf32>
    %329 = arith.divf %327, %328 : vector<8x128xf32>
    %330 = vector.extract_strided_slice %318 {offsets = [0, 128], sizes = [8, 128], strides = [1, 1]} : vector<8x384xf32> to vector<8x128xf32>
    %331 = vector.extract_strided_slice %320 {offsets = [0, 128], sizes = [8, 128], strides = [1, 1]} : vector<8x256xf32> to vector<8x128xf32>
    %332 = arith.addf %330, %331 : vector<8x128xf32>
    %333 = arith.negf %332 : vector<8x128xf32>
    %334 = math.exp %333 : vector<8x128xf32>
    %cst_108 = arith.constant 1.000000e+00 : f32
    %335 = vector.broadcast %cst_108 : f32 to vector<8x128xf32>
    %336 = arith.addf %335, %334 : vector<8x128xf32>
    %337 = arith.divf %335, %336 : vector<8x128xf32>
    %338 = vector.extract_strided_slice %318 {offsets = [0, 256], sizes = [8, 128], strides = [1, 1]} : vector<8x384xf32> to vector<8x128xf32>
    %339 = arith.addf %321, %312 : vector<8x128xf32>
    %340 = arith.mulf %329, %339 : vector<8x128xf32>
    %341 = arith.addf %338, %340 : vector<8x128xf32>
    %342 = math.tanh %341 : vector<8x128xf32>
    %cst_109 = arith.constant 1.000000e+00 : f32
    %343 = vector.broadcast %cst_109 : f32 to vector<8x128xf32>
    %344 = arith.subf %343, %337 : vector<8x128xf32>
    %345 = arith.mulf %344, %342 : vector<8x128xf32>
    %346 = arith.mulf %337, %314 : vector<8x128xf32>
    %347 = arith.addf %345, %346 : vector<8x128xf32>
    %348 = arith.index_cast %316 : i32 to index
    %c0_110 = arith.constant 0 : index
    %349 = vector.load %arg21[%348, %c0_110] : memref<64x128xf32, #tpu.memory_space<vmem>>, vector<8x128xf32>
    tpu.vector_store %arg21[%348, %c0_110], %347 {strides = array<i32>} : memref<64x128xf32, #tpu.memory_space<vmem>>, vector<8x128xf32>,
    %c1_i32_111 = arith.constant 1 : i32
    %c8_i32_112 = arith.constant 8 : i32
    %350 = arith.muli %c1_i32_111, %c8_i32_112 : i32
    %351 = tpu.assume_multiple %350, 8 : i32
    %352 = arith.index_cast %351 : i32 to index
    %c0_113 = arith.constant 0 : index
    %353 = vector.load %arg20[%352, %c0_113] : memref<64x384xf32, #tpu.memory_space<vmem>>, vector<8x384xf32>
    %354 = arith.truncf %347 : vector<8x128xf32> to vector<8x128xbf16>
    %cst_114 = arith.constant dense<0.000000e+00> : vector<8x256xf32>
    %355 = tpu.matmul %354, %303, %cst_114 {dimension_numbers = #tpu.dot_dimension_numbers<[1], [0], [0], [1], [0, 0, 1, 1], [], []>} : vector<8x128xbf16>, vector<128x256xbf16>, vector<8x256xf32> -> vector<8x256xf32>
    %cst_115 = arith.constant dense<0.000000e+00> : vector<8x128xf32>
    %356 = tpu.matmul %354, %304, %cst_115 {dimension_numbers = #tpu.dot_dimension_numbers<[1], [0], [0], [1], [0, 0, 1, 1], [], []>} : vector<8x128xbf16>, vector<128x128xbf16>, vector<8x128xf32> -> vector<8x128xf32>
    %357 = vector.extract_strided_slice %353 {offsets = [0, 0], sizes = [8, 128], strides = [1, 1]} : vector<8x384xf32> to vector<8x128xf32>
    %358 = vector.extract_strided_slice %355 {offsets = [0, 0], sizes = [8, 128], strides = [1, 1]} : vector<8x256xf32> to vector<8x128xf32>
    %359 = arith.addf %357, %358 : vector<8x128xf32>
    %360 = arith.negf %359 : vector<8x128xf32>
    %361 = math.exp %360 : vector<8x128xf32>
    %cst_116 = arith.constant 1.000000e+00 : f32
    %362 = vector.broadcast %cst_116 : f32 to vector<8x128xf32>
    %363 = arith.addf %362, %361 : vector<8x128xf32>
    %364 = arith.divf %362, %363 : vector<8x128xf32>
    %365 = vector.extract_strided_slice %353 {offsets = [0, 128], sizes = [8, 128], strides = [1, 1]} : vector<8x384xf32> to vector<8x128xf32>
    %366 = vector.extract_strided_slice %355 {offsets = [0, 128], sizes = [8, 128], strides = [1, 1]} : vector<8x256xf32> to vector<8x128xf32>
    %367 = arith.addf %365, %366 : vector<8x128xf32>
    %368 = arith.negf %367 : vector<8x128xf32>
    %369 = math.exp %368 : vector<8x128xf32>
    %cst_117 = arith.constant 1.000000e+00 : f32
    %370 = vector.broadcast %cst_117 : f32 to vector<8x128xf32>
    %371 = arith.addf %370, %369 : vector<8x128xf32>
    %372 = arith.divf %370, %371 : vector<8x128xf32>
    %373 = vector.extract_strided_slice %353 {offsets = [0, 256], sizes = [8, 128], strides = [1, 1]} : vector<8x384xf32> to vector<8x128xf32>
    %374 = arith.addf %356, %312 : vector<8x128xf32>
    %375 = arith.mulf %364, %374 : vector<8x128xf32>
    %376 = arith.addf %373, %375 : vector<8x128xf32>
    %377 = math.tanh %376 : vector<8x128xf32>
    %cst_118 = arith.constant 1.000000e+00 : f32
    %378 = vector.broadcast %cst_118 : f32 to vector<8x128xf32>
    %379 = arith.subf %378, %372 : vector<8x128xf32>
    %380 = arith.mulf %379, %377 : vector<8x128xf32>
    %381 = arith.mulf %372, %347 : vector<8x128xf32>
    %382 = arith.addf %380, %381 : vector<8x128xf32>
    %383 = arith.index_cast %351 : i32 to index
    %c0_119 = arith.constant 0 : index
    %384 = vector.load %arg21[%383, %c0_119] : memref<64x128xf32, #tpu.memory_space<vmem>>, vector<8x128xf32>
    tpu.vector_store %arg21[%383, %c0_119], %382 {strides = array<i32>} : memref<64x128xf32, #tpu.memory_space<vmem>>, vector<8x128xf32>,
    %c2_i32_120 = arith.constant 2 : i32
    %c8_i32_121 = arith.constant 8 : i32
    %385 = arith.muli %c2_i32_120, %c8_i32_121 : i32
    %386 = tpu.assume_multiple %385, 8 : i32
    %387 = arith.index_cast %386 : i32 to index
    %c0_122 = arith.constant 0 : index
    %388 = vector.load %arg20[%387, %c0_122] : memref<64x384xf32, #tpu.memory_space<vmem>>, vector<8x384xf32>
    %389 = arith.truncf %382 : vector<8x128xf32> to vector<8x128xbf16>
    %cst_123 = arith.constant dense<0.000000e+00> : vector<8x256xf32>
    %390 = tpu.matmul %389, %303, %cst_123 {dimension_numbers = #tpu.dot_dimension_numbers<[1], [0], [0], [1], [0, 0, 1, 1], [], []>} : vector<8x128xbf16>, vector<128x256xbf16>, vector<8x256xf32> -> vector<8x256xf32>
    %cst_124 = arith.constant dense<0.000000e+00> : vector<8x128xf32>
    %391 = tpu.matmul %389, %304, %cst_124 {dimension_numbers = #tpu.dot_dimension_numbers<[1], [0], [0], [1], [0, 0, 1, 1], [], []>} : vector<8x128xbf16>, vector<128x128xbf16>, vector<8x128xf32> -> vector<8x128xf32>
    %392 = vector.extract_strided_slice %388 {offsets = [0, 0], sizes = [8, 128], strides = [1, 1]} : vector<8x384xf32> to vector<8x128xf32>
    %393 = vector.extract_strided_slice %390 {offsets = [0, 0], sizes = [8, 128], strides = [1, 1]} : vector<8x256xf32> to vector<8x128xf32>
    %394 = arith.addf %392, %393 : vector<8x128xf32>
    %395 = arith.negf %394 : vector<8x128xf32>
    %396 = math.exp %395 : vector<8x128xf32>
    %cst_125 = arith.constant 1.000000e+00 : f32
    %397 = vector.broadcast %cst_125 : f32 to vector<8x128xf32>
    %398 = arith.addf %397, %396 : vector<8x128xf32>
    %399 = arith.divf %397, %398 : vector<8x128xf32>
    %400 = vector.extract_strided_slice %388 {offsets = [0, 128], sizes = [8, 128], strides = [1, 1]} : vector<8x384xf32> to vector<8x128xf32>
    %401 = vector.extract_strided_slice %390 {offsets = [0, 128], sizes = [8, 128], strides = [1, 1]} : vector<8x256xf32> to vector<8x128xf32>
    %402 = arith.addf %400, %401 : vector<8x128xf32>
    %403 = arith.negf %402 : vector<8x128xf32>
    %404 = math.exp %403 : vector<8x128xf32>
    %cst_126 = arith.constant 1.000000e+00 : f32
    %405 = vector.broadcast %cst_126 : f32 to vector<8x128xf32>
    %406 = arith.addf %405, %404 : vector<8x128xf32>
    %407 = arith.divf %405, %406 : vector<8x128xf32>
    %408 = vector.extract_strided_slice %388 {offsets = [0, 256], sizes = [8, 128], strides = [1, 1]} : vector<8x384xf32> to vector<8x128xf32>
    %409 = arith.addf %391, %312 : vector<8x128xf32>
    %410 = arith.mulf %399, %409 : vector<8x128xf32>
    %411 = arith.addf %408, %410 : vector<8x128xf32>
    %412 = math.tanh %411 : vector<8x128xf32>
    %cst_127 = arith.constant 1.000000e+00 : f32
    %413 = vector.broadcast %cst_127 : f32 to vector<8x128xf32>
    %414 = arith.subf %413, %407 : vector<8x128xf32>
    %415 = arith.mulf %414, %412 : vector<8x128xf32>
    %416 = arith.mulf %407, %382 : vector<8x128xf32>
    %417 = arith.addf %415, %416 : vector<8x128xf32>
    %418 = arith.index_cast %386 : i32 to index
    %c0_128 = arith.constant 0 : index
    %419 = vector.load %arg21[%418, %c0_128] : memref<64x128xf32, #tpu.memory_space<vmem>>, vector<8x128xf32>
    tpu.vector_store %arg21[%418, %c0_128], %417 {strides = array<i32>} : memref<64x128xf32, #tpu.memory_space<vmem>>, vector<8x128xf32>,
    %c3_i32_129 = arith.constant 3 : i32
    %c8_i32_130 = arith.constant 8 : i32
    %420 = arith.muli %c3_i32_129, %c8_i32_130 : i32
    %421 = tpu.assume_multiple %420, 8 : i32
    %422 = arith.index_cast %421 : i32 to index
    %c0_131 = arith.constant 0 : index
    %423 = vector.load %arg20[%422, %c0_131] : memref<64x384xf32, #tpu.memory_space<vmem>>, vector<8x384xf32>
    %424 = arith.truncf %417 : vector<8x128xf32> to vector<8x128xbf16>
    %cst_132 = arith.constant dense<0.000000e+00> : vector<8x256xf32>
    %425 = tpu.matmul %424, %303, %cst_132 {dimension_numbers = #tpu.dot_dimension_numbers<[1], [0], [0], [1], [0, 0, 1, 1], [], []>} : vector<8x128xbf16>, vector<128x256xbf16>, vector<8x256xf32> -> vector<8x256xf32>
    %cst_133 = arith.constant dense<0.000000e+00> : vector<8x128xf32>
    %426 = tpu.matmul %424, %304, %cst_133 {dimension_numbers = #tpu.dot_dimension_numbers<[1], [0], [0], [1], [0, 0, 1, 1], [], []>} : vector<8x128xbf16>, vector<128x128xbf16>, vector<8x128xf32> -> vector<8x128xf32>
    %427 = vector.extract_strided_slice %423 {offsets = [0, 0], sizes = [8, 128], strides = [1, 1]} : vector<8x384xf32> to vector<8x128xf32>
    %428 = vector.extract_strided_slice %425 {offsets = [0, 0], sizes = [8, 128], strides = [1, 1]} : vector<8x256xf32> to vector<8x128xf32>
    %429 = arith.addf %427, %428 : vector<8x128xf32>
    %430 = arith.negf %429 : vector<8x128xf32>
    %431 = math.exp %430 : vector<8x128xf32>
    %cst_134 = arith.constant 1.000000e+00 : f32
    %432 = vector.broadcast %cst_134 : f32 to vector<8x128xf32>
    %433 = arith.addf %432, %431 : vector<8x128xf32>
    %434 = arith.divf %432, %433 : vector<8x128xf32>
    %435 = vector.extract_strided_slice %423 {offsets = [0, 128], sizes = [8, 128], strides = [1, 1]} : vector<8x384xf32> to vector<8x128xf32>
    %436 = vector.extract_strided_slice %425 {offsets = [0, 128], sizes = [8, 128], strides = [1, 1]} : vector<8x256xf32> to vector<8x128xf32>
    %437 = arith.addf %435, %436 : vector<8x128xf32>
    %438 = arith.negf %437 : vector<8x128xf32>
    %439 = math.exp %438 : vector<8x128xf32>
    %cst_135 = arith.constant 1.000000e+00 : f32
    %440 = vector.broadcast %cst_135 : f32 to vector<8x128xf32>
    %441 = arith.addf %440, %439 : vector<8x128xf32>
    %442 = arith.divf %440, %441 : vector<8x128xf32>
    %443 = vector.extract_strided_slice %423 {offsets = [0, 256], sizes = [8, 128], strides = [1, 1]} : vector<8x384xf32> to vector<8x128xf32>
    %444 = arith.addf %426, %312 : vector<8x128xf32>
    %445 = arith.mulf %434, %444 : vector<8x128xf32>
    %446 = arith.addf %443, %445 : vector<8x128xf32>
    %447 = math.tanh %446 : vector<8x128xf32>
    %cst_136 = arith.constant 1.000000e+00 : f32
    %448 = vector.broadcast %cst_136 : f32 to vector<8x128xf32>
    %449 = arith.subf %448, %442 : vector<8x128xf32>
    %450 = arith.mulf %449, %447 : vector<8x128xf32>
    %451 = arith.mulf %442, %417 : vector<8x128xf32>
    %452 = arith.addf %450, %451 : vector<8x128xf32>
    %453 = arith.index_cast %421 : i32 to index
    %c0_137 = arith.constant 0 : index
    %454 = vector.load %arg21[%453, %c0_137] : memref<64x128xf32, #tpu.memory_space<vmem>>, vector<8x128xf32>
    tpu.vector_store %arg21[%453, %c0_137], %452 {strides = array<i32>} : memref<64x128xf32, #tpu.memory_space<vmem>>, vector<8x128xf32>,
    %c4_i32_138 = arith.constant 4 : i32
    %c8_i32_139 = arith.constant 8 : i32
    %455 = arith.muli %c4_i32_138, %c8_i32_139 : i32
    %456 = tpu.assume_multiple %455, 8 : i32
    %457 = arith.index_cast %456 : i32 to index
    %c0_140 = arith.constant 0 : index
    %458 = vector.load %arg20[%457, %c0_140] : memref<64x384xf32, #tpu.memory_space<vmem>>, vector<8x384xf32>
    %459 = arith.truncf %452 : vector<8x128xf32> to vector<8x128xbf16>
    %cst_141 = arith.constant dense<0.000000e+00> : vector<8x256xf32>
    %460 = tpu.matmul %459, %303, %cst_141 {dimension_numbers = #tpu.dot_dimension_numbers<[1], [0], [0], [1], [0, 0, 1, 1], [], []>} : vector<8x128xbf16>, vector<128x256xbf16>, vector<8x256xf32> -> vector<8x256xf32>
    %cst_142 = arith.constant dense<0.000000e+00> : vector<8x128xf32>
    %461 = tpu.matmul %459, %304, %cst_142 {dimension_numbers = #tpu.dot_dimension_numbers<[1], [0], [0], [1], [0, 0, 1, 1], [], []>} : vector<8x128xbf16>, vector<128x128xbf16>, vector<8x128xf32> -> vector<8x128xf32>
    %462 = vector.extract_strided_slice %458 {offsets = [0, 0], sizes = [8, 128], strides = [1, 1]} : vector<8x384xf32> to vector<8x128xf32>
    %463 = vector.extract_strided_slice %460 {offsets = [0, 0], sizes = [8, 128], strides = [1, 1]} : vector<8x256xf32> to vector<8x128xf32>
    %464 = arith.addf %462, %463 : vector<8x128xf32>
    %465 = arith.negf %464 : vector<8x128xf32>
    %466 = math.exp %465 : vector<8x128xf32>
    %cst_143 = arith.constant 1.000000e+00 : f32
    %467 = vector.broadcast %cst_143 : f32 to vector<8x128xf32>
    %468 = arith.addf %467, %466 : vector<8x128xf32>
    %469 = arith.divf %467, %468 : vector<8x128xf32>
    %470 = vector.extract_strided_slice %458 {offsets = [0, 128], sizes = [8, 128], strides = [1, 1]} : vector<8x384xf32> to vector<8x128xf32>
    %471 = vector.extract_strided_slice %460 {offsets = [0, 128], sizes = [8, 128], strides = [1, 1]} : vector<8x256xf32> to vector<8x128xf32>
    %472 = arith.addf %470, %471 : vector<8x128xf32>
    %473 = arith.negf %472 : vector<8x128xf32>
    %474 = math.exp %473 : vector<8x128xf32>
    %cst_144 = arith.constant 1.000000e+00 : f32
    %475 = vector.broadcast %cst_144 : f32 to vector<8x128xf32>
    %476 = arith.addf %475, %474 : vector<8x128xf32>
    %477 = arith.divf %475, %476 : vector<8x128xf32>
    %478 = vector.extract_strided_slice %458 {offsets = [0, 256], sizes = [8, 128], strides = [1, 1]} : vector<8x384xf32> to vector<8x128xf32>
    %479 = arith.addf %461, %312 : vector<8x128xf32>
    %480 = arith.mulf %469, %479 : vector<8x128xf32>
    %481 = arith.addf %478, %480 : vector<8x128xf32>
    %482 = math.tanh %481 : vector<8x128xf32>
    %cst_145 = arith.constant 1.000000e+00 : f32
    %483 = vector.broadcast %cst_145 : f32 to vector<8x128xf32>
    %484 = arith.subf %483, %477 : vector<8x128xf32>
    %485 = arith.mulf %484, %482 : vector<8x128xf32>
    %486 = arith.mulf %477, %452 : vector<8x128xf32>
    %487 = arith.addf %485, %486 : vector<8x128xf32>
    %488 = arith.index_cast %456 : i32 to index
    %c0_146 = arith.constant 0 : index
    %489 = vector.load %arg21[%488, %c0_146] : memref<64x128xf32, #tpu.memory_space<vmem>>, vector<8x128xf32>
    tpu.vector_store %arg21[%488, %c0_146], %487 {strides = array<i32>} : memref<64x128xf32, #tpu.memory_space<vmem>>, vector<8x128xf32>,
    %c5_i32_147 = arith.constant 5 : i32
    %c8_i32_148 = arith.constant 8 : i32
    %490 = arith.muli %c5_i32_147, %c8_i32_148 : i32
    %491 = tpu.assume_multiple %490, 8 : i32
    %492 = arith.index_cast %491 : i32 to index
    %c0_149 = arith.constant 0 : index
    %493 = vector.load %arg20[%492, %c0_149] : memref<64x384xf32, #tpu.memory_space<vmem>>, vector<8x384xf32>
    %494 = arith.truncf %487 : vector<8x128xf32> to vector<8x128xbf16>
    %cst_150 = arith.constant dense<0.000000e+00> : vector<8x256xf32>
    %495 = tpu.matmul %494, %303, %cst_150 {dimension_numbers = #tpu.dot_dimension_numbers<[1], [0], [0], [1], [0, 0, 1, 1], [], []>} : vector<8x128xbf16>, vector<128x256xbf16>, vector<8x256xf32> -> vector<8x256xf32>
    %cst_151 = arith.constant dense<0.000000e+00> : vector<8x128xf32>
    %496 = tpu.matmul %494, %304, %cst_151 {dimension_numbers = #tpu.dot_dimension_numbers<[1], [0], [0], [1], [0, 0, 1, 1], [], []>} : vector<8x128xbf16>, vector<128x128xbf16>, vector<8x128xf32> -> vector<8x128xf32>
    %497 = vector.extract_strided_slice %493 {offsets = [0, 0], sizes = [8, 128], strides = [1, 1]} : vector<8x384xf32> to vector<8x128xf32>
    %498 = vector.extract_strided_slice %495 {offsets = [0, 0], sizes = [8, 128], strides = [1, 1]} : vector<8x256xf32> to vector<8x128xf32>
    %499 = arith.addf %497, %498 : vector<8x128xf32>
    %500 = arith.negf %499 : vector<8x128xf32>
    %501 = math.exp %500 : vector<8x128xf32>
    %cst_152 = arith.constant 1.000000e+00 : f32
    %502 = vector.broadcast %cst_152 : f32 to vector<8x128xf32>
    %503 = arith.addf %502, %501 : vector<8x128xf32>
    %504 = arith.divf %502, %503 : vector<8x128xf32>
    %505 = vector.extract_strided_slice %493 {offsets = [0, 128], sizes = [8, 128], strides = [1, 1]} : vector<8x384xf32> to vector<8x128xf32>
    %506 = vector.extract_strided_slice %495 {offsets = [0, 128], sizes = [8, 128], strides = [1, 1]} : vector<8x256xf32> to vector<8x128xf32>
    %507 = arith.addf %505, %506 : vector<8x128xf32>
    %508 = arith.negf %507 : vector<8x128xf32>
    %509 = math.exp %508 : vector<8x128xf32>
    %cst_153 = arith.constant 1.000000e+00 : f32
    %510 = vector.broadcast %cst_153 : f32 to vector<8x128xf32>
    %511 = arith.addf %510, %509 : vector<8x128xf32>
    %512 = arith.divf %510, %511 : vector<8x128xf32>
    %513 = vector.extract_strided_slice %493 {offsets = [0, 256], sizes = [8, 128], strides = [1, 1]} : vector<8x384xf32> to vector<8x128xf32>
    %514 = arith.addf %496, %312 : vector<8x128xf32>
    %515 = arith.mulf %504, %514 : vector<8x128xf32>
    %516 = arith.addf %513, %515 : vector<8x128xf32>
    %517 = math.tanh %516 : vector<8x128xf32>
    %cst_154 = arith.constant 1.000000e+00 : f32
    %518 = vector.broadcast %cst_154 : f32 to vector<8x128xf32>
    %519 = arith.subf %518, %512 : vector<8x128xf32>
    %520 = arith.mulf %519, %517 : vector<8x128xf32>
    %521 = arith.mulf %512, %487 : vector<8x128xf32>
    %522 = arith.addf %520, %521 : vector<8x128xf32>
    %523 = arith.index_cast %491 : i32 to index
    %c0_155 = arith.constant 0 : index
    %524 = vector.load %arg21[%523, %c0_155] : memref<64x128xf32, #tpu.memory_space<vmem>>, vector<8x128xf32>
    tpu.vector_store %arg21[%523, %c0_155], %522 {strides = array<i32>} : memref<64x128xf32, #tpu.memory_space<vmem>>, vector<8x128xf32>,
    %c6_i32_156 = arith.constant 6 : i32
    %c8_i32_157 = arith.constant 8 : i32
    %525 = arith.muli %c6_i32_156, %c8_i32_157 : i32
    %526 = tpu.assume_multiple %525, 8 : i32
    %527 = arith.index_cast %526 : i32 to index
    %c0_158 = arith.constant 0 : index
    %528 = vector.load %arg20[%527, %c0_158] : memref<64x384xf32, #tpu.memory_space<vmem>>, vector<8x384xf32>
    %529 = arith.truncf %522 : vector<8x128xf32> to vector<8x128xbf16>
    %cst_159 = arith.constant dense<0.000000e+00> : vector<8x256xf32>
    %530 = tpu.matmul %529, %303, %cst_159 {dimension_numbers = #tpu.dot_dimension_numbers<[1], [0], [0], [1], [0, 0, 1, 1], [], []>} : vector<8x128xbf16>, vector<128x256xbf16>, vector<8x256xf32> -> vector<8x256xf32>
    %cst_160 = arith.constant dense<0.000000e+00> : vector<8x128xf32>
    %531 = tpu.matmul %529, %304, %cst_160 {dimension_numbers = #tpu.dot_dimension_numbers<[1], [0], [0], [1], [0, 0, 1, 1], [], []>} : vector<8x128xbf16>, vector<128x128xbf16>, vector<8x128xf32> -> vector<8x128xf32>
    %532 = vector.extract_strided_slice %528 {offsets = [0, 0], sizes = [8, 128], strides = [1, 1]} : vector<8x384xf32> to vector<8x128xf32>
    %533 = vector.extract_strided_slice %530 {offsets = [0, 0], sizes = [8, 128], strides = [1, 1]} : vector<8x256xf32> to vector<8x128xf32>
    %534 = arith.addf %532, %533 : vector<8x128xf32>
    %535 = arith.negf %534 : vector<8x128xf32>
    %536 = math.exp %535 : vector<8x128xf32>
    %cst_161 = arith.constant 1.000000e+00 : f32
    %537 = vector.broadcast %cst_161 : f32 to vector<8x128xf32>
    %538 = arith.addf %537, %536 : vector<8x128xf32>
    %539 = arith.divf %537, %538 : vector<8x128xf32>
    %540 = vector.extract_strided_slice %528 {offsets = [0, 128], sizes = [8, 128], strides = [1, 1]} : vector<8x384xf32> to vector<8x128xf32>
    %541 = vector.extract_strided_slice %530 {offsets = [0, 128], sizes = [8, 128], strides = [1, 1]} : vector<8x256xf32> to vector<8x128xf32>
    %542 = arith.addf %540, %541 : vector<8x128xf32>
    %543 = arith.negf %542 : vector<8x128xf32>
    %544 = math.exp %543 : vector<8x128xf32>
    %cst_162 = arith.constant 1.000000e+00 : f32
    %545 = vector.broadcast %cst_162 : f32 to vector<8x128xf32>
    %546 = arith.addf %545, %544 : vector<8x128xf32>
    %547 = arith.divf %545, %546 : vector<8x128xf32>
    %548 = vector.extract_strided_slice %528 {offsets = [0, 256], sizes = [8, 128], strides = [1, 1]} : vector<8x384xf32> to vector<8x128xf32>
    %549 = arith.addf %531, %312 : vector<8x128xf32>
    %550 = arith.mulf %539, %549 : vector<8x128xf32>
    %551 = arith.addf %548, %550 : vector<8x128xf32>
    %552 = math.tanh %551 : vector<8x128xf32>
    %cst_163 = arith.constant 1.000000e+00 : f32
    %553 = vector.broadcast %cst_163 : f32 to vector<8x128xf32>
    %554 = arith.subf %553, %547 : vector<8x128xf32>
    %555 = arith.mulf %554, %552 : vector<8x128xf32>
    %556 = arith.mulf %547, %522 : vector<8x128xf32>
    %557 = arith.addf %555, %556 : vector<8x128xf32>
    %558 = arith.index_cast %526 : i32 to index
    %c0_164 = arith.constant 0 : index
    %559 = vector.load %arg21[%558, %c0_164] : memref<64x128xf32, #tpu.memory_space<vmem>>, vector<8x128xf32>
    tpu.vector_store %arg21[%558, %c0_164], %557 {strides = array<i32>} : memref<64x128xf32, #tpu.memory_space<vmem>>, vector<8x128xf32>,
    %c7_i32_165 = arith.constant 7 : i32
    %c8_i32_166 = arith.constant 8 : i32
    %560 = arith.muli %c7_i32_165, %c8_i32_166 : i32
    %561 = tpu.assume_multiple %560, 8 : i32
    %562 = arith.index_cast %561 : i32 to index
    %c0_167 = arith.constant 0 : index
    %563 = vector.load %arg20[%562, %c0_167] : memref<64x384xf32, #tpu.memory_space<vmem>>, vector<8x384xf32>
    %564 = arith.truncf %557 : vector<8x128xf32> to vector<8x128xbf16>
    %cst_168 = arith.constant dense<0.000000e+00> : vector<8x256xf32>
    %565 = tpu.matmul %564, %303, %cst_168 {dimension_numbers = #tpu.dot_dimension_numbers<[1], [0], [0], [1], [0, 0, 1, 1], [], []>} : vector<8x128xbf16>, vector<128x256xbf16>, vector<8x256xf32> -> vector<8x256xf32>
    %cst_169 = arith.constant dense<0.000000e+00> : vector<8x128xf32>
    %566 = tpu.matmul %564, %304, %cst_169 {dimension_numbers = #tpu.dot_dimension_numbers<[1], [0], [0], [1], [0, 0, 1, 1], [], []>} : vector<8x128xbf16>, vector<128x128xbf16>, vector<8x128xf32> -> vector<8x128xf32>
    %567 = vector.extract_strided_slice %563 {offsets = [0, 0], sizes = [8, 128], strides = [1, 1]} : vector<8x384xf32> to vector<8x128xf32>
    %568 = vector.extract_strided_slice %565 {offsets = [0, 0], sizes = [8, 128], strides = [1, 1]} : vector<8x256xf32> to vector<8x128xf32>
    %569 = arith.addf %567, %568 : vector<8x128xf32>
    %570 = arith.negf %569 : vector<8x128xf32>
    %571 = math.exp %570 : vector<8x128xf32>
    %cst_170 = arith.constant 1.000000e+00 : f32
    %572 = vector.broadcast %cst_170 : f32 to vector<8x128xf32>
    %573 = arith.addf %572, %571 : vector<8x128xf32>
    %574 = arith.divf %572, %573 : vector<8x128xf32>
    %575 = vector.extract_strided_slice %563 {offsets = [0, 128], sizes = [8, 128], strides = [1, 1]} : vector<8x384xf32> to vector<8x128xf32>
    %576 = vector.extract_strided_slice %565 {offsets = [0, 128], sizes = [8, 128], strides = [1, 1]} : vector<8x256xf32> to vector<8x128xf32>
    %577 = arith.addf %575, %576 : vector<8x128xf32>
    %578 = arith.negf %577 : vector<8x128xf32>
    %579 = math.exp %578 : vector<8x128xf32>
    %cst_171 = arith.constant 1.000000e+00 : f32
    %580 = vector.broadcast %cst_171 : f32 to vector<8x128xf32>
    %581 = arith.addf %580, %579 : vector<8x128xf32>
    %582 = arith.divf %580, %581 : vector<8x128xf32>
    %583 = vector.extract_strided_slice %563 {offsets = [0, 256], sizes = [8, 128], strides = [1, 1]} : vector<8x384xf32> to vector<8x128xf32>
    %584 = arith.addf %566, %312 : vector<8x128xf32>
    %585 = arith.mulf %574, %584 : vector<8x128xf32>
    %586 = arith.addf %583, %585 : vector<8x128xf32>
    %587 = math.tanh %586 : vector<8x128xf32>
    %cst_172 = arith.constant 1.000000e+00 : f32
    %588 = vector.broadcast %cst_172 : f32 to vector<8x128xf32>
    %589 = arith.subf %588, %582 : vector<8x128xf32>
    %590 = arith.mulf %589, %587 : vector<8x128xf32>
    %591 = arith.mulf %582, %557 : vector<8x128xf32>
    %592 = arith.addf %590, %591 : vector<8x128xf32>
    %593 = arith.index_cast %561 : i32 to index
    %c0_173 = arith.constant 0 : index
    %594 = vector.load %arg21[%593, %c0_173] : memref<64x128xf32, #tpu.memory_space<vmem>>, vector<8x128xf32>
    tpu.vector_store %arg21[%593, %c0_173], %592 {strides = array<i32>} : memref<64x128xf32, #tpu.memory_space<vmem>>, vector<8x128xf32>,
    %c8_i32_174 = arith.constant 8 : i32
    %c1_175 = arith.constant 1 : index
    %c0_176 = arith.constant 0 : index
    %c0_177 = arith.constant 0 : index
    %595 = vector.load %arg19[%c1_175, %c0_176, %c0_177] : memref<2x8x128xf32, #tpu.memory_space<vmem>>, vector<1x8x128xf32>
    %596 = vector.shape_cast %595 : vector<1x8x128xf32> to vector<8x128xf32>
    %597 = vector.shape_cast %592 : vector<8x128xf32> to vector<1x8x128xf32>
    tpu.vector_store %arg19[%c1_175, %c0_176, %c0_177], %597 {strides = array<i32>} : memref<2x8x128xf32, #tpu.memory_space<vmem>>, vector<1x8x128xf32>,
    %c0_178 = arith.constant 0 : index
    %c0_179 = arith.constant 0 : index
    %598 = vector.load %arg21[%c0_178, %c0_179] : memref<64x128xf32, #tpu.memory_space<vmem>>, vector<64x128xf32>
    %599 = arith.truncf %598 : vector<64x128xf32> to vector<64x128xbf16>
    %c0_180 = arith.constant 0 : index
    %c0_181 = arith.constant 0 : index
    %600 = vector.load %arg13[%c0_180, %c0_181] : memref<128x128xbf16, #tpu.memory_space<vmem>>, vector<128x128xbf16>
    %cst_182 = arith.constant dense<0.000000e+00> : vector<64x128xf32>
    %601 = tpu.matmul %599, %600, %cst_182 {dimension_numbers = #tpu.dot_dimension_numbers<[1], [0], [0], [1], [0, 0, 1, 1], [], []>} : vector<64x128xbf16>, vector<128x128xbf16>, vector<64x128xf32> -> vector<64x128xf32>
    %c0_183 = arith.constant 0 : index
    %c0_184 = arith.constant 0 : index
    %602 = vector.load %arg14[%c0_183, %c0_184] : memref<1x128xf32, #tpu.memory_space<vmem>>, vector<1x128xf32>
    %603 = vector.broadcast %602 : vector<1x128xf32> to vector<64x128xf32>
    %604 = arith.addf %601, %603 : vector<64x128xf32>
    %cst_185 = arith.constant 0.000000e+00 : f32
    %605 = vector.broadcast %cst_185 : f32 to vector<64x128xf32>
    %606 = arith.maximumf %604, %605 : vector<64x128xf32>
    %607 = arith.truncf %606 : vector<64x128xf32> to vector<64x128xbf16>
    %c0_186 = arith.constant 0 : index
    %c0_187 = arith.constant 0 : index
    %608 = vector.load %arg15[%c0_186, %c0_187] : memref<128x128xbf16, #tpu.memory_space<vmem>>, vector<128x128xbf16>
    %cst_188 = arith.constant dense<0.000000e+00> : vector<64x128xf32>
    %609 = tpu.matmul %607, %608, %cst_188 {dimension_numbers = #tpu.dot_dimension_numbers<[1], [0], [0], [1], [0, 0, 1, 1], [], []>} : vector<64x128xbf16>, vector<128x128xbf16>, vector<64x128xf32> -> vector<64x128xf32>
    %c0_189 = arith.constant 0 : index
    %c0_190 = arith.constant 0 : index
    %610 = vector.load %arg16[%c0_189, %c0_190] : memref<1x128xf32, #tpu.memory_space<vmem>>, vector<1x128xf32>
    %611 = vector.broadcast %610 : vector<1x128xf32> to vector<64x128xf32>
    %612 = arith.addf %609, %611 : vector<64x128xf32>
    %c0_191 = arith.constant 0 : index
    %c0_192 = arith.constant 0 : index
    %613 = vector.load %arg17[%c0_191, %c0_192] : memref<64x128xf32, #tpu.memory_space<vmem>>, vector<64x128xf32>
    tpu.vector_store %arg17[%c0_191, %c0_192], %612 {strides = array<i32>} : memref<64x128xf32, #tpu.memory_space<vmem>>, vector<64x128xf32>,
    %c0_i32_193 = arith.constant 0 : i32
    %614 = arith.cmpi eq, %arg0, %c0_i32_193 : i32
    %615 = arith.extui %614 : i1 to i32
    %c0_i32_194 = arith.constant 0 : i32
    %616 = arith.cmpi ne, %615, %c0_i32_194 : i32
    scf.if %616 {
      %c0_195 = arith.constant 0 : index
      %c0_196 = arith.constant 0 : index
      %c0_197 = arith.constant 0 : index
      %617 = vector.load %arg19[%c0_195, %c0_196, %c0_197] : memref<2x8x128xf32, #tpu.memory_space<vmem>>, vector<2x8x128xf32>
      %c0_198 = arith.constant 0 : index
      %c0_199 = arith.constant 0 : index
      %c0_200 = arith.constant 0 : index
      %618 = vector.load %arg18[%c0_198, %c0_199, %c0_200] : memref<2x8x128xf32, #tpu.memory_space<vmem>>, vector<2x8x128xf32>
      tpu.vector_store %arg18[%c0_198, %c0_199, %c0_200], %617 {strides = array<i32>} : memref<2x8x128xf32, #tpu.memory_space<vmem>>, vector<2x8x128xf32>,
    } else {
    }
    return
  }
  func.func @transform_0(%arg0: i32) -> (i32, i32) {
    %c0_i32 = arith.constant 0 : i32
    %c0_i32_0 = arith.constant 0 : i32
    return %arg0, %c0_i32 : i32, i32
  }
  func.func @transform_1(%arg0: i32) -> (i32, i32, i32) {
    %c0_i32 = arith.constant 0 : i32
    %c0_i32_0 = arith.constant 0 : i32
    %c0_i32_1 = arith.constant 0 : i32
    %c0_i32_2 = arith.constant 0 : i32
    return %c0_i32, %c0_i32_0, %c0_i32_1 : i32, i32, i32
  }
  func.func @transform_2(%arg0: i32) -> (i32, i32) {
    %c0_i32 = arith.constant 0 : i32
    %c0_i32_0 = arith.constant 0 : i32
    %c0_i32_1 = arith.constant 0 : i32
    return %c0_i32, %c0_i32_0 : i32, i32
  }
  func.func @transform_3(%arg0: i32) -> (i32, i32) {
    %c0_i32 = arith.constant 0 : i32
    %c0_i32_0 = arith.constant 0 : i32
    %c0_i32_1 = arith.constant 0 : i32
    return %c0_i32, %c0_i32_0 : i32, i32
  }
  func.func @transform_4(%arg0: i32) -> (i32, i32) {
    %c0_i32 = arith.constant 0 : i32
    %c0_i32_0 = arith.constant 0 : i32
    %c0_i32_1 = arith.constant 0 : i32
    return %c0_i32, %c0_i32_0 : i32, i32
  }
  func.func @transform_5(%arg0: i32) -> (i32, i32) {
    %c0_i32 = arith.constant 0 : i32
    %c0_i32_0 = arith.constant 0 : i32
    %c0_i32_1 = arith.constant 0 : i32
    return %c0_i32, %c0_i32_0 : i32, i32
  }
  func.func @transform_6(%arg0: i32) -> (i32, i32) {
    %c0_i32 = arith.constant 0 : i32
    %c0_i32_0 = arith.constant 0 : i32
    %c0_i32_1 = arith.constant 0 : i32
    return %c0_i32, %c0_i32_0 : i32, i32
  }
  func.func @transform_7(%arg0: i32) -> (i32, i32) {
    %c0_i32 = arith.constant 0 : i32
    %c0_i32_0 = arith.constant 0 : i32
    %c0_i32_1 = arith.constant 0 : i32
    return %c0_i32, %c0_i32_0 : i32, i32
  }
  func.func @transform_8(%arg0: i32) -> (i32, i32) {
    %c0_i32 = arith.constant 0 : i32
    %c0_i32_0 = arith.constant 0 : i32
    %c0_i32_1 = arith.constant 0 : i32
    return %c0_i32, %c0_i32_0 : i32, i32
  }
  func.func @transform_9(%arg0: i32) -> (i32, i32) {
    %c0_i32 = arith.constant 0 : i32
    %c0_i32_0 = arith.constant 0 : i32
    %c0_i32_1 = arith.constant 0 : i32
    return %c0_i32, %c0_i32_0 : i32, i32
  }
  func.func @transform_10(%arg0: i32) -> (i32, i32) {
    %c0_i32 = arith.constant 0 : i32
    %c0_i32_0 = arith.constant 0 : i32
    %c0_i32_1 = arith.constant 0 : i32
    return %c0_i32, %c0_i32_0 : i32, i32
  }
  func.func @transform_11(%arg0: i32) -> (i32, i32) {
    %c0_i32 = arith.constant 0 : i32
    %c0_i32_0 = arith.constant 0 : i32
    %c0_i32_1 = arith.constant 0 : i32
    return %c0_i32, %c0_i32_0 : i32, i32
  }
  func.func @transform_12(%arg0: i32) -> (i32, i32) {
    %c0_i32 = arith.constant 0 : i32
    %c0_i32_0 = arith.constant 0 : i32
    %c0_i32_1 = arith.constant 0 : i32
    return %c0_i32, %c0_i32_0 : i32, i32
  }
  func.func @transform_13(%arg0: i32) -> (i32, i32) {
    %c0_i32 = arith.constant 0 : i32
    %c0_i32_0 = arith.constant 0 : i32
    %c0_i32_1 = arith.constant 0 : i32
    return %c0_i32, %c0_i32_0 : i32, i32
  }
  func.func @transform_14(%arg0: i32) -> (i32, i32) {
    %c0_i32 = arith.constant 0 : i32
    %c0_i32_0 = arith.constant 0 : i32
    %c0_i32_1 = arith.constant 0 : i32
    return %c0_i32, %c0_i32_0 : i32, i32
  }
  func.func @transform_15(%arg0: i32) -> (i32, i32) {
    %c0_i32 = arith.constant 0 : i32
    %c0_i32_0 = arith.constant 0 : i32
    %c0_i32_1 = arith.constant 0 : i32
    return %c0_i32, %c0_i32_0 : i32, i32
  }
  func.func @transform_16(%arg0: i32) -> (i32, i32) {
    %c0_i32 = arith.constant 0 : i32
    %c0_i32_0 = arith.constant 0 : i32
    return %arg0, %c0_i32 : i32, i32
  }
  func.func @transform_17(%arg0: i32) -> (i32, i32, i32) {
    %c0_i32 = arith.constant 0 : i32
    %c0_i32_0 = arith.constant 0 : i32
    %c0_i32_1 = arith.constant 0 : i32
    %c0_i32_2 = arith.constant 0 : i32
    return %c0_i32, %c0_i32_0, %c0_i32_1 : i32, i32, i32
  }
}

</mosaic_0001>

<bundles_post_ra>
// kernel: rnn_regressor_forward.1
= control target key start
LH: loop header
LB: loop body
LE: loop exit
PB: predicated region body
PF: predicated region fallthrough
CT: control target
= control target key end

     0   :  { %v5894_v1 = vmov 0   ;;  %v5896_v34 = vmov 0.0   ;;  %vm4313_vm0 = vmmov 0   ;;  %v139_v56 = vlaneseq  ;;  %s5871_s2 = inlined_call_operand.vmem [shape: bf16[128,384], index: 2, kind: input, shape index: {}]   ;;  %s5872_s0 = inlined_call_operand.vmem [shape: bf16[64,128], index: 0, kind: input, shape index: {}]   ;;  %s5873_s3 = inlined_call_operand.vmem [shape: bf16[128,256], index: 3, kind: input, shape index: {}]   ;;  %s5874_s4 = inlined_call_operand.vmem [shape: bf16[128,128], index: 4, kind: input, shape index: {}]   ;;  %s5875_s1 = inlined_call_operand.vmem [shape: f32[2,8,128], index: 1, kind: input, shape index: {}]   ;;  %s5876_s5 = inlined_call_operand.vmem [shape: f32[1,384], index: 5, kind: input, shape index: {}]   ;;  %s5877_s6 = inlined_call_operand.vmem [shape: f32[1,128], index: 6, kind: input, shape index: {}]   ;;  %s5878_s7 = inlined_call_operand.vmem [shape: bf16[128,384], index: 7, kind: input, shape index: {}]   ;;  %s5879_s8 = inlined_call_operand.vmem [shape: bf16[128,256], index: 8, kind: input, shape index: {}]   ;;  %s5880_s9 = inlined_call_operand.vmem [shape: bf16[128,128], index: 9, kind: input, shape index: {}]   ;;  %s5881_s17 = inlined_call_operand.vmem [shape: f32[2,8,128], index: 17, kind: output, shape index: {1}]   ;;  %s5882_s10 = inlined_call_operand.vmem [shape: f32[1,384], index: 10, kind: input, shape index: {}]   ;;  %s5883_s11 = inlined_call_operand.vmem [shape: f32[1,128], index: 11, kind: input, shape index: {}]   ;;  %s5884_s12 = inlined_call_operand.vmem [shape: bf16[128,128], index: 12, kind: input, shape index: {}]   ;;  %s5885_s14 = inlined_call_operand.vmem [shape: bf16[128,128], index: 14, kind: input, shape index: {}]   ;;  %s5886_s13 = inlined_call_operand.vmem [shape: f32[1,128], index: 13, kind: input, shape index: {}]   ;;  %s5887_s15 = inlined_call_operand.vmem [shape: f32[1,128], index: 15, kind: input, shape index: {}]   ;;  %s5888_s16 = inlined_call_operand.vmem [shape: f32[64,128], index: 16, kind: output, shape index: {0}]  }
   0x1   :  { %5900 = sst [smem:[#allocation12_spill]] %s5871_s2  ;;  %338 = vmatprep.mubr.bf16.mxu0 %v5894_v1  ;;  %v4477_v24 = vld [vmem:[%s5873_s3 + $0x4] ss:$8 sps:$4 sm:$0xff]   ;;  %v4485_v26 = vld [vmem:[%s5873_s3] ss:$8 sps:$4 sm:$0xff]   ;;  %v4569_v42 = vld [vmem:[%s5874_s4 + $0x10] sm:$0xff]  }
   0x2   :  { %5901 = sst [smem:[#allocation13_spill]] %s5872_s0  ;;  %s5902_s26 = sld [smem:[#allocation12_spill]]  ;;  %v4491_v27 = vld [vmem:[%s5873_s3 + $0x14] ss:$8 sps:$4 sm:$0xff]   ;;  %v4500_v29 = vld [vmem:[%s5873_s3 + $0x10] ss:$8 sps:$4 sm:$0xff]  }
   0x3   :  { %s5903_s20 = sld [smem:[#allocation13_spill]]  ;;  %v4507_v30 = vld [vmem:[%s5873_s3 + $0x24] ss:$8 sps:$4 sm:$0xff]   ;;  %v4516_v32 = vld [vmem:[%s5873_s3 + $0x20] ss:$8 sps:$4 sm:$0xff]   ;;  %v4592_v46 = vld [vmem:[%s5874_s4 + $0x18] sm:$0xff]  }
   0x4   :  { %v4522_v33 = vld [vmem:[%s5873_s3 + $0x34] ss:$8 sps:$4 sm:$0xff]   ;;  %v4528_v35 = vld [vmem:[%s5874_s4] sm:$0xff]   ;;  %v4534_v36 = vld [vmem:[%s5873_s3 + $0x30] ss:$8 sps:$4 sm:$0xff]   ;;  %v4691_v57 = vshrl.u32 %v139_v56, 7 }
   0x5   :  { %v4544_v38 = vld [vmem:[%s5873_s3 + $0x44] ss:$8 sps:$4 sm:$0xff]   ;;  %v4557_v40 = vld [vmem:[%s5873_s3 + $0x40] ss:$8 sps:$4 sm:$0xff]   ;;  %v4563_v41 = vld [vmem:[%s5873_s3 + $0x54] ss:$8 sps:$4 sm:$0xff]  }
   0x6   :  { %v4550_v39 = vld [vmem:[%s5874_s4 + $0x8] sm:$0xff]   ;;  %v4579_v44 = vld [vmem:[%s5873_s3 + $0x50] ss:$8 sps:$4 sm:$0xff]   ;;  %v4607_v48 = vld [vmem:[%s5873_s3 + $0x74] ss:$8 sps:$4 sm:$0xff]   ;;  %5904 = vst [vmem:[#allocation5_spill] sm:$0xff] %v4691_v57 }
   0x7   :  { %v4586_v45 = vld [vmem:[%s5873_s3 + $0x64] ss:$8 sps:$4 sm:$0xff]   ;;  %v4601_v47 = vld [vmem:[%s5873_s3 + $0x60] ss:$8 sps:$4 sm:$0xff]   ;;  %v4620_v50 = vld [vmem:[%s5873_s3 + $0x70] ss:$8 sps:$4 sm:$0xff]  }
   0x8   :  { %v3957_v0 = vld [vmem:[%s5902_s26 + $0x4] ss:$12 sps:$4 sm:$0xff]   ;;  %v3959_v2 = vld [vmem:[%s5902_s26] ss:$12 sps:$4 sm:$0xff]   ;;  %v3960_v3 = vld [vmem:[%s5902_s26 + $0x1c] ss:$12 sps:$4 sm:$0xff]  }
   0x9   :  { %306 = vmatprep.subr.bf16.mxu0 %v3957_v0  ;;  %v3962_v4 = vld [vmem:[%s5902_s26 + $0x18] ss:$12 sps:$4 sm:$0xff]   ;;  %v3963_v5 = vld [vmem:[%s5902_s26 + $0x34] ss:$12 sps:$4 sm:$0xff]   ;;  %v3965_v6 = vld [vmem:[%s5902_s26 + $0x30] ss:$12 sps:$4 sm:$0xff]  }
   0xa   :  { %307 = vmatpush1.bf16.msra.mxu0 %v3959_v2  ;;  %v3966_v7 = vld [vmem:[%s5902_s26 + $0x4c] ss:$12 sps:$4 sm:$0xff]   ;;  %v3977_v8 = vld [vmem:[%s5902_s26 + $0x8] ss:$12 sps:$4 sm:$0xff]   ;;  %v3969_v10 = vld [vmem:[%s5902_s26 + $0x64] ss:$12 sps:$4 sm:$0xff]  }
   0xb   :  { %308 = vmatprep.subr.bf16.mxu0 %v3960_v3  ;;  %v3968_v9 = vld [vmem:[%s5902_s26 + $0x48] ss:$12 sps:$4 sm:$0xff]   ;;  %3538 = vmatprep.subr.bf16.mxu1 %v3977_v8  ;;  %v3981_v11 = vld [vmem:[%s5902_s26 + $0x20] ss:$12 sps:$4 sm:$0xff]   ;;  %v3984_v13 = vld [vmem:[%s5902_s26 + $0x38] ss:$12 sps:$4 sm:$0xff]  }
   0xc   :  { %3539 = vmatpush3.bf16.msra.mxu1 %v3977_v8  ;;  %v3983_v12 = vld [vmem:[%s5903_s20] sm:$0xff]   ;;  %v3972_v15 = vld [vmem:[%s5902_s26 + $0x7c] ss:$12 sps:$4 sm:$0xff]   ;;  %v3979_v21 = vld [vmem:[%s5902_s26 + $0xac] ss:$12 sps:$4 sm:$0xff]   ;;  %v5893_v58 = vsub.s32 0, %v4691_v57 }
   0xd   :  { %3540 = vmatprep.subr.bf16.mxu1 %v3981_v11  ;;  %v3971_v14 = vld [vmem:[%s5902_s26 + $0x60] ss:$12 sps:$4 sm:$0xff]   ;;  %3554 = vmatprep.mubr.bf16.mxu1 %v3983_v12  ;;  %v3988_v16 = vld [vmem:[%s5902_s26 + $0x50] ss:$12 sps:$4 sm:$0xff]   ;;  %v3974_v17 = vld [vmem:[%s5902_s26 + $0x78] ss:$12 sps:$4 sm:$0xff]  }
   0xe   :  { %309 = vmatpush1.bf16.msra.mxu0 %v3962_v4  ;;  %v3975_v18 = vld [vmem:[%s5902_s26 + $0x94] ss:$12 sps:$4 sm:$0xff]   ;;  %v3978_v20 = vld [vmem:[%s5902_s26 + $0x90] ss:$12 sps:$4 sm:$0xff]   ;;  %v4002_v25 = vld [vmem:[%s5902_s26 + $0x98] ss:$12 sps:$4 sm:$0xff]  }
   0xf   :  { %310 = vmatprep.subr.bf16.mxu0 %v3963_v5  ;;  %v3993_v19 = vld [vmem:[%s5902_s26 + $0x68] ss:$12 sps:$4 sm:$0xff]   ;;  %v3997_v22 = vld [vmem:[%s5902_s26 + $0x80] ss:$12 sps:$4 sm:$0xff]   ;;  %v4006_v28 = vld [vmem:[%s5902_s26 + $0xb0] ss:$12 sps:$4 sm:$0xff]  }
  0x10   :  { %3541 = vmatpush3.bf16.msra.mxu1 %v3981_v11  ;;  %v3982_v23 = vld [vmem:[%s5902_s26 + $0xa8] ss:$12 sps:$4 sm:$0xff]   ;;  %v4010_v43 = vld [vmem:[%s5903_s20 + $0x18] sm:$0xff]   ;;  %v4613_v49 = vld [vmem:[%s5874_s4 + $0x20] sm:$0xff]   ;;  %v5892_v60 = vsub.s32 1, %v4691_v57  ;;  %v5891_v5 = vsub.s32 2, %v4691_v57 }
  0x11   :  { %3542 = vmatprep.subr.bf16.mxu1 %v3984_v13  ;;  %v3992_v31 = vld [vmem:[%s5903_s20 + $0x8] sm:$0xff]   ;;  %v4001_v37 = vld [vmem:[%s5903_s20 + $0x10] sm:$0xff]   ;;  %v4626_v51 = vld [vmem:[%s5875_s1] sm:$0xff] }
  0x12   :  { %311 = vmatpush1.bf16.msra.mxu0 %v3965_v6  ;;  %v4633_v52 = vld [vmem:[%s5874_s4 + $0x28] sm:$0xff]   ;;  %v481_v53 = vpack.c.bf16 %v4626_v51, %v4626_v51  ;;  %v4644_v54 = vld [vmem:[%s5874_s4 + $0x30] sm:$0xff]   ;;  %v4654_v55 = vld [vmem:[%s5874_s4 + $0x38] sm:$0xff]  }
  0x13   :  { %312 = vmatprep.subr.bf16.mxu0 %v3966_v7  ;;  %v136_v59 = vld [vmem:[%s5876_s5] sm:$0x7] }
  0x14   :  { %3543 = vmatpush3.bf16.msra.mxu1 %v3984_v13  ;;  %v142_v62 = vrot.slane %v136_v59, %v5893_v58  ;;  %v146_v0 = vrot.slane %v136_v59, %v5892_v60  ;;  %v4709_v7 = vrot.slane %v136_v59, %v5891_v5 }
  0x15   :  { %3544 = vmatprep.subr.bf16.mxu1 %v3988_v16 }
  0x16   :  { %313 = vmatpush1.bf16.msra.mxu0 %v3968_v9 }
  0x17   :  { %314 = vmatprep.subr.bf16.mxu0 %v3969_v10 }
  0x18   :  { %3545 = vmatpush3.bf16.msra.mxu1 %v3988_v16 }
  0x19   :  { %3546 = vmatprep.subr.bf16.mxu1 %v3993_v19 }
  0x1a   :  { %315 = vmatpush1.bf16.msra.mxu0 %v3971_v14 }
  0x1b   :  { %316 = vmatprep.subr.bf16.mxu0 %v3972_v15 }
  0x1c   :  { %3547 = vmatpush3.bf16.msra.mxu1 %v3993_v19 }
  0x1d   :  { %3548 = vmatprep.subr.bf16.mxu1 %v3997_v22 }
  0x1e   :  { %317 = vmatpush1.bf16.msra.mxu0 %v3974_v17 }
  0x1f   :  { %318 = vmatprep.subr.bf16.mxu0 %v3975_v18 }
  0x20   :  { %3549 = vmatpush3.bf16.msra.mxu1 %v3997_v22 }
  0x21   :  { %3550 = vmatprep.subr.bf16.mxu1 %v4002_v25 }
  0x22   :  { %319 = vmatpush1.bf16.msra.mxu0 %v3978_v20 }
  0x23   :  { %320 = vmatprep.subr.bf16.mxu0 %v3979_v21 }
  0x24   :  { %3551 = vmatpush3.bf16.msra.mxu1 %v4002_v25 }
  0x25   :  { %3552 = vmatprep.subr.bf16.mxu1 %v4006_v28 }
  0x26   :  { %321 = vmatpush1.bf16.msra.mxu0 %v3982_v23 }
  0x27   :  { %562 = vmatprep.subr.bf16.mxu0 %v4477_v24 }
  0x28   :  { %3553 = vmatpush3.bf16.msra.mxu1 %v4006_v28 }
  0x29   :  { %339 = vmatmul.mubr.bf16.vlgmr.msra.gmra.mrb[0].mxu0 %v3983_v12  ;;  %3562 = vmatprep.subr.bf16.mxu1 %v5896_v34 }
  0x2a   :  { %563 = vmatpush1.bf16.msra.mxu0 %v4485_v26  ;;  %348 = vmatprep.mubr.bf16.mxu0 %v5894_v1 }
  0x2b   :  { %564 = vmatprep.subr.bf16.mxu0 %v4491_v27  ;;  %3555 = vmatmul.mubr.bf16.vlgmr.msra.gmra.mrb[0].mxu1 %v3992_v31 }
  0x2c   :  { %3563 = vmatpush3.bf16.msra.mxu1 %v4528_v35  ;;  %3558 = vmatprep.mubr.bf16.mxu1 %v4001_v37 }
  0x2d   :  { %3564 = vmatprep.subr.bf16.mxu1 %v5896_v34 }
  0x2e   :  { %565 = vmatpush1.bf16.msra.mxu0 %v4500_v29 }
  0x2f   :  { %566 = vmatprep.subr.bf16.mxu0 %v4507_v30 }
  0x30   :  { %3565 = vmatpush3.bf16.msra.mxu1 %v4550_v39 }
  0x31   :  { %349 = vmatmul.mubr.bf16.gmra.mrb[4].mxu0 %v3992_v31  ;;  %3566 = vmatprep.subr.bf16.mxu1 %v5896_v34 }
  0x32   :  { %567 = vmatpush1.bf16.msra.mxu0 %v4516_v32  ;;  %358 = vmatprep.mubr.bf16.mxu0 %v5894_v1 }
  0x33   :  { %568 = vmatprep.subr.bf16.mxu0 %v4522_v33  ;;  %3559 = vmatmul.mubr.bf16.gmra.mrb[4].mxu1 %v4010_v43 }
  0x34   :  { %3567 = vmatpush3.bf16.msra.mxu1 %v4569_v42  ;;  %3578 = vmatprep.mubr.msk.bf16.mxu1 %vm4313_vm0, %v5896_v34 }
  0x35   :  { %3568 = vmatprep.subr.bf16.mxu1 %v5896_v34 }
  0x36   :  { %569 = vmatpush1.bf16.msra.mxu0 %v4534_v36 }
  0x37   :  { %570 = vmatprep.subr.bf16.mxu0 %v4544_v38 }
  0x38   :  { %3569 = vmatpush3.bf16.msra.mxu1 %v4592_v46 }
  0x39   :  { %359 = vmatmul.mubr.bf16.gmra.mrb[8].mxu0 %v4001_v37  ;;  %3570 = vmatprep.subr.bf16.mxu1 %v5896_v34 }
  0x3a   :  { %571 = vmatpush1.bf16.msra.mxu0 %v4557_v40  ;;  %368 = vmatprep.mubr.bf16.mxu0 %v5894_v1 }
  0x3b   :  { %572 = vmatprep.subr.bf16.mxu0 %v4563_v41 }
  0x3c   :  { %3571 = vmatpush3.bf16.msra.mxu1 %v4613_v49 }
  0x3d   :  { %3572 = vmatprep.subr.bf16.mxu1 %v5896_v34 }
  0x3e   :  { %573 = vmatpush1.bf16.msra.mxu0 %v4579_v44 }
  0x3f   :  { %574 = vmatprep.subr.bf16.mxu0 %v4586_v45 }
  0x40   :  { %3573 = vmatpush3.bf16.msra.mxu1 %v4633_v52 }
  0x41   :  { %369 = vmatmul.mubr.bf16.gmra.mrb[12].mxu0 %v4010_v43  ;;  %3574 = vmatprep.subr.bf16.mxu1 %v5896_v34 }
  0x42   :  { %575 = vmatpush1.bf16.msra.mxu0 %v4601_v47  ;;  %594 = vmatprep.mubr.bf16.mxu0 %v5894_v1 }
  0x43   :  { %576 = vmatprep.subr.bf16.mxu0 %v4607_v48 }
  0x44   :  { %3575 = vmatpush3.bf16.msra.mxu1 %v4644_v54 }
  0x45   :  { %3576 = vmatprep.subr.bf16.mxu1 %v5896_v34 }
  0x46   :  { %577 = vmatpush1.bf16.msra.mxu0 %v4620_v50 }
  0x47   :  { %720 = vmatprep.subr.bf16.mxu0 %v4477_v24 }
  0x48   :  { %3577 = vmatpush3.bf16.msra.mxu1 %v4654_v55 }
  0x49   :  { %595 = vmatmul.mubr.bf16.vlgmr.msra.gmra.mrb[16].mxu0 %v481_v53  ;;  %3582 = vmatprep.subr.bf16.mxu1 %v5896_v34 }
  0x4a   :  { %721 = vmatpush1.bf16.msra.mxu0 %v4485_v26  ;;  %752 = vmatprep.mubr.bf16.mxu0 %v5894_v1 }
  0x4b   :  { %722 = vmatprep.subr.bf16.mxu0 %v4491_v27  ;;  %3579 = vmatmul.mubr.bf16.vlgmr.msra.gmra.mrb[8].mxu1 %v481_v53 }
  0x4c   :  { %3583 = vmatpush3.bf16.msra.mxu1 %v4528_v35  ;;  %3598 = vmatprep.mubr.msk.bf16.mxu1 %vm4313_vm0, %v5896_v34 }
  0x4d   :  { %3584 = vmatprep.subr.bf16.mxu1 %v5896_v34 }
  0x4e   :  { %723 = vmatpush1.bf16.msra.mxu0 %v4500_v29 }
  0x4f   :  { %724 = vmatprep.subr.bf16.mxu0 %v4507_v30 }
  0x50   :  { %3585 = vmatpush3.bf16.msra.mxu1 %v4550_v39 }
  0x51   :  { %3586 = vmatprep.subr.bf16.mxu1 %v5896_v34 }
  0x52   :  { %725 = vmatpush1.bf16.msra.mxu0 %v4516_v32 }
  0x53   :  { %726 = vmatprep.subr.bf16.mxu0 %v4522_v33 }
  0x54   :  { %3587 = vmatpush3.bf16.msra.mxu1 %v4569_v42 }
  0x55   :  { %3588 = vmatprep.subr.bf16.mxu1 %v5896_v34 }
  0x56   :  { %727 = vmatpush1.bf16.msra.mxu0 %v4534_v36 }
  0x57   :  { %728 = vmatprep.subr.bf16.mxu0 %v4544_v38 }
  0x58   :  { %3589 = vmatpush3.bf16.msra.mxu1 %v4592_v46 }
  0x59   :  { %3590 = vmatprep.subr.bf16.mxu1 %v5896_v34 }
  0x5a   :  { %729 = vmatpush1.bf16.msra.mxu0 %v4557_v40 }
  0x5b   :  { %730 = vmatprep.subr.bf16.mxu0 %v4563_v41 }
  0x5c   :  { %3591 = vmatpush3.bf16.msra.mxu1 %v4613_v49 }
  0x5d   :  { %3592 = vmatprep.subr.bf16.mxu1 %v5896_v34 }
  0x5e   :  { %731 = vmatpush1.bf16.msra.mxu0 %v4579_v44 }
  0x5f   :  { %732 = vmatprep.subr.bf16.mxu0 %v4586_v45 }
  0x60   :  { %3593 = vmatpush3.bf16.msra.mxu1 %v4633_v52 }
  0x61   :  { %3594 = vmatprep.subr.bf16.mxu1 %v5896_v34 }
  0x62   :  { %733 = vmatpush1.bf16.msra.mxu0 %v4601_v47 }
  0x63   :  { %734 = vmatprep.subr.bf16.mxu0 %v4607_v48 }
  0x64   :  { %3595 = vmatpush3.bf16.msra.mxu1 %v4644_v54 }
  0x65   :  { %3596 = vmatprep.subr.bf16.mxu1 %v5896_v34 }
  0x66   :  { %735 = vmatpush1.bf16.msra.mxu0 %v4620_v50 }
  0x67   :  { %831 = vmatprep.subr.bf16.mxu0 %v4477_v24 }
  0x68   :  { %3597 = vmatpush3.bf16.msra.mxu1 %v4654_v55 }
  0x69   :  { %3602 = vmatprep.subr.bf16.mxu1 %v5896_v34 }
  0xfc   :  { %v340_v61 = vpop.f32.mrb[0].mxu0 }
  0xfd   :  { %v342_v63 = vpop.f32.mrb[1].mxu0  ;;  %v341_v5 = vadd.f32 %v340_v61, %v142_v62  ;;  %v4759_v61 = vld [vmem:[%s5877_s6] ss:$0 sm:$0xff] }
  0xfe   :  { %v344_v2 = vpop.f32.mrb[2].mxu0  ;;  %v3556_v13 = vpop.f32.mrb[0].mxu1  ;;  %v343_v60 = vadd.f32 %v342_v63, %v146_v0 }
  0xff   :  { %v4702_v3 = vadd.f32 %v344_v2, %v142_v62  ;;  %v346_v4 = vpop.f32.mrb[3].mxu0  ;;  %v4718_v16 = vadd.f32 %v3556_v13, %v4709_v7  ;;  %v413_v17 = vpop.f32.mrb[1].mxu1 }
 0x100   :  { %v4705_v6 = vadd.f32 %v346_v4, %v146_v0  ;;  %v3557_v19 = vpop.f32.mrb[2].mxu1 }
 0x101   :  { %v4723_v20 = vadd.f32 %v3557_v19, %v4709_v7  ;;  %v416_v21 = vpop.f32.mrb[3].mxu1 }
 0x102   :  { %v4726_v22 = vadd.f32 %v416_v21, %v4709_v7 }
 0x104   :  { %v350_v8 = vpop.f32.mrb[4].mxu0 }
 0x105   :  { %v4711_v9 = vadd.f32 %v350_v8, %v142_v62  ;;  %v352_v10 = vpop.f32.mrb[5].mxu0 }
 0x106   :  { %v4713_v11 = vadd.f32 %v352_v10, %v146_v0  ;;  %v354_v12 = vpop.f32.mrb[6].mxu0  ;;  %v3560_v43 = vpop.f32.mrb[4].mxu1 }
 0x107   :  { %v4715_v14 = vadd.f32 %v354_v12, %v142_v62  ;;  %v356_v15 = vpop.f32.mrb[7].mxu0  ;;  %v4735_v59 = vadd.f32 %v3560_v43, %v4709_v7  ;;  %v429_v2 = vpop.f32.mrb[5].mxu1 }
 0x108   :  { %v4720_v18 = vadd.f32 %v356_v15, %v146_v0  ;;  %v4740_v8 = vadd.f32 %v429_v2, %v4709_v7  ;;  %v3561_v10 = vpop.f32.mrb[6].mxu1 }
 0x109   :  { %5905 = vst [vmem:[#allocation6_spill] sm:$0xff] %v4735_v59  ;;  %v4743_v12 = vadd.f32 %v3561_v10, %v4709_v7  ;;  %v432_v13 = vpop.f32.mrb[7].mxu1 }
 0x10a   :  { %v4746_v15 = vadd.f32 %v432_v13, %v4709_v7 }
 0x10b   :  { %5906 = vst [vmem:[#allocation7_spill] sm:$0xff] %v4743_v12 }
 0x10c   :  { %v360_v23 = vpop.f32.mrb[8].mxu0 }
 0x10d   :  { %v4728_v25 = vadd.f32 %v360_v23, %v142_v62  ;;  %v362_v28 = vpop.f32.mrb[9].mxu0 }
 0x10e   :  { %v4730_v31 = vadd.f32 %v362_v28, %v146_v0  ;;  %v364_v37 = vpop.f32.mrb[10].mxu0 }
 0x10f   :  { %v4732_v53 = vadd.f32 %v364_v37, %v142_v62  ;;  %v366_v56 = vpop.f32.mrb[11].mxu0 }
 0x110   :  { %v4737_v4 = vadd.f32 %v366_v56, %v146_v0 }
 0x114   :  { %v370_v19 = vpop.f32.mrb[12].mxu0 }
 0x115   :  { %v4748_v21 = vadd.f32 %v370_v19, %v142_v62  ;;  %v372_v23 = vpop.f32.mrb[13].mxu0 }
 0x116   :  { %v4750_v28 = vadd.f32 %v372_v23, %v146_v0  ;;  %v374_v37 = vpop.f32.mrb[14].mxu0 }
 0x117   :  { %5907 = vst [vmem:[#allocation8_spill] sm:$0xff] %v4748_v21  ;;  %v4752_v43 = vadd.f32 %v374_v37, %v142_v62  ;;  %v376_v56 = vpop.f32.mrb[15].mxu0 }
 0x118   :  { %5908 = vst [vmem:[#allocation9_spill] sm:$0xff] %v4750_v28  ;;  %v4754_v2 = vadd.f32 %v376_v56, %v146_v0 }
 0x119   :  { %5909 = vst [vmem:[#allocation10_spill] sm:$0xff] %v4752_v43 }
 0x11c   :  { %v596_v10 = vpop.f32.mrb[16].mxu0 }
 0x11d   :  { %v603_v58 = vadd.f32 %v596_v10, %v341_v5  ;;  %v598_v1 = vpop.f32.mrb[17].mxu0 }
 0x11e   :  { %v610_v34 = vadd.f32 %v598_v1, %v343_v60  ;;  %v600_v13 = vpop.f32.mrb[18].mxu0  ;;  %v699_v59 = vpop.f32.mrb[8].mxu1 }
 0x11f   :  { %v3239_v57 = vmul.f32 -1.442695, %v603_v58  ;;  %v601_v12 = vpop.f32.mrb[19].mxu0  ;;  %v3580_v23 = vpop.f32.mrb[9].mxu1  ;;  %v700_v58 = vadd.f32 %v4759_v61, %v699_v59 }
 0x120   :  { %v3240_v19 = vmul.f32 -1.442695, %v610_v34  ;;  %v702_v28 = vpop.f32.mrb[10].mxu1  ;;  %v414_v34 = vadd.f32 %v413_v17, %v4709_v7  ;;  %v5910_v7 = vmov 0.0   ;;  %v5911_v17 = vmov 0  }
 0x121   :  { %4105 = vpow2.f32 %v3239_v57  ;;  %v3581_v37 = vpop.f32.mrb[11].mxu1 }
 0x122   :  { %4107 = vpow2.f32 %v3240_v19 }
 0x12b   :  { %v4106_v43 = vpop.eup %4105 }
 0x12c   :  { %v607_v21 = vadd.f32 1.0, %v4106_v43  ;;  %v4108_v56 = vpop.eup %4107 }
 0x12d   :  { %v614_v1 = vadd.f32 1.0, %v4108_v56 }
 0x12e   :  { %4109 = vrcp.f32 %v607_v21 }
 0x12f   :  { %4111 = vrcp.f32 %v614_v1 }
 0x138   :  { %v4110_v60 = vpop.eup %4109 }
 0x139   :  { %v705_v57 = vmul.f32 %v4110_v60, %v700_v58  ;;  %v4112_v63 = vpop.eup %4111 }
 0x13a   :  { %v708_v0 = vsub.f32 1.0, %v4112_v63  ;;  %v710_v21 = vmul.f32 %v4112_v63, %v4626_v51 }
 0x13b   :  { %v706_v62 = vadd.f32 %v705_v57, %v414_v34 }
 0x13d   :  { %4113 = vtanh.f32 %v706_v62 }
 0x147   :  { %v4114_v5 = vpop.eup %4113 }
 0x148   :  { %v709_v12 = vmul.f32 %v4114_v5, %v708_v0 }
 0x14a   :  { %v4764_v28 = vadd.f32 %v710_v21, %v709_v12 }
 0x14c   :  { %v719_v43 = vpack.c.bf16 %v4764_v28, %v4764_v28 }
 0x14e   :  { %753 = vmatmul.mubr.bf16.vlgmr.msra.gmra.mrb[20].mxu0 %v719_v43  ;;  %3599 = vmatmul.mubr.bf16.vlgmr.msra.gmra.mrb[12].mxu1 %v719_v43 }
 0x14f   :  { %832 = vmatpush1.bf16.msra.mxu0 %v4485_v26  ;;  %3603 = vmatpush3.bf16.msra.mxu1 %v4528_v35 }
 0x150   :  { %833 = vmatprep.subr.bf16.mxu0 %v4491_v27  ;;  %3604 = vmatprep.subr.bf16.mxu1 %v5910_v7 }
 0x151   :  { %863 = vmatprep.mubr.bf16.mxu0 %v5911_v17  ;;  %3618 = vmatprep.mubr.msk.bf16.mxu1 %vm4313_vm0, %v5910_v7 }
 0x153   :  { %834 = vmatpush1.bf16.msra.mxu0 %v4500_v29  ;;  %3605 = vmatpush3.bf16.msra.mxu1 %v4550_v39 }
 0x154   :  { %835 = vmatprep.subr.bf16.mxu0 %v4507_v30  ;;  %3606 = vmatprep.subr.bf16.mxu1 %v5910_v7 }
 0x157   :  { %836 = vmatpush1.bf16.msra.mxu0 %v4516_v32  ;;  %3607 = vmatpush3.bf16.msra.mxu1 %v4569_v42 }
 0x158   :  { %837 = vmatprep.subr.bf16.mxu0 %v4522_v33  ;;  %3608 = vmatprep.subr.bf16.mxu1 %v5910_v7 }
 0x15b   :  { %838 = vmatpush1.bf16.msra.mxu0 %v4534_v36  ;;  %3609 = vmatpush3.bf16.msra.mxu1 %v4592_v46 }
 0x15c   :  { %839 = vmatprep.subr.bf16.mxu0 %v4544_v38  ;;  %3610 = vmatprep.subr.bf16.mxu1 %v5910_v7 }
 0x15f   :  { %840 = vmatpush1.bf16.msra.mxu0 %v4557_v40  ;;  %3611 = vmatpush3.bf16.msra.mxu1 %v4613_v49 }
 0x160   :  { %841 = vmatprep.subr.bf16.mxu0 %v4563_v41  ;;  %3612 = vmatprep.subr.bf16.mxu1 %v5910_v7 }
 0x163   :  { %842 = vmatpush1.bf16.msra.mxu0 %v4579_v44  ;;  %3613 = vmatpush3.bf16.msra.mxu1 %v4633_v52 }
 0x164   :  { %843 = vmatprep.subr.bf16.mxu0 %v4586_v45  ;;  %3614 = vmatprep.subr.bf16.mxu1 %v5910_v7 }
 0x167   :  { %844 = vmatpush1.bf16.msra.mxu0 %v4601_v47  ;;  %3615 = vmatpush3.bf16.msra.mxu1 %v4644_v54 }
 0x168   :  { %845 = vmatprep.subr.bf16.mxu0 %v4607_v48  ;;  %3616 = vmatprep.subr.bf16.mxu1 %v5910_v7 }
 0x16b   :  { %846 = vmatpush1.bf16.msra.mxu0 %v4620_v50  ;;  %3617 = vmatpush3.bf16.msra.mxu1 %v4654_v55 }
 0x16c   :  { %942 = vmatprep.subr.bf16.mxu0 %v4477_v24  ;;  %3622 = vmatprep.subr.bf16.mxu1 %v5910_v7 }
 0x221   :  { %v754_v51 = vpop.f32.mrb[20].mxu0  ;;  %v809_v59 = vpop.f32.mrb[12].mxu1 }
 0x222   :  { %v761_v10 = vadd.f32 %v754_v51, %v4702_v3  ;;  %v756_v13 = vpop.f32.mrb[21].mxu0  ;;  %v3600_v19 = vpop.f32.mrb[13].mxu1  ;;  %v810_v5 = vadd.f32 %v4759_v61, %v809_v59 }
 0x223   :  { %v768_v23 = vadd.f32 %v756_v13, %v4705_v6  ;;  %v758_v37 = vpop.f32.mrb[22].mxu0  ;;  %v812_v56 = vpop.f32.mrb[14].mxu1 }
 0x224   :  { %v3249_v1 = vmul.f32 -1.442695, %v761_v10  ;;  %v759_v58 = vpop.f32.mrb[23].mxu0  ;;  %v3601_v60 = vpop.f32.mrb[15].mxu1 }
 0x225   :  { %v3250_v34 = vmul.f32 -1.442695, %v768_v23 }
 0x226   :  { %4115 = vpow2.f32 %v3249_v1 }
 0x227   :  { %4117 = vpow2.f32 %v3250_v34 }
 0x230   :  { %v4116_v57 = vpop.eup %4115 }
 0x231   :  { %v765_v62 = vadd.f32 1.0, %v4116_v57  ;;  %v4118_v63 = vpop.eup %4117 }
 0x232   :  { %v772_v0 = vadd.f32 1.0, %v4118_v63 }
 0x233   :  { %4119 = vrcp.f32 %v765_v62 }
 0x234   :  { %4121 = vrcp.f32 %v772_v0 }
 0x23d   :  { %v4120_v3 = vpop.eup %4119 }
 0x23e   :  { %v815_v12 = vmul.f32 %v4120_v3, %v810_v5  ;;  %v4122_v21 = vpop.eup %4121 }
 0x23f   :  { %v818_v43 = vsub.f32 1.0, %v4122_v21  ;;  %v820_v13 = vmul.f32 %v4122_v21, %v4764_v28 }
 0x240   :  { %v816_v6 = vadd.f32 %v815_v12, %v4726_v22 }
 0x242   :  { %4123 = vtanh.f32 %v816_v6 }
 0x24c   :  { %v4124_v51 = vpop.eup %4123 }
 0x24d   :  { %v819_v10 = vmul.f32 %v4124_v51, %v818_v43 }
 0x24f   :  { %v4808_v19 = vadd.f32 %v820_v13, %v819_v10 }
 0x251   :  { %v830_v23 = vpack.c.bf16 %v4808_v19, %v4808_v19 }
 0x253   :  { %864 = vmatmul.mubr.bf16.vlgmr.msra.gmra.mrb[24].mxu0 %v830_v23  ;;  %3619 = vmatmul.mubr.bf16.vlgmr.msra.gmra.mrb[16].mxu1 %v830_v23 }
 0x254   :  { %943 = vmatpush1.bf16.msra.mxu0 %v4485_v26  ;;  %3623 = vmatpush3.bf16.msra.mxu1 %v4528_v35 }
 0x255   :  { %944 = vmatprep.subr.bf16.mxu0 %v4491_v27  ;;  %3624 = vmatprep.subr.bf16.mxu1 %v5910_v7 }
 0x256   :  { %974 = vmatprep.mubr.bf16.mxu0 %v5911_v17  ;;  %3638 = vmatprep.mubr.msk.bf16.mxu1 %vm4313_vm0, %v5910_v7 }
 0x258   :  { %945 = vmatpush1.bf16.msra.mxu0 %v4500_v29  ;;  %3625 = vmatpush3.bf16.msra.mxu1 %v4550_v39 }
 0x259   :  { %946 = vmatprep.subr.bf16.mxu0 %v4507_v30  ;;  %3626 = vmatprep.subr.bf16.mxu1 %v5910_v7 }
 0x25c   :  { %947 = vmatpush1.bf16.msra.mxu0 %v4516_v32  ;;  %3627 = vmatpush3.bf16.msra.mxu1 %v4569_v42 }
 0x25d   :  { %948 = vmatprep.subr.bf16.mxu0 %v4522_v33  ;;  %3628 = vmatprep.subr.bf16.mxu1 %v5910_v7 }
 0x260   :  { %949 = vmatpush1.bf16.msra.mxu0 %v4534_v36  ;;  %3629 = vmatpush3.bf16.msra.mxu1 %v4592_v46 }
 0x261   :  { %950 = vmatprep.subr.bf16.mxu0 %v4544_v38  ;;  %3630 = vmatprep.subr.bf16.mxu1 %v5910_v7 }
 0x264   :  { %951 = vmatpush1.bf16.msra.mxu0 %v4557_v40  ;;  %3631 = vmatpush3.bf16.msra.mxu1 %v4613_v49 }
 0x265   :  { %952 = vmatprep.subr.bf16.mxu0 %v4563_v41  ;;  %3632 = vmatprep.subr.bf16.mxu1 %v5910_v7 }
 0x268   :  { %953 = vmatpush1.bf16.msra.mxu0 %v4579_v44  ;;  %3633 = vmatpush3.bf16.msra.mxu1 %v4633_v52 }
 0x269   :  { %954 = vmatprep.subr.bf16.mxu0 %v4586_v45  ;;  %3634 = vmatprep.subr.bf16.mxu1 %v5910_v7 }
 0x26c   :  { %955 = vmatpush1.bf16.msra.mxu0 %v4601_v47  ;;  %3635 = vmatpush3.bf16.msra.mxu1 %v4644_v54 }
 0x26d   :  { %956 = vmatprep.subr.bf16.mxu0 %v4607_v48  ;;  %3636 = vmatprep.subr.bf16.mxu1 %v5910_v7 }
 0x270   :  { %957 = vmatpush1.bf16.msra.mxu0 %v4620_v50  ;;  %3637 = vmatpush3.bf16.msra.mxu1 %v4654_v55 }
 0x271   :  { %1053 = vmatprep.subr.bf16.mxu0 %v4477_v24  ;;  %3642 = vmatprep.subr.bf16.mxu1 %v5910_v7 }
 0x326   :  { %v865_v22 = vpop.f32.mrb[24].mxu0  ;;  %v920_v59 = vpop.f32.mrb[16].mxu1 }
 0x327   :  { %v872_v37 = vadd.f32 %v865_v22, %v4711_v9  ;;  %v867_v56 = vpop.f32.mrb[25].mxu0  ;;  %v3620_v1 = vpop.f32.mrb[17].mxu1  ;;  %v921_v21 = vadd.f32 %v4759_v61, %v920_v59 }
 0x328   :  { %v879_v58 = vadd.f32 %v867_v56, %v4713_v11  ;;  %v869_v60 = vpop.f32.mrb[26].mxu0  ;;  %v923_v34 = vpop.f32.mrb[18].mxu1 }
 0x329   :  { %v3251_v57 = vmul.f32 -1.442695, %v872_v37  ;;  %v870_v62 = vpop.f32.mrb[27].mxu0  ;;  %v3621_v63 = vpop.f32.mrb[19].mxu1 }
 0x32a   :  { %v3252_v0 = vmul.f32 -1.442695, %v879_v58 }
 0x32b   :  { %4125 = vpow2.f32 %v3251_v57 }
 0x32c   :  { %4127 = vpow2.f32 %v3252_v0 }
 0x335   :  { %v4126_v5 = vpop.eup %4125 }
 0x336   :  { %v876_v3 = vadd.f32 1.0, %v4126_v5  ;;  %v4128_v12 = vpop.eup %4127 }
 0x337   :  { %v883_v6 = vadd.f32 1.0, %v4128_v12 }
 0x338   :  { %4129 = vrcp.f32 %v876_v3 }
 0x339   :  { %4131 = vrcp.f32 %v883_v6 }
 0x342   :  { %v4130_v9 = vpop.eup %4129 }
 0x343   :  { %v926_v43 = vmul.f32 %v4130_v9, %v921_v21  ;;  %v4132_v51 = vpop.eup %4131 }
 0x344   :  { %v929_v10 = vsub.f32 1.0, %v4132_v51  ;;  %v931_v22 = vmul.f32 %v4132_v51, %v4808_v19 }
 0x345   :  { %v927_v11 = vadd.f32 %v926_v43, %v4718_v16 }
 0x347   :  { %4133 = vtanh.f32 %v927_v11 }
 0x351   :  { %v4134_v13 = vpop.eup %4133 }
 0x352   :  { %v930_v23 = vmul.f32 %v4134_v13, %v929_v10 }
 0x354   :  { %v4852_v37 = vadd.f32 %v931_v22, %v930_v23 }
 0x356   :  { %v941_v56 = vpack.c.bf16 %v4852_v37, %v4852_v37 }
 0x358   :  { %975 = vmatmul.mubr.bf16.vlgmr.msra.gmra.mrb[28].mxu0 %v941_v56  ;;  %3639 = vmatmul.mubr.bf16.vlgmr.msra.gmra.mrb[20].mxu1 %v941_v56 }
 0x359   :  { %1054 = vmatpush1.bf16.msra.mxu0 %v4485_v26  ;;  %3643 = vmatpush3.bf16.msra.mxu1 %v4528_v35 }
 0x35a   :  { %1055 = vmatprep.subr.bf16.mxu0 %v4491_v27  ;;  %3644 = vmatprep.subr.bf16.mxu1 %v5910_v7 }
 0x35b   :  { %1085 = vmatprep.mubr.bf16.mxu0 %v5911_v17  ;;  %3658 = vmatprep.mubr.msk.bf16.mxu1 %vm4313_vm0, %v5910_v7 }
 0x35d   :  { %1056 = vmatpush1.bf16.msra.mxu0 %v4500_v29  ;;  %3645 = vmatpush3.bf16.msra.mxu1 %v4550_v39 }
 0x35e   :  { %1057 = vmatprep.subr.bf16.mxu0 %v4507_v30  ;;  %3646 = vmatprep.subr.bf16.mxu1 %v5910_v7 }
 0x361   :  { %1058 = vmatpush1.bf16.msra.mxu0 %v4516_v32  ;;  %3647 = vmatpush3.bf16.msra.mxu1 %v4569_v42 }
 0x362   :  { %1059 = vmatprep.subr.bf16.mxu0 %v4522_v33  ;;  %3648 = vmatprep.subr.bf16.mxu1 %v5910_v7 }
 0x365   :  { %1060 = vmatpush1.bf16.msra.mxu0 %v4534_v36  ;;  %3649 = vmatpush3.bf16.msra.mxu1 %v4592_v46 }
 0x366   :  { %1061 = vmatprep.subr.bf16.mxu0 %v4544_v38  ;;  %3650 = vmatprep.subr.bf16.mxu1 %v5910_v7 }
 0x369   :  { %1062 = vmatpush1.bf16.msra.mxu0 %v4557_v40  ;;  %3651 = vmatpush3.bf16.msra.mxu1 %v4613_v49 }
 0x36a   :  { %1063 = vmatprep.subr.bf16.mxu0 %v4563_v41  ;;  %3652 = vmatprep.subr.bf16.mxu1 %v5910_v7 }
 0x36d   :  { %1064 = vmatpush1.bf16.msra.mxu0 %v4579_v44  ;;  %3653 = vmatpush3.bf16.msra.mxu1 %v4633_v52 }
 0x36e   :  { %1065 = vmatprep.subr.bf16.mxu0 %v4586_v45  ;;  %3654 = vmatprep.subr.bf16.mxu1 %v5910_v7 }
 0x371   :  { %1066 = vmatpush1.bf16.msra.mxu0 %v4601_v47  ;;  %3655 = vmatpush3.bf16.msra.mxu1 %v4644_v54 }
 0x372   :  { %1067 = vmatprep.subr.bf16.mxu0 %v4607_v48  ;;  %3656 = vmatprep.subr.bf16.mxu1 %v5910_v7 }
 0x375   :  { %1068 = vmatpush1.bf16.msra.mxu0 %v4620_v50  ;;  %3657 = vmatpush3.bf16.msra.mxu1 %v4654_v55 }
 0x376   :  { %1164 = vmatprep.subr.bf16.mxu0 %v4477_v24  ;;  %3662 = vmatprep.subr.bf16.mxu1 %v5910_v7 }
 0x42b   :  { %v976_v16 = vpop.f32.mrb[28].mxu0  ;;  %v1031_v59 = vpop.f32.mrb[20].mxu1 }
 0x42c   :  { %v983_v1 = vadd.f32 %v976_v16, %v4715_v14  ;;  %v978_v58 = vpop.f32.mrb[29].mxu0  ;;  %v3640_v60 = vpop.f32.mrb[21].mxu1  ;;  %v1032_v43 = vadd.f32 %v4759_v61, %v1031_v59 }
 0x42d   :  { %v990_v34 = vadd.f32 %v978_v58, %v4720_v18  ;;  %v980_v57 = vpop.f32.mrb[30].mxu0  ;;  %v1034_v62 = vpop.f32.mrb[22].mxu1 }
 0x42e   :  { %v3253_v63 = vmul.f32 -1.442695, %v983_v1  ;;  %v981_v0 = vpop.f32.mrb[31].mxu0  ;;  %v3641_v5 = vpop.f32.mrb[23].mxu1 }
 0x42f   :  { %v3254_v3 = vmul.f32 -1.442695, %v990_v34 }
 0x430   :  { %4135 = vpow2.f32 %v3253_v63 }
 0x431   :  { %4137 = vpow2.f32 %v3254_v3 }
 0x43a   :  { %v4136_v12 = vpop.eup %4135 }
 0x43b   :  { %v987_v6 = vadd.f32 1.0, %v4136_v12  ;;  %v4138_v21 = vpop.eup %4137 }
 0x43c   :  { %v994_v9 = vadd.f32 1.0, %v4138_v21 }
 0x43d   :  { %4139 = vrcp.f32 %v987_v6 }
 0x43e   :  { %4141 = vrcp.f32 %v994_v9 }
 0x447   :  { %v4140_v14 = vpop.eup %4139 }
 0x448   :  { %v1037_v11 = vmul.f32 %v4140_v14, %v1032_v43  ;;  %v4142_v51 = vpop.eup %4141 }
 0x449   :  { %v1040_v10 = vsub.f32 1.0, %v4142_v51  ;;  %v1042_v22 = vmul.f32 %v4142_v51, %v4852_v37 }
 0x44a   :  { %v1038_v18 = vadd.f32 %v1037_v11, %v4723_v20 }
 0x44c   :  { %4143 = vtanh.f32 %v1038_v18 }
 0x456   :  { %v4144_v13 = vpop.eup %4143 }
 0x457   :  { %v1041_v23 = vmul.f32 %v4144_v13, %v1040_v10 }
 0x459   :  { %v4896_v56 = vadd.f32 %v1042_v22, %v1041_v23 }
 0x45b   :  { %v1052_v16 = vpack.c.bf16 %v4896_v56, %v4896_v56 }
 0x45d   :  { %1086 = vmatmul.mubr.bf16.vlgmr.msra.gmra.mrb[32].mxu0 %v1052_v16  ;;  %3659 = vmatmul.mubr.bf16.vlgmr.msra.gmra.mrb[24].mxu1 %v1052_v16 }
 0x45e   :  { %1165 = vmatpush1.bf16.msra.mxu0 %v4485_v26  ;;  %3663 = vmatpush3.bf16.msra.mxu1 %v4528_v35 }
 0x45f   :  { %1166 = vmatprep.subr.bf16.mxu0 %v4491_v27  ;;  %3664 = vmatprep.subr.bf16.mxu1 %v5910_v7 }
 0x460   :  { %1196 = vmatprep.mubr.bf16.mxu0 %v5911_v17  ;;  %3678 = vmatprep.mubr.msk.bf16.mxu1 %vm4313_vm0, %v5910_v7 }
 0x462   :  { %1167 = vmatpush1.bf16.msra.mxu0 %v4500_v29  ;;  %3665 = vmatpush3.bf16.msra.mxu1 %v4550_v39 }
 0x463   :  { %1168 = vmatprep.subr.bf16.mxu0 %v4507_v30  ;;  %3666 = vmatprep.subr.bf16.mxu1 %v5910_v7 }
 0x466   :  { %1169 = vmatpush1.bf16.msra.mxu0 %v4516_v32  ;;  %3667 = vmatpush3.bf16.msra.mxu1 %v4569_v42 }
 0x467   :  { %1170 = vmatprep.subr.bf16.mxu0 %v4522_v33  ;;  %3668 = vmatprep.subr.bf16.mxu1 %v5910_v7 }
 0x46a   :  { %1171 = vmatpush1.bf16.msra.mxu0 %v4534_v36  ;;  %3669 = vmatpush3.bf16.msra.mxu1 %v4592_v46 }
 0x46b   :  { %1172 = vmatprep.subr.bf16.mxu0 %v4544_v38  ;;  %3670 = vmatprep.subr.bf16.mxu1 %v5910_v7 }
 0x46e   :  { %1173 = vmatpush1.bf16.msra.mxu0 %v4557_v40  ;;  %3671 = vmatpush3.bf16.msra.mxu1 %v4613_v49 }
 0x46f   :  { %1174 = vmatprep.subr.bf16.mxu0 %v4563_v41  ;;  %3672 = vmatprep.subr.bf16.mxu1 %v5910_v7 }
 0x472   :  { %1175 = vmatpush1.bf16.msra.mxu0 %v4579_v44  ;;  %3673 = vmatpush3.bf16.msra.mxu1 %v4633_v52 }
 0x473   :  { %1176 = vmatprep.subr.bf16.mxu0 %v4586_v45  ;;  %3674 = vmatprep.subr.bf16.mxu1 %v5910_v7 }
 0x476   :  { %1177 = vmatpush1.bf16.msra.mxu0 %v4601_v47  ;;  %3675 = vmatpush3.bf16.msra.mxu1 %v4644_v54 }
 0x477   :  { %1178 = vmatprep.subr.bf16.mxu0 %v4607_v48  ;;  %3676 = vmatprep.subr.bf16.mxu1 %v5910_v7 }
 0x47a   :  { %1179 = vmatpush1.bf16.msra.mxu0 %v4620_v50  ;;  %3677 = vmatpush3.bf16.msra.mxu1 %v4654_v55 }
 0x47b   :  { %1275 = vmatprep.subr.bf16.mxu0 %v4477_v24  ;;  %3682 = vmatprep.subr.bf16.mxu1 %v5910_v7 }
 0x530   :  { %v1087_v20 = vpop.f32.mrb[32].mxu0  ;;  %v1142_v59 = vpop.f32.mrb[24].mxu1 }
 0x531   :  { %v1094_v1 = vadd.f32 %v1087_v20, %v4728_v25  ;;  %v1089_v58 = vpop.f32.mrb[33].mxu0  ;;  %v3660_v60 = vpop.f32.mrb[25].mxu1  ;;  %v1143_v9 = vadd.f32 %v4759_v61, %v1142_v59 }
 0x532   :  { %v1101_v34 = vadd.f32 %v1089_v58, %v4730_v31  ;;  %v1091_v57 = vpop.f32.mrb[34].mxu0  ;;  %v1145_v62 = vpop.f32.mrb[26].mxu1  ;;  %v4266_v60 = vld [vmem:[%s5873_s3] ss:$8 sps:$4 sm:$0xff]  }
 0x533   :  { %v3255_v63 = vmul.f32 -1.442695, %v1094_v1  ;;  %v1092_v0 = vpop.f32.mrb[35].mxu0  ;;  %v3661_v5 = vpop.f32.mrb[27].mxu1  ;;  %v4269_v57 = vld [vmem:[%s5873_s3 + $0x10] ss:$8 sps:$4 sm:$0xff]  }
 0x534   :  { %v3256_v3 = vmul.f32 -1.442695, %v1101_v34  ;;  %v4268_v34 = vld [vmem:[%s5873_s3 + $0x14] ss:$8 sps:$4 sm:$0xff]   ;;  %v4270_v62 = vld [vmem:[%s5874_s4 + $0x8] sm:$0xff]  }
 0x535   :  { %4145 = vpow2.f32 %v3255_v63  ;;  %v4271_v63 = vld [vmem:[%s5873_s3 + $0x24] ss:$8 sps:$4 sm:$0xff]   ;;  %v4272_v0 = vld [vmem:[%s5873_s3 + $0x20] ss:$8 sps:$4 sm:$0xff]   ;;  %v4273_v5 = vld [vmem:[%s5874_s4 + $0x10] sm:$0xff]  }
 0x536   :  { %4147 = vpow2.f32 %v3256_v3  ;;  %v4274_v3 = vld [vmem:[%s5873_s3 + $0x34] ss:$8 sps:$4 sm:$0xff]  }
 0x53f   :  { %v4146_v12 = vpop.eup %4145 }
 0x540   :  { %v1098_v24 = vadd.f32 1.0, %v4146_v12  ;;  %v4148_v6 = vpop.eup %4147  ;;  %v4275_v12 = vld [vmem:[%s5873_s3 + $0x30] ss:$8 sps:$4 sm:$0xff]  }
 0x541   :  { %v1105_v21 = vadd.f32 1.0, %v4148_v6  ;;  %v4277_v6 = vld [vmem:[%s5873_s3 + $0x44] ss:$8 sps:$4 sm:$0xff]  }
 0x542   :  { %4149 = vrcp.f32 %v1098_v24  ;;  %v4276_v24 = vld [vmem:[%s5874_s4 + $0x18] sm:$0xff]  }
 0x543   :  { %4151 = vrcp.f32 %v1105_v21  ;;  %v4278_v21 = vld [vmem:[%s5873_s3 + $0x40] ss:$8 sps:$4 sm:$0xff]  }
 0x54c   :  { %v4150_v25 = vpop.eup %4149 }
 0x54d   :  { %v1148_v43 = vmul.f32 %v4150_v25, %v1143_v9  ;;  %v4152_v14 = vpop.eup %4151  ;;  %v4279_v9 = vld [vmem:[%s5873_s3 + $0x54] ss:$8 sps:$4 sm:$0xff]   ;;  %v4280_v25 = vld [vmem:[%s5873_s3 + $0x50] ss:$8 sps:$4 sm:$0xff]  }
 0x54e   :  { %v1151_v11 = vsub.f32 1.0, %v4152_v14  ;;  %v1153_v10 = vmul.f32 %v4152_v14, %v4896_v56  ;;  %v4027_v14 = vld [vmem:[%s5878_s7 + $0x4] ss:$12 sps:$4 sm:$0xff]  }
 0x54f   :  { %v1149_v31 = vadd.f32 %v1148_v43, %v4740_v8  ;;  %v4281_v43 = vld [vmem:[%s5873_s3 + $0x64] ss:$8 sps:$4 sm:$0xff]  }
 0x551   :  { %4153 = vtanh.f32 %v1149_v31  ;;  %v4283_v31 = vld [vmem:[%s5873_s3 + $0x74] ss:$8 sps:$4 sm:$0xff]  }
 0x55b   :  { %v4154_v18 = vpop.eup %4153 }
 0x55c   :  { %v1152_v51 = vmul.f32 %v4154_v18, %v1151_v11 }
 0x55e   :  { %v4940_v13 = vadd.f32 %v1153_v10, %v1152_v51  ;;  %v5912_v51 = vld [vmem:[#allocation8_spill] sm:$0xff] }
 0x560   :  { %v1163_v23 = vpack.c.bf16 %v4940_v13, %v4940_v13 }
 0x562   :  { %1197 = vmatmul.mubr.bf16.vlgmr.msra.gmra.mrb[36].mxu0 %v1163_v23  ;;  %3679 = vmatmul.mubr.bf16.vlgmr.msra.gmra.mrb[28].mxu1 %v1163_v23 }
 0x563   :  { %1276 = vmatpush1.bf16.msra.mxu0 %v4485_v26  ;;  %3683 = vmatpush3.bf16.msra.mxu1 %v4528_v35  ;;  %v4265_v26 = vld [vmem:[%s5873_s3 + $0x4] ss:$8 sps:$4 sm:$0xff]  }
 0x564   :  { %1277 = vmatprep.subr.bf16.mxu0 %v4491_v27  ;;  %3684 = vmatprep.subr.bf16.mxu1 %v5910_v7 }
 0x565   :  { %1307 = vmatprep.mubr.bf16.mxu0 %v5911_v17  ;;  %3698 = vmatprep.mubr.msk.bf16.mxu1 %vm4313_vm0, %v5910_v7 }
 0x567   :  { %1278 = vmatpush1.bf16.msra.mxu0 %v4500_v29  ;;  %3685 = vmatpush3.bf16.msra.mxu1 %v4550_v39 }
 0x568   :  { %1279 = vmatprep.subr.bf16.mxu0 %v4507_v30  ;;  %3686 = vmatprep.subr.bf16.mxu1 %v5910_v7 }
 0x56b   :  { %1280 = vmatpush1.bf16.msra.mxu0 %v4516_v32  ;;  %3687 = vmatpush3.bf16.msra.mxu1 %v4569_v42 }
 0x56c   :  { %1281 = vmatprep.subr.bf16.mxu0 %v4522_v33  ;;  %3688 = vmatprep.subr.bf16.mxu1 %v5910_v7 }
 0x56f   :  { %1282 = vmatpush1.bf16.msra.mxu0 %v4534_v36  ;;  %3689 = vmatpush3.bf16.msra.mxu1 %v4592_v46 }
 0x570   :  { %1283 = vmatprep.subr.bf16.mxu0 %v4544_v38  ;;  %3690 = vmatprep.subr.bf16.mxu1 %v5910_v7 }
 0x573   :  { %1284 = vmatpush1.bf16.msra.mxu0 %v4557_v40  ;;  %3691 = vmatpush3.bf16.msra.mxu1 %v4613_v49 }
 0x574   :  { %1285 = vmatprep.subr.bf16.mxu0 %v4563_v41  ;;  %3692 = vmatprep.subr.bf16.mxu1 %v5910_v7 }
 0x577   :  { %1286 = vmatpush1.bf16.msra.mxu0 %v4579_v44  ;;  %3693 = vmatpush3.bf16.msra.mxu1 %v4633_v52 }
 0x578   :  { %1287 = vmatprep.subr.bf16.mxu0 %v4586_v45  ;;  %3694 = vmatprep.subr.bf16.mxu1 %v5910_v7 }
 0x57b   :  { %1288 = vmatpush1.bf16.msra.mxu0 %v4601_v47  ;;  %3695 = vmatpush3.bf16.msra.mxu1 %v4644_v54 }
 0x57c   :  { %1289 = vmatprep.subr.bf16.mxu0 %v4607_v48  ;;  %3696 = vmatprep.subr.bf16.mxu1 %v5910_v7 }
 0x57f   :  { %1290 = vmatpush1.bf16.msra.mxu0 %v4620_v50  ;;  %3697 = vmatpush3.bf16.msra.mxu1 %v4654_v55 }
 0x580   :  { %1386 = vmatprep.subr.bf16.mxu0 %v4265_v26  ;;  %3702 = vmatprep.subr.bf16.mxu1 %v5910_v7 }
 0x635   :  { %v1198_v27 = vpop.f32.mrb[36].mxu0  ;;  %v1253_v29 = vpop.f32.mrb[28].mxu1 }
 0x636   :  { %v1205_v30 = vadd.f32 %v1198_v27, %v4732_v53  ;;  %v1200_v32 = vpop.f32.mrb[37].mxu0  ;;  %v3680_v33 = vpop.f32.mrb[29].mxu1  ;;  %v1254_v48 = vadd.f32 %v4759_v61, %v1253_v29  ;;  %v5913_v27 = vld [vmem:[#allocation9_spill] sm:$0xff] }
 0x637   :  { %v1212_v35 = vadd.f32 %v1200_v32, %v4737_v4  ;;  %v1202_v36 = vpop.f32.mrb[38].mxu0  ;;  %v1256_v38 = vpop.f32.mrb[30].mxu1 }
 0x638   :  { %v3257_v39 = vmul.f32 -1.442695, %v1205_v30  ;;  %v1203_v40 = vpop.f32.mrb[39].mxu0  ;;  %v3681_v41 = vpop.f32.mrb[31].mxu1 }
 0x639   :  { %v3258_v42 = vmul.f32 -1.442695, %v1212_v35 }
 0x63a   :  { %4155 = vpow2.f32 %v3257_v39 }
 0x63b   :  { %4157 = vpow2.f32 %v3258_v42 }
 0x644   :  { %v4156_v44 = vpop.eup %4155 }
 0x645   :  { %v1209_v45 = vadd.f32 1.0, %v4156_v44  ;;  %v4158_v46 = vpop.eup %4157 }
 0x646   :  { %v1216_v47 = vadd.f32 1.0, %v4158_v46  ;;  %v5914_v46 = vld [vmem:[#allocation6_spill] sm:$0xff] }
 0x647   :  { %4159 = vrcp.f32 %v1209_v45 }
 0x648   :  { %4161 = vrcp.f32 %v1216_v47 }
 0x651   :  { %v4160_v50 = vpop.eup %4159 }
 0x652   :  { %v1259_v53 = vmul.f32 %v4160_v50, %v1254_v48  ;;  %v4162_v8 = vpop.eup %4161 }
 0x653   :  { %v1262_v22 = vsub.f32 1.0, %v4162_v8  ;;  %v1264_v59 = vmul.f32 %v4162_v8, %v4940_v13 }
 0x654   :  { %v1260_v4 = vadd.f32 %v1259_v53, %v4746_v15  ;;  %v4267_v15 = vld [vmem:[%s5874_s4] sm:$0xff]  }
 0x656   :  { %4163 = vtanh.f32 %v1260_v4 }
 0x660   :  { %v4164_v16 = vpop.eup %4163 }
 0x661   :  { %v1263_v20 = vmul.f32 %v4164_v16, %v1262_v22  ;;  %v4025_v16 = vld [vmem:[%s5878_s7] ss:$12 sps:$4 sm:$0xff]  }
 0x663   :  { %v4986_v1 = vadd.f32 %v1264_v59, %v1263_v20  ;;  %v4031_v20 = vld [vmem:[%s5878_s7 + $0x1c] ss:$12 sps:$4 sm:$0xff]   ;;  %v4032_v59 = vld [vmem:[%s5878_s7 + $0x20] ss:$12 sps:$4 sm:$0xff]  }
 0x665   :  { %v1274_v58 = vpack.c.bf16 %v4986_v1, %v4986_v1 }
 0x667   :  { %1308 = vmatmul.mubr.bf16.vlgmr.msra.gmra.mrb[40].mxu0 %v1274_v58  ;;  %3699 = vmatmul.mubr.bf16.vlgmr.msra.gmra.mrb[32].mxu1 %v1274_v58  ;;  %v1499_v58 = vpack.c.bf16 %v4808_v19, %v4764_v28  ;;  %v4033_v28 = vld [vmem:[%s5878_s7 + $0x30] ss:$12 sps:$4 sm:$0xff]   ;;  %v4039_v19 = vld [vmem:[%s5878_s7 + $0x4c] ss:$12 sps:$4 sm:$0xff]  }
 0x668   :  { %1387 = vmatpush1.bf16.msra.mxu0 %v4266_v60  ;;  %3703 = vmatpush3.bf16.msra.mxu1 %v4267_v15  ;;  %v4029_v60 = vld [vmem:[%s5878_s7 + $0x18] ss:$12 sps:$4 sm:$0xff]   ;;  %v4035_v15 = vld [vmem:[%s5878_s7 + $0x34] ss:$12 sps:$4 sm:$0xff]  }
 0x669   :  { %1388 = vmatprep.subr.bf16.mxu0 %v4268_v34  ;;  %3704 = vmatprep.subr.bf16.mxu1 %v5910_v7  ;;  %v4036_v34 = vld [vmem:[%s5878_s7 + $0x38] ss:$12 sps:$4 sm:$0xff]  }
 0x66a   :  { %1418 = vmatprep.mubr.bf16.mxu0 %v5911_v17  ;;  %3718 = vmatprep.mubr.msk.bf16.mxu1 %vm4313_vm0, %v5910_v7 }
 0x66c   :  { %1389 = vmatpush1.bf16.msra.mxu0 %v4269_v57  ;;  %3705 = vmatpush3.bf16.msra.mxu1 %v4270_v62  ;;  %v4040_v57 = vld [vmem:[%s5878_s7 + $0x50] ss:$12 sps:$4 sm:$0xff]   ;;  %v4037_v62 = vld [vmem:[%s5878_s7 + $0x48] ss:$12 sps:$4 sm:$0xff]  }
 0x66d   :  { %1390 = vmatprep.subr.bf16.mxu0 %v4271_v63  ;;  %3706 = vmatprep.subr.bf16.mxu1 %v5910_v7  ;;  %v4043_v63 = vld [vmem:[%s5878_s7 + $0x64] ss:$12 sps:$4 sm:$0xff]  }
 0x670   :  { %1391 = vmatpush1.bf16.msra.mxu0 %v4272_v0  ;;  %3707 = vmatpush3.bf16.msra.mxu1 %v4273_v5  ;;  %v4044_v0 = vld [vmem:[%s5878_s7 + $0x68] ss:$12 sps:$4 sm:$0xff]   ;;  %v4041_v5 = vld [vmem:[%s5878_s7 + $0x60] ss:$12 sps:$4 sm:$0xff]  }
 0x671   :  { %1392 = vmatprep.subr.bf16.mxu0 %v4274_v3  ;;  %3708 = vmatprep.subr.bf16.mxu1 %v5910_v7  ;;  %v4047_v3 = vld [vmem:[%s5878_s7 + $0x7c] ss:$12 sps:$4 sm:$0xff]  }
 0x674   :  { %1393 = vmatpush1.bf16.msra.mxu0 %v4275_v12  ;;  %3709 = vmatpush3.bf16.msra.mxu1 %v4276_v24  ;;  %v4048_v12 = vld [vmem:[%s5878_s7 + $0x80] ss:$12 sps:$4 sm:$0xff]   ;;  %v4045_v24 = vld [vmem:[%s5878_s7 + $0x78] ss:$12 sps:$4 sm:$0xff]  }
 0x675   :  { %1394 = vmatprep.subr.bf16.mxu0 %v4277_v6  ;;  %3710 = vmatprep.subr.bf16.mxu1 %v5910_v7  ;;  %v4051_v6 = vld [vmem:[%s5878_s7 + $0x94] ss:$12 sps:$4 sm:$0xff]  }
 0x678   :  { %1395 = vmatpush1.bf16.msra.mxu0 %v4278_v21  ;;  %3711 = vmatpush3.bf16.msra.mxu1 %v4613_v49  ;;  %v4282_v49 = vld [vmem:[%s5873_s3 + $0x60] ss:$8 sps:$4 sm:$0xff]   ;;  %v4052_v21 = vld [vmem:[%s5878_s7 + $0x98] ss:$12 sps:$4 sm:$0xff]  }
 0x679   :  { %1396 = vmatprep.subr.bf16.mxu0 %v4279_v9  ;;  %3712 = vmatprep.subr.bf16.mxu1 %v5910_v7  ;;  %v4049_v9 = vld [vmem:[%s5878_s7 + $0x90] ss:$12 sps:$4 sm:$0xff]  }
 0x67c   :  { %1397 = vmatpush1.bf16.msra.mxu0 %v4280_v25  ;;  %3713 = vmatpush3.bf16.msra.mxu1 %v4633_v52  ;;  %v4284_v52 = vld [vmem:[%s5873_s3 + $0x70] ss:$8 sps:$4 sm:$0xff]  }
 0x67d   :  { %1398 = vmatprep.subr.bf16.mxu0 %v4281_v43  ;;  %3714 = vmatprep.subr.bf16.mxu1 %v5910_v7  ;;  %v4055_v25 = vld [vmem:[%s5878_s7 + $0xac] ss:$12 sps:$4 sm:$0xff]   ;;  %v4056_v43 = vld [vmem:[%s5878_s7 + $0xb0] ss:$12 sps:$4 sm:$0xff]  }
 0x680   :  { %1399 = vmatpush1.bf16.msra.mxu0 %v4282_v49  ;;  %3715 = vmatpush3.bf16.msra.mxu1 %v4644_v54  ;;  %v4028_v54 = vld [vmem:[%s5878_s7 + $0x8] ss:$12 sps:$4 sm:$0xff]  }
 0x681   :  { %1400 = vmatprep.subr.bf16.mxu0 %v4283_v31  ;;  %3716 = vmatprep.subr.bf16.mxu1 %v5910_v7  ;;  %v4053_v49 = vld [vmem:[%s5878_s7 + $0xa8] ss:$12 sps:$4 sm:$0xff]   ;;  %v1500_v31 = vpack.c.bf16 %v4896_v56, %v4852_v37  ;;  %v5156_v37 = vld [vmem:[%s5879_s8 + $0x4] ss:$8 sps:$4 sm:$0xff]  }
 0x682   :  { %v5161_v56 = vld [vmem:[%s5879_s8] ss:$8 sps:$4 sm:$0xff]  }
 0x684   :  { %1401 = vmatpush1.bf16.msra.mxu0 %v4284_v52  ;;  %3717 = vmatpush3.bf16.msra.mxu1 %v4654_v55  ;;  %v1501_v52 = vpack.c.bf16 %v4986_v1, %v4940_v13  ;;  %v5168_v13 = vld [vmem:[%s5879_s8 + $0x14] ss:$8 sps:$4 sm:$0xff]  }
 0x685   :  { %1713 = vmatprep.subr.bf16.mxu0 %v4027_v14  ;;  %3722 = vmatprep.subr.bf16.mxu1 %v4028_v54  ;;  %v5180_v14 = vld [vmem:[%s5879_s8 + $0x24] ss:$8 sps:$4 sm:$0xff]  }
 0x73a   :  { %v1309_v11 = vpop.f32.mrb[40].mxu0  ;;  %v1364_v18 = vpop.f32.mrb[32].mxu1 }
 0x73b   :  { %v1316_v10 = vadd.f32 %v1309_v11, %v5912_v51  ;;  %v1311_v23 = vpop.f32.mrb[41].mxu0  ;;  %v3700_v26 = vpop.f32.mrb[33].mxu1  ;;  %v1365_v42 = vadd.f32 %v4759_v61, %v1364_v18  ;;  %v5192_v11 = vld [vmem:[%s5879_s8 + $0x34] ss:$8 sps:$4 sm:$0xff]   ;;  %v5198_v18 = vld [vmem:[%s5879_s8 + $0x30] ss:$8 sps:$4 sm:$0xff]  }
 0x73c   :  { %v1323_v29 = vadd.f32 %v1311_v23, %v5913_v27  ;;  %v1313_v30 = vpop.f32.mrb[42].mxu0  ;;  %v1367_v55 = vpop.f32.mrb[34].mxu1  ;;  %v5204_v51 = vld [vmem:[%s5879_s8 + $0x44] ss:$8 sps:$4 sm:$0xff]   ;;  %v5216_v23 = vld [vmem:[%s5879_s8 + $0x54] ss:$8 sps:$4 sm:$0xff]  }
 0x73d   :  { %v3259_v32 = vmul.f32 -1.442695, %v1316_v10  ;;  %v1314_v33 = vpop.f32.mrb[43].mxu0  ;;  %v3701_v35 = vpop.f32.mrb[35].mxu1  ;;  %v5209_v10 = vld [vmem:[%s5879_s8 + $0x40] ss:$8 sps:$4 sm:$0xff]  }
 0x73e   :  { %v3260_v36 = vmul.f32 -1.442695, %v1323_v29  ;;  %v5222_v26 = vld [vmem:[%s5879_s8 + $0x50] ss:$8 sps:$4 sm:$0xff]   ;;  %v5228_v27 = vld [vmem:[%s5879_s8 + $0x64] ss:$8 sps:$4 sm:$0xff]  }
 0x73f   :  { %4165 = vpow2.f32 %v3259_v32  ;;  %v5233_v29 = vld [vmem:[%s5879_s8 + $0x60] ss:$8 sps:$4 sm:$0xff]   ;;  %v5246_v55 = vld [vmem:[%s5879_s8 + $0x74] ss:$8 sps:$4 sm:$0xff]   ;;  %v5251_v32 = vld [vmem:[%s5879_s8 + $0x70] ss:$8 sps:$4 sm:$0xff]  }
 0x740   :  { %4167 = vpow2.f32 %v3260_v36  ;;  %v5238_v30 = vld [vmem:[%s5880_s9] sm:$0xff]   ;;  %v5256_v33 = vld [vmem:[%s5880_s9 + $0x8] sm:$0xff]   ;;  %v5266_v35 = vld [vmem:[%s5880_s9 + $0x10] sm:$0xff]  }
 0x741   :  { %v5273_v36 = vld [vmem:[%s5880_s9 + $0x18] sm:$0xff]  }
 0x749   :  { %v4166_v38 = vpop.eup %4165 }
 0x74a   :  { %v1320_v39 = vadd.f32 1.0, %v4166_v38  ;;  %v4168_v40 = vpop.eup %4167  ;;  %v5280_v38 = vld [vmem:[%s5880_s9 + $0x20] sm:$0xff]  }
 0x74b   :  { %v1327_v41 = vadd.f32 1.0, %v4168_v40  ;;  %v5294_v40 = vld [vmem:[%s5880_s9 + $0x30] sm:$0xff]  }
 0x74c   :  { %4169 = vrcp.f32 %v1320_v39  ;;  %v5287_v39 = vld [vmem:[%s5880_s9 + $0x28] sm:$0xff]  }
 0x74d   :  { %4171 = vrcp.f32 %v1327_v41  ;;  %v5301_v41 = vld [vmem:[%s5880_s9 + $0x38] sm:$0xff]  }
 0x756   :  { %v4170_v44 = vpop.eup %4169 }
 0x757   :  { %v1370_v45 = vmul.f32 %v4170_v44, %v1365_v42  ;;  %v4172_v48 = vpop.eup %4171 }
 0x758   :  { %v1373_v50 = vsub.f32 1.0, %v4172_v48  ;;  %v1375_v8 = vmul.f32 %v4172_v48, %v4986_v1  ;;  %v5173_v1 = vld [vmem:[%s5879_s8 + $0x10] ss:$8 sps:$4 sm:$0xff]  }
 0x759   :  { %v1371_v47 = vadd.f32 %v1370_v45, %v5914_v46  ;;  %v5915_v45 = vld [vmem:[#allocation10_spill] sm:$0xff] }
 0x75b   :  { %4173 = vtanh.f32 %v1371_v47 }
 0x765   :  { %v4174_v53 = vpop.eup %4173 }
 0x766   :  { %v1374_v4 = vmul.f32 %v4174_v53, %v1373_v50 }
 0x768   :  { %v5072_v22 = vadd.f32 %v1375_v8, %v1374_v4 }
 0x76a   :  { %v1385_v61 = vpack.c.bf16 %v5072_v22, %v5072_v22 }
 0x76c   :  { %1419 = vmatmul.mubr.bf16.vlgmr.msra.gmra.mrb[44].mxu0 %v1385_v61  ;;  %3719 = vmatmul.mubr.bf16.vlgmr.msra.gmra.mrb[36].mxu1 %v1385_v61 }
 0x76d   :  { %1714 = vmatpush1.bf16.msra.mxu0 %v4025_v16  ;;  %3723 = vmatpush3.bf16.msra.mxu1 %v4028_v54  ;;  %v5185_v54 = vld [vmem:[%s5879_s8 + $0x20] ss:$8 sps:$4 sm:$0xff]  }
 0x76e   :  { %3738 = vmatprep.mubr.bf16.mxu1 %v1499_v58  ;;  %1715 = vmatprep.subr.bf16.mxu0 %v4031_v20 }
 0x76f   :  { %3724 = vmatprep.subr.bf16.mxu1 %v4032_v59  ;;  %1745 = vmatprep.mubr.bf16.mxu0 %v5911_v17 }
 0x771   :  { %1716 = vmatpush1.bf16.msra.mxu0 %v4029_v60  ;;  %3725 = vmatpush3.bf16.msra.mxu1 %v4032_v59 }
 0x772   :  { %1717 = vmatprep.subr.bf16.mxu0 %v4035_v15  ;;  %3726 = vmatprep.subr.bf16.mxu1 %v4036_v34 }
 0x775   :  { %1718 = vmatpush1.bf16.msra.mxu0 %v4033_v28  ;;  %3727 = vmatpush3.bf16.msra.mxu1 %v4036_v34  ;;  %v4285_v34 = vld [vmem:[%s5877_s6] ss:$0 sm:$0xff] }
 0x776   :  { %1719 = vmatprep.subr.bf16.mxu0 %v4039_v19  ;;  %3728 = vmatprep.subr.bf16.mxu1 %v4040_v57 }
 0x779   :  { %1720 = vmatpush1.bf16.msra.mxu0 %v4037_v62  ;;  %3729 = vmatpush3.bf16.msra.mxu1 %v4040_v57  ;;  %v5916_v57 = vld [vmem:[#allocation7_spill] sm:$0xff] }
 0x77a   :  { %1721 = vmatprep.subr.bf16.mxu0 %v4043_v63  ;;  %3730 = vmatprep.subr.bf16.mxu1 %v4044_v0 }
 0x77d   :  { %1722 = vmatpush1.bf16.msra.mxu0 %v4041_v5  ;;  %3731 = vmatpush3.bf16.msra.mxu1 %v4044_v0 }
 0x77e   :  { %1723 = vmatprep.subr.bf16.mxu0 %v4047_v3  ;;  %3732 = vmatprep.subr.bf16.mxu1 %v4048_v12 }
 0x781   :  { %1724 = vmatpush1.bf16.msra.mxu0 %v4045_v24  ;;  %3733 = vmatpush3.bf16.msra.mxu1 %v4048_v12 }
 0x782   :  { %1725 = vmatprep.subr.bf16.mxu0 %v4051_v6  ;;  %3734 = vmatprep.subr.bf16.mxu1 %v4052_v21 }
 0x785   :  { %1726 = vmatpush1.bf16.msra.mxu0 %v4049_v9  ;;  %3735 = vmatpush3.bf16.msra.mxu1 %v4052_v21 }
 0x786   :  { %1727 = vmatprep.subr.bf16.mxu0 %v4055_v25  ;;  %3736 = vmatprep.subr.bf16.mxu1 %v4056_v43 }
 0x789   :  { %1728 = vmatpush1.bf16.msra.mxu0 %v4053_v49  ;;  %3737 = vmatpush3.bf16.msra.mxu1 %v4056_v43 }
 0x78a   :  { %3746 = vmatprep.subr.bf16.mxu1 %v5910_v7  ;;  %1967 = vmatprep.subr.bf16.mxu0 %v5156_v37 }
 0x78c   :  { %1746 = vmatmul.mubr.bf16.vlgmr.msra.gmra.mrb[48].mxu0 %v1499_v58  ;;  %3739 = vmatmul.mubr.bf16.vlgmr.msra.gmra.mrb[40].mxu1 %v1500_v31 }
 0x78d   :  { %3742 = vmatprep.mubr.bf16.mxu1 %v1501_v52  ;;  %1755 = vmatprep.mubr.bf16.mxu0 %v5911_v17 }
 0x78e   :  { %1968 = vmatpush1.bf16.msra.mxu0 %v5161_v56  ;;  %3747 = vmatpush3.bf16.msra.mxu1 %v5238_v30 }
 0x78f   :  { %1969 = vmatprep.subr.bf16.mxu0 %v5168_v13  ;;  %3748 = vmatprep.subr.bf16.mxu1 %v5910_v7 }
 0x792   :  { %1970 = vmatpush1.bf16.msra.mxu0 %v5173_v1  ;;  %3749 = vmatpush3.bf16.msra.mxu1 %v5256_v33 }
 0x793   :  { %1971 = vmatprep.subr.bf16.mxu0 %v5180_v14  ;;  %3750 = vmatprep.subr.bf16.mxu1 %v5910_v7 }
 0x794   :  { %1756 = vmatmul.mubr.bf16.gmra.mrb[52].mxu0 %v1500_v31 }
 0x795   :  { %1765 = vmatprep.mubr.bf16.mxu0 %v5911_v17 }
 0x796   :  { %1972 = vmatpush1.bf16.msra.mxu0 %v5185_v54  ;;  %3751 = vmatpush3.bf16.msra.mxu1 %v5266_v35 }
 0x797   :  { %1973 = vmatprep.subr.bf16.mxu0 %v5192_v11  ;;  %3752 = vmatprep.subr.bf16.mxu1 %v5910_v7 }
 0x79a   :  { %1974 = vmatpush1.bf16.msra.mxu0 %v5198_v18  ;;  %3753 = vmatpush3.bf16.msra.mxu1 %v5273_v36 }
 0x79b   :  { %1975 = vmatprep.subr.bf16.mxu0 %v5204_v51  ;;  %3754 = vmatprep.subr.bf16.mxu1 %v5910_v7 }
 0x79c   :  { %1766 = vmatmul.mubr.bf16.gmra.mrb[56].mxu0 %v1501_v52 }
 0x79d   :  { %1775 = vmatprep.mubr.bf16.mxu0 %v5911_v17 }
 0x79e   :  { %1976 = vmatpush1.bf16.msra.mxu0 %v5209_v10  ;;  %3755 = vmatpush3.bf16.msra.mxu1 %v5280_v38 }
 0x79f   :  { %1977 = vmatprep.subr.bf16.mxu0 %v5216_v23  ;;  %3756 = vmatprep.subr.bf16.mxu1 %v5910_v7 }
 0x7a2   :  { %1978 = vmatpush1.bf16.msra.mxu0 %v5222_v26  ;;  %3757 = vmatpush3.bf16.msra.mxu1 %v5287_v39 }
 0x7a3   :  { %1979 = vmatprep.subr.bf16.mxu0 %v5228_v27  ;;  %3758 = vmatprep.subr.bf16.mxu1 %v5910_v7 }
 0x7a6   :  { %1980 = vmatpush1.bf16.msra.mxu0 %v5233_v29  ;;  %3759 = vmatpush3.bf16.msra.mxu1 %v5294_v40 }
 0x7a7   :  { %1981 = vmatprep.subr.bf16.mxu0 %v5246_v55  ;;  %3760 = vmatprep.subr.bf16.mxu1 %v5910_v7 }
 0x7aa   :  { %1982 = vmatpush1.bf16.msra.mxu0 %v5251_v32  ;;  %3761 = vmatpush3.bf16.msra.mxu1 %v5301_v41 }
 0x7ab   :  { %2122 = vmatprep.subr.bf16.mxu0 %v5156_v37  ;;  %3766 = vmatprep.subr.bf16.mxu1 %v5910_v7 }
 0x83f   :  { %v1420_v42 = vpop.f32.mrb[44].mxu0  ;;  %v1475_v44 = vpop.f32.mrb[36].mxu1 }
 0x840   :  { %v1427_v46 = vadd.f32 %v1420_v42, %v5915_v45  ;;  %v1422_v47 = vpop.f32.mrb[45].mxu0  ;;  %v3720_v48 = vpop.f32.mrb[37].mxu1  ;;  %v1476_v28 = vadd.f32 %v4285_v34, %v1475_v44  ;;  %v5922_v34 = vld [vmem:[#allocation5_spill] sm:$0xff] }
 0x841   :  { %v1434_v50 = vadd.f32 %v1422_v47, %v4754_v2  ;;  %v1424_v53 = vpop.f32.mrb[46].mxu0  ;;  %v1478_v4 = vpop.f32.mrb[38].mxu1 }
 0x842   :  { %v3261_v8 = vmul.f32 -1.442695, %v1427_v46  ;;  %v1425_v16 = vpop.f32.mrb[47].mxu0  ;;  %v3721_v61 = vpop.f32.mrb[39].mxu1 }
 0x843   :  { %v3262_v20 = vmul.f32 -1.442695, %v1434_v50  ;;  %v1567_v16 = vld [vmem:[%s5882_s10] sm:$0x7] }
 0x844   :  { %4175 = vpow2.f32 %v3261_v8  ;;  %v5353_v8 = vld [vmem:[%s5875_s1 + $0x8] sm:$0xff] }
 0x845   :  { %4177 = vpow2.f32 %v3262_v20 }
 0x84e   :  { %v4176_v59 = vpop.eup %4175 }
 0x84f   :  { %v1431_v58 = vadd.f32 1.0, %v4176_v59  ;;  %v4178_v60 = vpop.eup %4177 }
 0x850   :  { %v1438_v15 = vadd.f32 1.0, %v4178_v60 }
 0x851   :  { %4179 = vrcp.f32 %v1431_v58 }
 0x852   :  { %4181 = vrcp.f32 %v1438_v15 }
 0x85b   :  { %v4180_v19 = vpop.eup %4179 }
 0x85c   :  { %v1481_v2 = vmul.f32 %v4180_v19, %v1476_v28  ;;  %v4182_v9 = vpop.eup %4181  ;;  %v5923_v28 = vsub.s32 0, %v5922_v34 }
 0x85d   :  { %v1484_v31 = vsub.f32 1.0, %v4182_v9  ;;  %v1486_v45 = vmul.f32 %v4182_v9, %v5072_v22 }
 0x85e   :  { %v1482_v62 = vadd.f32 %v1481_v2, %v5916_v57  ;;  %v5411_v19 = vrot.slane %v1567_v16, %v5923_v28 }
 0x85f   :  { %v5312_v63 = vpop.f32.mrb[48].mxu0  ;;  %v5314_v0 = vpop.f32.mrb[40].mxu1 }
 0x860   :  { %4183 = vtanh.f32 %v1482_v62  ;;  %v5316_v5 = vpop.f32.mrb[49].mxu0  ;;  %v5318_v3 = vpop.f32.mrb[41].mxu1  ;;  %v5926_v62 = vsub.s32 1, %v5922_v34 }
 0x861   :  { %v5320_v12 = vpop.f32.mrb[50].mxu0  ;;  %v5322_v24 = vpop.f32.mrb[42].mxu1 }
 0x862   :  { %v5324_v6 = vpop.f32.mrb[51].mxu0  ;;  %v5326_v21 = vpop.f32.mrb[43].mxu1  ;;  %v5419_v9 = vrot.slane %v1567_v16, %v5926_v62 }
 0x867   :  { %v5328_v25 = vpop.f32.mrb[52].mxu0 }
 0x868   :  { %v5330_v43 = vpop.f32.mrb[53].mxu0 }
 0x869   :  { %v5332_v49 = vpop.f32.mrb[54].mxu0 }
 0x86a   :  { %v4184_v52 = vpop.eup %4183  ;;  %v5334_v42 = vpop.f32.mrb[55].mxu0 }
 0x86b   :  { %v1485_v44 = vmul.f32 %v4184_v52, %v1484_v31  ;;  %v1748_v31 = vadd.f32 %v5312_v63, %v5411_v19  ;;  %v1750_v52 = vadd.f32 %v5316_v5, %v5419_v9  ;;  %v5428_v5 = vld [vmem:[%s5883_s11] ss:$0 sm:$0xff] }
 0x86d   :  { %v1487_v46 = vadd.f32 %v1486_v45, %v1485_v44 }
 0x86f   :  { %v5337_v47 = vpop.f32.mrb[56].mxu0  ;;  %v1502_v48 = vpack.c.bf16 %v1487_v46, %v5072_v22  ;;  %3177 = vst [vmem:[%s5881_s17] sm:$0xff] %v1487_v46  ;;  %v1886_v22 = vpack.c.bf16 %v5353_v8, %v5353_v8 }
 0x870   :  { %v5343_v50 = vpop.f32.mrb[57].mxu0 }
 0x871   :  { %v5345_v53 = vpop.f32.mrb[58].mxu0  ;;  %1776 = vmatmul.mubr.bf16.gmra.mrb[60].mxu0 %v1502_v48  ;;  %3743 = vmatmul.mubr.bf16.gmra.mrb[44].mxu1 %v1502_v48 }
 0x872   :  { %v5347_v4 = vpop.f32.mrb[59].mxu0  ;;  %1999 = vmatprep.mubr.bf16.mxu0 %v5911_v17  ;;  %3762 = vmatprep.mubr.msk.bf16.mxu1 %vm4313_vm0, %v5910_v7 }
 0x879   :  { %2000 = vmatmul.mubr.bf16.vlgmr.msra.gmra.mrb[64].mxu0 %v1886_v22  ;;  %3763 = vmatmul.mubr.bf16.vlgmr.msra.gmra.mrb[48].mxu1 %v1886_v22 }
 0x87a   :  { %2123 = vmatpush1.bf16.msra.mxu0 %v5161_v56  ;;  %3767 = vmatpush3.bf16.msra.mxu1 %v5238_v30 }
 0x87b   :  { %2124 = vmatprep.subr.bf16.mxu0 %v5168_v13  ;;  %3768 = vmatprep.subr.bf16.mxu1 %v5910_v7 }
 0x87c   :  { %2154 = vmatprep.mubr.bf16.mxu0 %v5911_v17  ;;  %3782 = vmatprep.mubr.msk.bf16.mxu1 %vm4313_vm0, %v5910_v7 }
 0x87e   :  { %2125 = vmatpush1.bf16.msra.mxu0 %v5173_v1  ;;  %3769 = vmatpush3.bf16.msra.mxu1 %v5256_v33 }
 0x87f   :  { %2126 = vmatprep.subr.bf16.mxu0 %v5180_v14  ;;  %3770 = vmatprep.subr.bf16.mxu1 %v5910_v7 }
 0x882   :  { %2127 = vmatpush1.bf16.msra.mxu0 %v5185_v54  ;;  %3771 = vmatpush3.bf16.msra.mxu1 %v5266_v35 }
 0x883   :  { %2128 = vmatprep.subr.bf16.mxu0 %v5192_v11  ;;  %3772 = vmatprep.subr.bf16.mxu1 %v5910_v7 }
 0x886   :  { %2129 = vmatpush1.bf16.msra.mxu0 %v5198_v18  ;;  %3773 = vmatpush3.bf16.msra.mxu1 %v5273_v36 }
 0x887   :  { %2130 = vmatprep.subr.bf16.mxu0 %v5204_v51  ;;  %3774 = vmatprep.subr.bf16.mxu1 %v5910_v7 }
 0x88a   :  { %2131 = vmatpush1.bf16.msra.mxu0 %v5209_v10  ;;  %3775 = vmatpush3.bf16.msra.mxu1 %v5280_v38 }
 0x88b   :  { %2132 = vmatprep.subr.bf16.mxu0 %v5216_v23  ;;  %3776 = vmatprep.subr.bf16.mxu1 %v5910_v7 }
 0x88e   :  { %2133 = vmatpush1.bf16.msra.mxu0 %v5222_v26  ;;  %3777 = vmatpush3.bf16.msra.mxu1 %v5287_v39 }
 0x88f   :  { %2134 = vmatprep.subr.bf16.mxu0 %v5228_v27  ;;  %3778 = vmatprep.subr.bf16.mxu1 %v5910_v7 }
 0x892   :  { %2135 = vmatpush1.bf16.msra.mxu0 %v5233_v29  ;;  %3779 = vmatpush3.bf16.msra.mxu1 %v5294_v40 }
 0x893   :  { %2136 = vmatprep.subr.bf16.mxu0 %v5246_v55  ;;  %3780 = vmatprep.subr.bf16.mxu1 %v5910_v7 }
 0x896   :  { %2137 = vmatpush1.bf16.msra.mxu0 %v5251_v32  ;;  %3781 = vmatpush3.bf16.msra.mxu1 %v5301_v41 }
 0x897   :  { %2229 = vmatprep.subr.bf16.mxu0 %v5156_v37  ;;  %3786 = vmatprep.subr.bf16.mxu1 %v5910_v7 }
 0x944   :  { %v5397_v61 = vpop.f32.mrb[60].mxu0  ;;  %v5399_v20 = vpop.f32.mrb[44].mxu1 }
 0x945   :  { %5917 = vst [vmem:[#allocation8_spill] sm:$0xff] %v5397_v61  ;;  %5918 = vst [vmem:[#allocation9_spill] sm:$0xff] %v5399_v20  ;;  %v5401_v59 = vpop.f32.mrb[61].mxu0  ;;  %v5403_v58 = vpop.f32.mrb[45].mxu1 }
 0x946   :  { %5919 = vst [vmem:[#allocation6_spill] sm:$0xff] %v5401_v59  ;;  %v5405_v60 = vpop.f32.mrb[62].mxu0  ;;  %v5407_v15 = vpop.f32.mrb[46].mxu1 }
 0x947   :  { %5920 = vst [vmem:[#allocation10_spill] sm:$0xff] %v5405_v60  ;;  %5921 = vst [vmem:[#allocation7_spill] sm:$0xff] %v5407_v15  ;;  %v5413_v2 = vpop.f32.mrb[63].mxu0  ;;  %v5415_v57 = vpop.f32.mrb[47].mxu1 }
 0x948   :  { %5924 = vst [vmem:[#allocation5_spill] sm:$0xff] %v5413_v2  ;;  %5925 = vst [vmem:[#allocation11_spill] sm:$0xff] %v5415_v57 }
 0x94c   :  { %v2001_v44 = vpop.f32.mrb[64].mxu0  ;;  %v2104_v45 = vpop.f32.mrb[48].mxu1 }
 0x94d   :  { %v2008_v46 = vadd.f32 %v2001_v44, %v1748_v31  ;;  %v2003_v48 = vpop.f32.mrb[65].mxu0  ;;  %v3764_v22 = vpop.f32.mrb[49].mxu1  ;;  %v5927_v31 = vsub.s32 2, %v5922_v34 }
 0x94e   :  { %v2015_v28 = vadd.f32 %v2003_v48, %v1750_v52  ;;  %v2005_v15 = vpop.f32.mrb[66].mxu0  ;;  %v2107_v2 = vpop.f32.mrb[50].mxu1 }
 0x94f   :  { %v3304_v60 = vmul.f32 -1.442695, %v2008_v46  ;;  %v2006_v20 = vpop.f32.mrb[67].mxu0  ;;  %v3765_v59 = vpop.f32.mrb[51].mxu1  ;;  %v5432_v52 = vrot.slane %v1567_v16, %v5927_v31 }
 0x950   :  { %v3305_v62 = vmul.f32 -1.442695, %v2015_v28  ;;  %v2105_v20 = vadd.f32 %v5428_v5, %v2104_v45 }
 0x951   :  { %4185 = vpow2.f32 %v3304_v60  ;;  %v1821_v60 = vadd.f32 %v5318_v3, %v5432_v52  ;;  %v1752_v3 = vadd.f32 %v5320_v12, %v5411_v19 }
 0x952   :  { %4187 = vpow2.f32 %v3305_v62 }
 0x95b   :  { %v4186_v61 = vpop.eup %4185 }
 0x95c   :  { %v2012_v57 = vadd.f32 1.0, %v4186_v61  ;;  %v4188_v63 = vpop.eup %4187 }
 0x95d   :  { %v2019_v15 = vadd.f32 1.0, %v4188_v63 }
 0x95e   :  { %4189 = vrcp.f32 %v2012_v57 }
 0x95f   :  { %4191 = vrcp.f32 %v2019_v15 }
 0x968   :  { %v4190_v59 = vpop.eup %4189 }
 0x969   :  { %v2110_v61 = vmul.f32 %v4190_v59, %v2105_v20  ;;  %v4192_v57 = vpop.eup %4191 }
 0x96a   :  { %v2113_v44 = vsub.f32 1.0, %v4192_v57  ;;  %v2115_v22 = vmul.f32 %v4192_v57, %v5353_v8  ;;  %v1754_v8 = vadd.f32 %v5324_v6, %v5419_v9 }
 0x96b   :  { %v2111_v2 = vadd.f32 %v2110_v61, %v1821_v60 }
 0x96d   :  { %4193 = vtanh.f32 %v2111_v2 }
 0x977   :  { %v4194_v46 = vpop.eup %4193 }
 0x978   :  { %v2114_v48 = vmul.f32 %v4194_v46, %v2113_v44 }
 0x97a   :  { %v5438_v34 = vadd.f32 %v2115_v22, %v2114_v48 }
 0x97c   :  { %v2121_v16 = vpack.c.bf16 %v5438_v34, %v5438_v34 }
 0x97e   :  { %2155 = vmatmul.mubr.bf16.vlgmr.msra.gmra.mrb[68].mxu0 %v2121_v16  ;;  %3783 = vmatmul.mubr.bf16.vlgmr.msra.gmra.mrb[52].mxu1 %v2121_v16  ;;  %v1824_v16 = vadd.f32 %v5326_v21, %v5432_v52  ;;  %v1758_v21 = vadd.f32 %v5328_v25, %v5411_v19 }
 0x97f   :  { %2230 = vmatpush1.bf16.msra.mxu0 %v5161_v56  ;;  %3787 = vmatpush3.bf16.msra.mxu1 %v5238_v30 }
 0x980   :  { %2231 = vmatprep.subr.bf16.mxu0 %v5168_v13  ;;  %3788 = vmatprep.subr.bf16.mxu1 %v5910_v7 }
 0x981   :  { %2261 = vmatprep.mubr.bf16.mxu0 %v5911_v17  ;;  %3802 = vmatprep.mubr.msk.bf16.mxu1 %vm4313_vm0, %v5910_v7 }
 0x983   :  { %2232 = vmatpush1.bf16.msra.mxu0 %v5173_v1  ;;  %3789 = vmatpush3.bf16.msra.mxu1 %v5256_v33 }
 0x984   :  { %2233 = vmatprep.subr.bf16.mxu0 %v5180_v14  ;;  %3790 = vmatprep.subr.bf16.mxu1 %v5910_v7 }
 0x987   :  { %2234 = vmatpush1.bf16.msra.mxu0 %v5185_v54  ;;  %3791 = vmatpush3.bf16.msra.mxu1 %v5266_v35 }
 0x988   :  { %2235 = vmatprep.subr.bf16.mxu0 %v5192_v11  ;;  %3792 = vmatprep.subr.bf16.mxu1 %v5910_v7 }
 0x98b   :  { %2236 = vmatpush1.bf16.msra.mxu0 %v5198_v18  ;;  %3793 = vmatpush3.bf16.msra.mxu1 %v5273_v36 }
 0x98c   :  { %2237 = vmatprep.subr.bf16.mxu0 %v5204_v51  ;;  %3794 = vmatprep.subr.bf16.mxu1 %v5910_v7 }
 0x98f   :  { %2238 = vmatpush1.bf16.msra.mxu0 %v5209_v10  ;;  %3795 = vmatpush3.bf16.msra.mxu1 %v5280_v38 }
 0x990   :  { %2239 = vmatprep.subr.bf16.mxu0 %v5216_v23  ;;  %3796 = vmatprep.subr.bf16.mxu1 %v5910_v7 }
 0x993   :  { %2240 = vmatpush1.bf16.msra.mxu0 %v5222_v26  ;;  %3797 = vmatpush3.bf16.msra.mxu1 %v5287_v39 }
 0x994   :  { %2241 = vmatprep.subr.bf16.mxu0 %v5228_v27  ;;  %3798 = vmatprep.subr.bf16.mxu1 %v5910_v7 }
 0x997   :  { %2242 = vmatpush1.bf16.msra.mxu0 %v5233_v29  ;;  %3799 = vmatpush3.bf16.msra.mxu1 %v5294_v40 }
 0x998   :  { %2243 = vmatprep.subr.bf16.mxu0 %v5246_v55  ;;  %3800 = vmatprep.subr.bf16.mxu1 %v5910_v7 }
 0x99b   :  { %2244 = vmatpush1.bf16.msra.mxu0 %v5251_v32  ;;  %3801 = vmatpush3.bf16.msra.mxu1 %v5301_v41 }
 0x99c   :  { %2336 = vmatprep.subr.bf16.mxu0 %v5156_v37  ;;  %3806 = vmatprep.subr.bf16.mxu1 %v5910_v7 }
 0xa51   :  { %v2156_v45 = vpop.f32.mrb[68].mxu0  ;;  %v2211_v28 = vpop.f32.mrb[52].mxu1 }
 0xa52   :  { %v2163_v62 = vadd.f32 %v2156_v45, %v1752_v3  ;;  %v2158_v63 = vpop.f32.mrb[69].mxu0  ;;  %v3784_v31 = vpop.f32.mrb[53].mxu1  ;;  %v2212_v6 = vadd.f32 %v5428_v5, %v2211_v28  ;;  %v1760_v28 = vadd.f32 %v5330_v43, %v5419_v9 }
 0xa53   :  { %v2170_v15 = vadd.f32 %v2158_v63, %v1754_v8  ;;  %v2160_v20 = vpop.f32.mrb[70].mxu0  ;;  %v2214_v59 = vpop.f32.mrb[54].mxu1 }
 0xa54   :  { %v3314_v60 = vmul.f32 -1.442695, %v2163_v62  ;;  %v2161_v61 = vpop.f32.mrb[71].mxu0  ;;  %v3785_v2 = vpop.f32.mrb[55].mxu1 }
 0xa55   :  { %v3315_v57 = vmul.f32 -1.442695, %v2170_v15 }
 0xa56   :  { %4195 = vpow2.f32 %v3314_v60 }
 0xa57   :  { %4197 = vpow2.f32 %v3315_v57 }
 0xa60   :  { %v4196_v44 = vpop.eup %4195 }
 0xa61   :  { %v2167_v46 = vadd.f32 1.0, %v4196_v44  ;;  %v4198_v12 = vpop.eup %4197 }
 0xa62   :  { %v2174_v48 = vadd.f32 1.0, %v4198_v12 }
 0xa63   :  { %4199 = vrcp.f32 %v2167_v46 }
 0xa64   :  { %4201 = vrcp.f32 %v2174_v48 }
 0xa6d   :  { %v4200_v22 = vpop.eup %4199 }
 0xa6e   :  { %v2217_v3 = vmul.f32 %v4200_v22, %v2212_v6  ;;  %v4202_v45 = vpop.eup %4201 }
 0xa6f   :  { %v2220_v62 = vsub.f32 1.0, %v4202_v45  ;;  %v2222_v15 = vmul.f32 %v4202_v45, %v5438_v34 }
 0xa70   :  { %v2218_v8 = vadd.f32 %v2217_v3, %v1824_v16 }
 0xa72   :  { %4203 = vtanh.f32 %v2218_v8 }
 0xa7c   :  { %v4204_v63 = vpop.eup %4203 }
 0xa7d   :  { %v2221_v31 = vmul.f32 %v4204_v63, %v2220_v62 }
 0xa7f   :  { %v5485_v20 = vadd.f32 %v2222_v15, %v2221_v31  ;;  %v1829_v31 = vadd.f32 %v5314_v0, %v5432_v52  ;;  %v1762_v0 = vadd.f32 %v5332_v49, %v5411_v19 }
 0xa81   :  { %v2228_v59 = vpack.c.bf16 %v5485_v20, %v5485_v20 }
 0xa83   :  { %2262 = vmatmul.mubr.bf16.vlgmr.msra.gmra.mrb[72].mxu0 %v2228_v59  ;;  %3803 = vmatmul.mubr.bf16.vlgmr.msra.gmra.mrb[56].mxu1 %v2228_v59 }
 0xa84   :  { %2337 = vmatpush1.bf16.msra.mxu0 %v5161_v56  ;;  %3807 = vmatpush3.bf16.msra.mxu1 %v5238_v30 }
 0xa85   :  { %2338 = vmatprep.subr.bf16.mxu0 %v5168_v13  ;;  %3808 = vmatprep.subr.bf16.mxu1 %v5910_v7 }
 0xa86   :  { %2368 = vmatprep.mubr.bf16.mxu0 %v5911_v17  ;;  %3822 = vmatprep.mubr.msk.bf16.mxu1 %vm4313_vm0, %v5910_v7 }
 0xa88   :  { %2339 = vmatpush1.bf16.msra.mxu0 %v5173_v1  ;;  %3809 = vmatpush3.bf16.msra.mxu1 %v5256_v33 }
 0xa89   :  { %2340 = vmatprep.subr.bf16.mxu0 %v5180_v14  ;;  %3810 = vmatprep.subr.bf16.mxu1 %v5910_v7 }
 0xa8c   :  { %2341 = vmatpush1.bf16.msra.mxu0 %v5185_v54  ;;  %3811 = vmatpush3.bf16.msra.mxu1 %v5266_v35 }
 0xa8d   :  { %2342 = vmatprep.subr.bf16.mxu0 %v5192_v11  ;;  %3812 = vmatprep.subr.bf16.mxu1 %v5910_v7 }
 0xa90   :  { %2343 = vmatpush1.bf16.msra.mxu0 %v5198_v18  ;;  %3813 = vmatpush3.bf16.msra.mxu1 %v5273_v36 }
 0xa91   :  { %2344 = vmatprep.subr.bf16.mxu0 %v5204_v51  ;;  %3814 = vmatprep.subr.bf16.mxu1 %v5910_v7 }
 0xa94   :  { %2345 = vmatpush1.bf16.msra.mxu0 %v5209_v10  ;;  %3815 = vmatpush3.bf16.msra.mxu1 %v5280_v38 }
 0xa95   :  { %2346 = vmatprep.subr.bf16.mxu0 %v5216_v23  ;;  %3816 = vmatprep.subr.bf16.mxu1 %v5910_v7 }
 0xa98   :  { %2347 = vmatpush1.bf16.msra.mxu0 %v5222_v26  ;;  %3817 = vmatpush3.bf16.msra.mxu1 %v5287_v39 }
 0xa99   :  { %2348 = vmatprep.subr.bf16.mxu0 %v5228_v27  ;;  %3818 = vmatprep.subr.bf16.mxu1 %v5910_v7 }
 0xa9c   :  { %2349 = vmatpush1.bf16.msra.mxu0 %v5233_v29  ;;  %3819 = vmatpush3.bf16.msra.mxu1 %v5294_v40 }
 0xa9d   :  { %2350 = vmatprep.subr.bf16.mxu0 %v5246_v55  ;;  %3820 = vmatprep.subr.bf16.mxu1 %v5910_v7 }
 0xaa0   :  { %2351 = vmatpush1.bf16.msra.mxu0 %v5251_v32  ;;  %3821 = vmatpush3.bf16.msra.mxu1 %v5301_v41 }
 0xaa1   :  { %2443 = vmatprep.subr.bf16.mxu0 %v5156_v37  ;;  %3826 = vmatprep.subr.bf16.mxu1 %v5910_v7 }
 0xb56   :  { %v2263_v60 = vpop.f32.mrb[72].mxu0  ;;  %v2318_v61 = vpop.f32.mrb[56].mxu1 }
 0xb57   :  { %v2270_v2 = vadd.f32 %v2263_v60, %v1758_v21  ;;  %v2265_v57 = vpop.f32.mrb[73].mxu0  ;;  %v3804_v44 = vpop.f32.mrb[57].mxu1  ;;  %v2319_v43 = vadd.f32 %v5428_v5, %v2318_v61  ;;  %v1764_v61 = vadd.f32 %v5334_v42, %v5419_v9 }
 0xb58   :  { %v2277_v46 = vadd.f32 %v2265_v57, %v1760_v28  ;;  %v2267_v12 = vpop.f32.mrb[74].mxu0  ;;  %v2321_v48 = vpop.f32.mrb[58].mxu1 }
 0xb59   :  { %v3316_v6 = vmul.f32 -1.442695, %v2270_v2  ;;  %v2268_v22 = vpop.f32.mrb[75].mxu0  ;;  %v3805_v16 = vpop.f32.mrb[59].mxu1 }
 0xb5a   :  { %v3317_v3 = vmul.f32 -1.442695, %v2277_v46 }
 0xb5b   :  { %4205 = vpow2.f32 %v3316_v6 }
 0xb5c   :  { %4207 = vpow2.f32 %v3317_v3 }
 0xb65   :  { %v4206_v8 = vpop.eup %4205 }
 0xb66   :  { %v2274_v45 = vadd.f32 1.0, %v4206_v8  ;;  %v4208_v25 = vpop.eup %4207 }
 0xb67   :  { %v2281_v62 = vadd.f32 1.0, %v4208_v25 }
 0xb68   :  { %4209 = vrcp.f32 %v2274_v45 }
 0xb69   :  { %4211 = vrcp.f32 %v2281_v62 }
 0xb72   :  { %v4210_v63 = vpop.eup %4209 }
 0xb73   :  { %v2324_v15 = vmul.f32 %v4210_v63, %v2319_v43  ;;  %v4212_v21 = vpop.eup %4211 }
 0xb74   :  { %v2327_v28 = vsub.f32 1.0, %v4212_v21  ;;  %v2329_v57 = vmul.f32 %v4212_v21, %v5485_v20 }
 0xb75   :  { %v2325_v59 = vadd.f32 %v2324_v15, %v1829_v31 }
 0xb77   :  { %4213 = vtanh.f32 %v2325_v59 }
 0xb81   :  { %v4214_v60 = vpop.eup %4213 }
 0xb82   :  { %v2328_v2 = vmul.f32 %v4214_v60, %v2327_v28  ;;  %v1832_v28 = vadd.f32 %v5322_v24, %v5432_v52  ;;  %v1770_v24 = vadd.f32 %v5343_v50, %v5419_v9 }
 0xb84   :  { %v5532_v44 = vadd.f32 %v2329_v57, %v2328_v2 }
 0xb86   :  { %v2335_v46 = vpack.c.bf16 %v5532_v44, %v5532_v44 }
 0xb88   :  { %2369 = vmatmul.mubr.bf16.vlgmr.msra.gmra.mrb[76].mxu0 %v2335_v46  ;;  %3823 = vmatmul.mubr.bf16.vlgmr.msra.gmra.mrb[60].mxu1 %v2335_v46 }
 0xb89   :  { %2444 = vmatpush1.bf16.msra.mxu0 %v5161_v56  ;;  %3827 = vmatpush3.bf16.msra.mxu1 %v5238_v30 }
 0xb8a   :  { %2445 = vmatprep.subr.bf16.mxu0 %v5168_v13  ;;  %3828 = vmatprep.subr.bf16.mxu1 %v5910_v7 }
 0xb8b   :  { %2475 = vmatprep.mubr.bf16.mxu0 %v5911_v17  ;;  %3842 = vmatprep.mubr.msk.bf16.mxu1 %vm4313_vm0, %v5910_v7 }
 0xb8d   :  { %2446 = vmatpush1.bf16.msra.mxu0 %v5173_v1  ;;  %3829 = vmatpush3.bf16.msra.mxu1 %v5256_v33 }
 0xb8e   :  { %2447 = vmatprep.subr.bf16.mxu0 %v5180_v14  ;;  %3830 = vmatprep.subr.bf16.mxu1 %v5910_v7 }
 0xb91   :  { %2448 = vmatpush1.bf16.msra.mxu0 %v5185_v54  ;;  %3831 = vmatpush3.bf16.msra.mxu1 %v5266_v35 }
 0xb92   :  { %2449 = vmatprep.subr.bf16.mxu0 %v5192_v11  ;;  %3832 = vmatprep.subr.bf16.mxu1 %v5910_v7 }
 0xb95   :  { %2450 = vmatpush1.bf16.msra.mxu0 %v5198_v18  ;;  %3833 = vmatpush3.bf16.msra.mxu1 %v5273_v36 }
 0xb96   :  { %2451 = vmatprep.subr.bf16.mxu0 %v5204_v51  ;;  %3834 = vmatprep.subr.bf16.mxu1 %v5910_v7 }
 0xb99   :  { %2452 = vmatpush1.bf16.msra.mxu0 %v5209_v10  ;;  %3835 = vmatpush3.bf16.msra.mxu1 %v5280_v38 }
 0xb9a   :  { %2453 = vmatprep.subr.bf16.mxu0 %v5216_v23  ;;  %3836 = vmatprep.subr.bf16.mxu1 %v5910_v7 }
 0xb9d   :  { %2454 = vmatpush1.bf16.msra.mxu0 %v5222_v26  ;;  %3837 = vmatpush3.bf16.msra.mxu1 %v5287_v39 }
 0xb9e   :  { %2455 = vmatprep.subr.bf16.mxu0 %v5228_v27  ;;  %3838 = vmatprep.subr.bf16.mxu1 %v5910_v7 }
 0xba1   :  { %2456 = vmatpush1.bf16.msra.mxu0 %v5233_v29  ;;  %3839 = vmatpush3.bf16.msra.mxu1 %v5294_v40 }
 0xba2   :  { %2457 = vmatprep.subr.bf16.mxu0 %v5246_v55  ;;  %3840 = vmatprep.subr.bf16.mxu1 %v5910_v7 }
 0xba5   :  { %2458 = vmatpush1.bf16.msra.mxu0 %v5251_v32  ;;  %3841 = vmatpush3.bf16.msra.mxu1 %v5301_v41 }
 0xba6   :  { %2550 = vmatprep.subr.bf16.mxu0 %v5156_v37  ;;  %3846 = vmatprep.subr.bf16.mxu1 %v5910_v7 }
 0xc5b   :  { %v2370_v12 = vpop.f32.mrb[76].mxu0  ;;  %v2425_v48 = vpop.f32.mrb[60].mxu1 }
 0xc5c   :  { %v2377_v6 = vadd.f32 %v2370_v12, %v1762_v0  ;;  %v2372_v22 = vpop.f32.mrb[77].mxu0  ;;  %v3824_v16 = vpop.f32.mrb[61].mxu1  ;;  %v2426_v42 = vadd.f32 %v5428_v5, %v2425_v48 }
 0xc5d   :  { %v2384_v3 = vadd.f32 %v2372_v22, %v1764_v61  ;;  %v2374_v8 = vpop.f32.mrb[78].mxu0  ;;  %v2428_v45 = vpop.f32.mrb[62].mxu1 }
 0xc5e   :  { %v3318_v25 = vmul.f32 -1.442695, %v2377_v6  ;;  %v2375_v62 = vpop.f32.mrb[79].mxu0  ;;  %v3825_v43 = vpop.f32.mrb[63].mxu1 }
 0xc5f   :  { %v3319_v63 = vmul.f32 -1.442695, %v2384_v3 }
 0xc60   :  { %4215 = vpow2.f32 %v3318_v25 }
 0xc61   :  { %4217 = vpow2.f32 %v3319_v63 }
 0xc6a   :  { %v4216_v31 = vpop.eup %4215 }
 0xc6b   :  { %v2381_v15 = vadd.f32 1.0, %v4216_v31  ;;  %v4218_v49 = vpop.eup %4217 }
 0xc6c   :  { %v2388_v59 = vadd.f32 1.0, %v4218_v49 }
 0xc6d   :  { %4219 = vrcp.f32 %v2381_v15 }
 0xc6e   :  { %4221 = vrcp.f32 %v2388_v59 }
 0xc77   :  { %v4220_v21 = vpop.eup %4219 }
 0xc78   :  { %v2431_v60 = vmul.f32 %v4220_v21, %v2426_v42  ;;  %v4222_v57 = vpop.eup %4221 }
 0xc79   :  { %v2434_v46 = vsub.f32 1.0, %v4222_v57  ;;  %v2436_v12 = vmul.f32 %v4222_v57, %v5532_v44 }
 0xc7a   :  { %v2432_v2 = vadd.f32 %v2431_v60, %v1832_v28  ;;  %v1837_v28 = vadd.f32 %v5403_v58, %v5432_v52  ;;  %v5633_v58 = vld [vmem:[%s5879_s8] ss:$8 sps:$4 sm:$0xff]  }
 0xc7c   :  { %4223 = vtanh.f32 %v2432_v2 }
 0xc86   :  { %v4224_v0 = vpop.eup %4223 }
 0xc87   :  { %v2435_v61 = vmul.f32 %v4224_v0, %v2434_v46 }
 0xc89   :  { %v5579_v6 = vadd.f32 %v2436_v12, %v2435_v61 }
 0xc8b   :  { %v2442_v22 = vpack.c.bf16 %v5579_v6, %v5579_v6 }
 0xc8d   :  { %2476 = vmatmul.mubr.bf16.vlgmr.msra.gmra.mrb[80].mxu0 %v2442_v22  ;;  %3843 = vmatmul.mubr.bf16.vlgmr.msra.gmra.mrb[64].mxu1 %v2442_v22 }
 0xc8e   :  { %2551 = vmatpush1.bf16.msra.mxu0 %v5161_v56  ;;  %3847 = vmatpush3.bf16.msra.mxu1 %v5238_v30  ;;  %v1768_v56 = vadd.f32 %v5337_v47, %v5411_v19 }
 0xc8f   :  { %2552 = vmatprep.subr.bf16.mxu0 %v5168_v13  ;;  %3848 = vmatprep.subr.bf16.mxu1 %v5910_v7 }
 0xc90   :  { %2582 = vmatprep.mubr.bf16.mxu0 %v5911_v17  ;;  %3862 = vmatprep.mubr.msk.bf16.mxu1 %vm4313_vm0, %v5910_v7 }
 0xc92   :  { %2553 = vmatpush1.bf16.msra.mxu0 %v5173_v1  ;;  %3849 = vmatpush3.bf16.msra.mxu1 %v5256_v33 }
 0xc93   :  { %2554 = vmatprep.subr.bf16.mxu0 %v5180_v14  ;;  %3850 = vmatprep.subr.bf16.mxu1 %v5910_v7 }
 0xc96   :  { %2555 = vmatpush1.bf16.msra.mxu0 %v5185_v54  ;;  %3851 = vmatpush3.bf16.msra.mxu1 %v5266_v35 }
 0xc97   :  { %2556 = vmatprep.subr.bf16.mxu0 %v5192_v11  ;;  %3852 = vmatprep.subr.bf16.mxu1 %v5910_v7 }
 0xc9a   :  { %2557 = vmatpush1.bf16.msra.mxu0 %v5198_v18  ;;  %3853 = vmatpush3.bf16.msra.mxu1 %v5273_v36 }
 0xc9b   :  { %2558 = vmatprep.subr.bf16.mxu0 %v5204_v51  ;;  %3854 = vmatprep.subr.bf16.mxu1 %v5910_v7 }
 0xc9e   :  { %2559 = vmatpush1.bf16.msra.mxu0 %v5209_v10  ;;  %3855 = vmatpush3.bf16.msra.mxu1 %v5280_v38 }
 0xc9f   :  { %2560 = vmatprep.subr.bf16.mxu0 %v5216_v23  ;;  %3856 = vmatprep.subr.bf16.mxu1 %v5910_v7 }
 0xca2   :  { %2561 = vmatpush1.bf16.msra.mxu0 %v5222_v26  ;;  %3857 = vmatpush3.bf16.msra.mxu1 %v5287_v39 }
 0xca3   :  { %2562 = vmatprep.subr.bf16.mxu0 %v5228_v27  ;;  %3858 = vmatprep.subr.bf16.mxu1 %v5910_v7 }
 0xca6   :  { %2563 = vmatpush1.bf16.msra.mxu0 %v5233_v29  ;;  %3859 = vmatpush3.bf16.msra.mxu1 %v5294_v40 }
 0xca7   :  { %2564 = vmatprep.subr.bf16.mxu0 %v5246_v55  ;;  %3860 = vmatprep.subr.bf16.mxu1 %v5910_v7 }
 0xcaa   :  { %2565 = vmatpush1.bf16.msra.mxu0 %v5251_v32  ;;  %3861 = vmatpush3.bf16.msra.mxu1 %v5301_v41 }
 0xcab   :  { %2657 = vmatprep.subr.bf16.mxu0 %v5156_v37  ;;  %3866 = vmatprep.subr.bf16.mxu1 %v5910_v7 }
 0xd60   :  { %v2477_v48 = vpop.f32.mrb[80].mxu0  ;;  %v2532_v16 = vpop.f32.mrb[64].mxu1 }
 0xd61   :  { %v2484_v3 = vadd.f32 %v2477_v48, %v1768_v56  ;;  %v2479_v8 = vpop.f32.mrb[81].mxu0  ;;  %v3844_v45 = vpop.f32.mrb[65].mxu1  ;;  %v2533_v50 = vadd.f32 %v5428_v5, %v2532_v16 }
 0xd62   :  { %v2491_v25 = vadd.f32 %v2479_v8, %v1770_v24  ;;  %v2481_v62 = vpop.f32.mrb[82].mxu0  ;;  %v2535_v43 = vpop.f32.mrb[66].mxu1 }
 0xd63   :  { %v3320_v63 = vmul.f32 -1.442695, %v2484_v3  ;;  %v2482_v31 = vpop.f32.mrb[83].mxu0  ;;  %v3845_v15 = vpop.f32.mrb[67].mxu1  ;;  %v4288_v43 = vld [vmem:[%s5880_s9] sm:$0xff]  }
 0xd64   :  { %v3321_v37 = vmul.f32 -1.442695, %v2491_v25  ;;  %v4290_v31 = vld [vmem:[%s5879_s8 + $0x10] ss:$8 sps:$4 sm:$0xff]   ;;  %v4291_v15 = vld [vmem:[%s5880_s9 + $0x8] sm:$0xff]  }
 0xd65   :  { %4225 = vpow2.f32 %v3320_v63  ;;  %v4289_v63 = vld [vmem:[%s5879_s8 + $0x14] ss:$8 sps:$4 sm:$0xff]  }
 0xd66   :  { %4227 = vpow2.f32 %v3321_v37  ;;  %v4292_v37 = vld [vmem:[%s5879_s8 + $0x24] ss:$8 sps:$4 sm:$0xff]  }
 0xd6f   :  { %v4226_v49 = vpop.eup %4225 }
 0xd70   :  { %v2488_v59 = vadd.f32 1.0, %v4226_v49  ;;  %v4228_v47 = vpop.eup %4227  ;;  %v4294_v49 = vld [vmem:[%s5880_s9 + $0x10] sm:$0xff]  }
 0xd71   :  { %v2495_v42 = vadd.f32 1.0, %v4228_v47  ;;  %v4296_v47 = vld [vmem:[%s5879_s8 + $0x30] ss:$8 sps:$4 sm:$0xff]  }
 0xd72   :  { %4229 = vrcp.f32 %v2488_v59  ;;  %v4295_v59 = vld [vmem:[%s5879_s8 + $0x34] ss:$8 sps:$4 sm:$0xff]  }
 0xd73   :  { %4231 = vrcp.f32 %v2495_v42  ;;  %v4297_v42 = vld [vmem:[%s5880_s9 + $0x18] sm:$0xff]  }
 0xd7c   :  { %v4230_v21 = vpop.eup %4229 }
 0xd7d   :  { %v2538_v60 = vmul.f32 %v4230_v21, %v2533_v50  ;;  %v4232_v57 = vpop.eup %4231  ;;  %v4298_v50 = vld [vmem:[%s5879_s8 + $0x44] ss:$8 sps:$4 sm:$0xff]   ;;  %v4299_v21 = vld [vmem:[%s5879_s8 + $0x40] ss:$8 sps:$4 sm:$0xff]  }
 0xd7e   :  { %v2541_v46 = vsub.f32 1.0, %v4232_v57  ;;  %v2543_v12 = vmul.f32 %v4232_v57, %v5579_v6  ;;  %v4303_v57 = vld [vmem:[%s5880_s9 + $0x28] sm:$0xff]  }
 0xd7f   :  { %v2539_v2 = vadd.f32 %v2538_v60, %v1837_v28  ;;  %v4300_v28 = vld [vmem:[%s5880_s9 + $0x20] sm:$0xff]   ;;  %v4301_v60 = vld [vmem:[%s5879_s8 + $0x54] ss:$8 sps:$4 sm:$0xff]  }
 0xd81   :  { %4233 = vtanh.f32 %v2539_v2  ;;  %v4302_v2 = vld [vmem:[%s5879_s8 + $0x50] ss:$8 sps:$4 sm:$0xff]  }
 0xd8b   :  { %v4234_v0 = vpop.eup %4233 }
 0xd8c   :  { %v2542_v61 = vmul.f32 %v4234_v0, %v2541_v46  ;;  %v4304_v46 = vld [vmem:[%s5879_s8 + $0x64] ss:$8 sps:$4 sm:$0xff]   ;;  %v4305_v0 = vld [vmem:[%s5879_s8 + $0x60] ss:$8 sps:$4 sm:$0xff]  }
 0xd8e   :  { %v5626_v22 = vadd.f32 %v2543_v12, %v2542_v61  ;;  %v4306_v61 = vld [vmem:[%s5880_s9 + $0x30] sm:$0xff]  }
 0xd8f   :  { %v4307_v12 = vld [vmem:[%s5879_s8 + $0x74] ss:$8 sps:$4 sm:$0xff]  }
 0xd90   :  { %v2549_v56 = vpack.c.bf16 %v5626_v22, %v5626_v22 }
 0xd92   :  { %2583 = vmatmul.mubr.bf16.vlgmr.msra.gmra.mrb[84].mxu0 %v2549_v56  ;;  %3863 = vmatmul.mubr.bf16.vlgmr.msra.gmra.mrb[68].mxu1 %v2549_v56  ;;  %v4308_v56 = vld [vmem:[%s5879_s8 + $0x70] ss:$8 sps:$4 sm:$0xff]  }
 0xd93   :  { %2658 = vmatpush1.bf16.msra.mxu0 %v5633_v58  ;;  %3867 = vmatpush3.bf16.msra.mxu1 %v5238_v30 }
 0xd94   :  { %2659 = vmatprep.subr.bf16.mxu0 %v5168_v13  ;;  %3868 = vmatprep.subr.bf16.mxu1 %v5910_v7  ;;  %v4287_v13 = vld [vmem:[%s5879_s8 + $0x4] ss:$8 sps:$4 sm:$0xff]  }
 0xd95   :  { %2689 = vmatprep.mubr.bf16.mxu0 %v5911_v17  ;;  %3882 = vmatprep.mubr.msk.bf16.mxu1 %vm4313_vm0, %v5910_v7 }
 0xd97   :  { %2660 = vmatpush1.bf16.msra.mxu0 %v5173_v1  ;;  %3869 = vmatpush3.bf16.msra.mxu1 %v5256_v33  ;;  %v1772_v1 = vadd.f32 %v5345_v53, %v5411_v19 }
 0xd98   :  { %2661 = vmatprep.subr.bf16.mxu0 %v5180_v14  ;;  %3870 = vmatprep.subr.bf16.mxu1 %v5910_v7  ;;  %v1774_v14 = vadd.f32 %v5347_v4, %v5419_v9 }
 0xd9b   :  { %2662 = vmatpush1.bf16.msra.mxu0 %v5185_v54  ;;  %3871 = vmatpush3.bf16.msra.mxu1 %v5266_v35 }
 0xd9c   :  { %2663 = vmatprep.subr.bf16.mxu0 %v5192_v11  ;;  %3872 = vmatprep.subr.bf16.mxu1 %v5910_v7 }
 0xd9f   :  { %2664 = vmatpush1.bf16.msra.mxu0 %v5198_v18  ;;  %3873 = vmatpush3.bf16.msra.mxu1 %v5273_v36 }
 0xda0   :  { %2665 = vmatprep.subr.bf16.mxu0 %v5204_v51  ;;  %3874 = vmatprep.subr.bf16.mxu1 %v5910_v7 }
 0xda3   :  { %2666 = vmatpush1.bf16.msra.mxu0 %v5209_v10  ;;  %3875 = vmatpush3.bf16.msra.mxu1 %v5280_v38 }
 0xda4   :  { %2667 = vmatprep.subr.bf16.mxu0 %v5216_v23  ;;  %3876 = vmatprep.subr.bf16.mxu1 %v5910_v7 }
 0xda7   :  { %2668 = vmatpush1.bf16.msra.mxu0 %v5222_v26  ;;  %3877 = vmatpush3.bf16.msra.mxu1 %v5287_v39 }
 0xda8   :  { %2669 = vmatprep.subr.bf16.mxu0 %v5228_v27  ;;  %3878 = vmatprep.subr.bf16.mxu1 %v5910_v7 }
 0xdab   :  { %2670 = vmatpush1.bf16.msra.mxu0 %v5233_v29  ;;  %3879 = vmatpush3.bf16.msra.mxu1 %v5294_v40 }
 0xdac   :  { %2671 = vmatprep.subr.bf16.mxu0 %v5246_v55  ;;  %3880 = vmatprep.subr.bf16.mxu1 %v5910_v7 }
 0xdaf   :  { %2672 = vmatpush1.bf16.msra.mxu0 %v5251_v32  ;;  %3881 = vmatpush3.bf16.msra.mxu1 %v5301_v41  ;;  %v5928_v41 = vld [vmem:[#allocation11_spill] sm:$0xff] }
 0xdb0   :  { %2764 = vmatprep.subr.bf16.mxu0 %v4287_v13  ;;  %3886 = vmatprep.subr.bf16.mxu1 %v5910_v7  ;;  %v1840_v53 = vadd.f32 %v5928_v41, %v5432_v52  ;;  %v4089_v13 = vld [vmem:[%s5884_s12] sm:$0xff]  }
 0xe65   :  { %v2584_v54 = vpop.f32.mrb[84].mxu0  ;;  %v2639_v11 = vpop.f32.mrb[68].mxu1 }
 0xe66   :  { %v2591_v18 = vadd.f32 %v2584_v54, %v1772_v1  ;;  %v2586_v51 = vpop.f32.mrb[85].mxu0  ;;  %v3864_v10 = vpop.f32.mrb[69].mxu1  ;;  %v2640_v39 = vadd.f32 %v5428_v5, %v2639_v11  ;;  %v5929_v1 = vld [vmem:[#allocation8_spill] sm:$0xff] }
 0xe67   :  { %v2598_v23 = vadd.f32 %v2586_v51, %v1774_v14  ;;  %v2588_v26 = vpop.f32.mrb[86].mxu0  ;;  %v2642_v27 = vpop.f32.mrb[70].mxu1  ;;  %v1778_v14 = vadd.f32 %v5929_v1, %v5411_v19 }
 0xe68   :  { %v3322_v29 = vmul.f32 -1.442695, %v2591_v18  ;;  %v2589_v30 = vpop.f32.mrb[87].mxu0  ;;  %v3865_v55 = vpop.f32.mrb[71].mxu1 }
 0xe69   :  { %v3323_v32 = vmul.f32 -1.442695, %v2598_v23 }
 0xe6a   :  { %4235 = vpow2.f32 %v3322_v29 }
 0xe6b   :  { %4237 = vpow2.f32 %v3323_v32 }
 0xe74   :  { %v4236_v33 = vpop.eup %4235 }
 0xe75   :  { %v2595_v35 = vadd.f32 1.0, %v4236_v33  ;;  %v4238_v36 = vpop.eup %4237 }
 0xe76   :  { %v2602_v38 = vadd.f32 1.0, %v4238_v36 }
 0xe77   :  { %4239 = vrcp.f32 %v2595_v35 }
 0xe78   :  { %4241 = vrcp.f32 %v2602_v38 }
 0xe81   :  { %v4240_v40 = vpop.eup %4239 }
 0xe82   :  { %v2645_v4 = vmul.f32 %v4240_v40, %v2640_v39  ;;  %v4242_v48 = vpop.eup %4241 }
 0xe83   :  { %v2648_v16 = vsub.f32 1.0, %v4242_v48  ;;  %v2650_v45 = vmul.f32 %v4242_v48, %v5626_v22 }
 0xe84   :  { %v2646_v24 = vadd.f32 %v2645_v4, %v1840_v53  ;;  %v5931_v53 = vld [vmem:[#allocation9_spill] sm:$0xff] }
 0xe85   :  { %v1845_v4 = vadd.f32 %v5931_v53, %v5432_v52 }
 0xe86   :  { %4243 = vtanh.f32 %v2646_v24 }
 0xe90   :  { %v4244_v3 = vpop.eup %4243 }
 0xe91   :  { %v2649_v8 = vmul.f32 %v4244_v3, %v2648_v16 }
 0xe93   :  { %v5680_v25 = vadd.f32 %v2650_v45, %v2649_v8 }
 0xe95   :  { %v2656_v62 = vpack.c.bf16 %v5680_v25, %v5680_v25 }
 0xe97   :  { %2690 = vmatmul.mubr.bf16.vlgmr.msra.gmra.mrb[88].mxu0 %v2656_v62  ;;  %3883 = vmatmul.mubr.bf16.vlgmr.msra.gmra.mrb[72].mxu1 %v2656_v62 }
 0xe98   :  { %2765 = vmatpush1.bf16.msra.mxu0 %v5633_v58  ;;  %3887 = vmatpush3.bf16.msra.mxu1 %v4288_v43  ;;  %v4309_v58 = vld [vmem:[%s5880_s9 + $0x38] sm:$0xff]  }
 0xe99   :  { %2766 = vmatprep.subr.bf16.mxu0 %v4289_v63  ;;  %3888 = vmatprep.subr.bf16.mxu1 %v5910_v7 }
 0xe9a   :  { %2796 = vmatprep.mubr.bf16.mxu0 %v5911_v17  ;;  %3902 = vmatprep.mubr.msk.bf16.mxu1 %vm4313_vm0, %v5910_v7  ;;  %v4293_v17 = vld [vmem:[%s5879_s8 + $0x20] ss:$8 sps:$4 sm:$0xff]  }
 0xe9c   :  { %2767 = vmatpush1.bf16.msra.mxu0 %v4290_v31  ;;  %3889 = vmatpush3.bf16.msra.mxu1 %v4291_v15  ;;  %v2876_v31 = vpack.c.bf16 %v5485_v20, %v5438_v34  ;;  %v4091_v15 = vld [vmem:[%s5884_s12 + $0x10] sm:$0xff]   ;;  %v4093_v34 = vld [vmem:[%s5884_s12 + $0x20] sm:$0xff]   ;;  %v4094_v20 = vld [vmem:[%s5884_s12 + $0x28] sm:$0xff]  }
 0xe9d   :  { %2768 = vmatprep.subr.bf16.mxu0 %v4292_v37  ;;  %3890 = vmatprep.subr.bf16.mxu1 %v5910_v7  ;;  %v4092_v37 = vld [vmem:[%s5884_s12 + $0x18] sm:$0xff]  }
 0xea0   :  { %2769 = vmatpush1.bf16.msra.mxu0 %v4293_v17  ;;  %3891 = vmatpush3.bf16.msra.mxu1 %v4294_v49  ;;  %v4095_v17 = vld [vmem:[%s5884_s12 + $0x30] sm:$0xff]   ;;  %v4096_v49 = vld [vmem:[%s5884_s12 + $0x38] sm:$0xff]  }
 0xea1   :  { %2770 = vmatprep.subr.bf16.mxu0 %v4295_v59  ;;  %3892 = vmatprep.subr.bf16.mxu1 %v5910_v7  ;;  %v2877_v59 = vpack.c.bf16 %v5579_v6, %v5532_v44  ;;  %v4099_v44 = vld [vmem:[%s5885_s14 + $0x10] sm:$0xff]   ;;  %v4100_v6 = vld [vmem:[%s5885_s14 + $0x18] sm:$0xff]  }
 0xea4   :  { %2771 = vmatpush1.bf16.msra.mxu0 %v4296_v47  ;;  %3893 = vmatpush3.bf16.msra.mxu1 %v4297_v42  ;;  %v2878_v47 = vpack.c.bf16 %v5680_v25, %v5626_v22  ;;  %v4097_v42 = vld [vmem:[%s5885_s14] sm:$0xff]  }
 0xea5   :  { %2772 = vmatprep.subr.bf16.mxu0 %v4298_v50  ;;  %3894 = vmatprep.subr.bf16.mxu1 %v5910_v7  ;;  %v4098_v50 = vld [vmem:[%s5885_s14 + $0x8] sm:$0xff]   ;;  %v4101_v22 = vld [vmem:[%s5885_s14 + $0x20] sm:$0xff]  }
 0xea8   :  { %2773 = vmatpush1.bf16.msra.mxu0 %v4299_v21  ;;  %3895 = vmatpush3.bf16.msra.mxu1 %v4300_v28  ;;  %v4103_v21 = vld [vmem:[%s5885_s14 + $0x30] sm:$0xff]   ;;  %v4104_v28 = vld [vmem:[%s5885_s14 + $0x38] sm:$0xff]  }
 0xea9   :  { %2774 = vmatprep.subr.bf16.mxu0 %v4301_v60  ;;  %3896 = vmatprep.subr.bf16.mxu1 %v5910_v7  ;;  %v5932_v60 = vld [vmem:[#allocation10_spill] sm:$0xff] }
 0xeac   :  { %2775 = vmatpush1.bf16.msra.mxu0 %v4302_v2  ;;  %3897 = vmatpush3.bf16.msra.mxu1 %v4303_v57  ;;  %v1782_v2 = vadd.f32 %v5932_v60, %v5411_v19  ;;  %v5933_v57 = vld [vmem:[#allocation5_spill] sm:$0xff] }
 0xead   :  { %2776 = vmatprep.subr.bf16.mxu0 %v4304_v46  ;;  %3898 = vmatprep.subr.bf16.mxu1 %v5910_v7  ;;  %v1784_v46 = vadd.f32 %v5933_v57, %v5419_v9 }
 0xeb0   :  { %2777 = vmatpush1.bf16.msra.mxu0 %v4305_v0  ;;  %3899 = vmatpush3.bf16.msra.mxu1 %v4306_v61 }
 0xeb1   :  { %2778 = vmatprep.subr.bf16.mxu0 %v4307_v12  ;;  %3900 = vmatprep.subr.bf16.mxu1 %v5910_v7  ;;  %v5930_v7 = vld [vmem:[#allocation6_spill] sm:$0xff] }
 0xeb2   :  { %v1780_v54 = vadd.f32 %v5930_v7, %v5419_v9  ;;  %v4310_v9 = vld [vmem:[%s5883_s11] ss:$0 sm:$0xff] }
 0xeb4   :  { %2779 = vmatpush1.bf16.msra.mxu0 %v4308_v56  ;;  %3901 = vmatpush3.bf16.msra.mxu1 %v4309_v58 }
 0xeb5   :  { %3906 = vmatprep.subr.bf16.mxu0 %v4089_v13  ;;  %3930 = vmatprep.subr.bf16.mxu1 %v4097_v42 }
 0xf6a   :  { %v2691_v11 = vpop.f32.mrb[88].mxu0  ;;  %v2746_v18 = vpop.f32.mrb[72].mxu1 }
 0xf6b   :  { %v2698_v51 = vadd.f32 %v2691_v11, %v1778_v14  ;;  %v2693_v10 = vpop.f32.mrb[89].mxu0  ;;  %v3884_v23 = vpop.f32.mrb[73].mxu1  ;;  %v2747_v40 = vadd.f32 %v5428_v5, %v2746_v18  ;;  %v4090_v5 = vld [vmem:[%s5884_s12 + $0x8] sm:$0xff]  }
 0xf6c   :  { %v2705_v26 = vadd.f32 %v2693_v10, %v1780_v54  ;;  %v2695_v27 = vpop.f32.mrb[90].mxu0  ;;  %v2749_v29 = vpop.f32.mrb[74].mxu1 }
 0xf6d   :  { %v3324_v30 = vmul.f32 -1.442695, %v2698_v51  ;;  %v2696_v55 = vpop.f32.mrb[91].mxu0  ;;  %v3885_v32 = vpop.f32.mrb[75].mxu1  ;;  %v5934_v29 = vld [vmem:[#allocation7_spill] sm:$0xff] }
 0xf6e   :  { %v3325_v33 = vmul.f32 -1.442695, %v2705_v26  ;;  %v3328_v32 = vld [vmem:[%s5886_s13] ss:$0 sm:$0xff] }
 0xf6f   :  { %4245 = vpow2.f32 %v3324_v30  ;;  %v1848_v30 = vadd.f32 %v5934_v29, %v5432_v52 }
 0xf70   :  { %4247 = vpow2.f32 %v3325_v33 }
 0xf79   :  { %v4246_v35 = vpop.eup %4245 }
 0xf7a   :  { %v2702_v36 = vadd.f32 1.0, %v4246_v35  ;;  %v4248_v38 = vpop.eup %4247 }
 0xf7b   :  { %v2709_v39 = vadd.f32 1.0, %v4248_v38 }
 0xf7c   :  { %4249 = vrcp.f32 %v2702_v36 }
 0xf7d   :  { %4251 = vrcp.f32 %v2709_v39 }
 0xf86   :  { %v4250_v41 = vpop.eup %4249 }
 0xf87   :  { %v2752_v24 = vmul.f32 %v4250_v41, %v2747_v40  ;;  %v4252_v16 = vpop.eup %4251 }
 0xf88   :  { %v2755_v3 = vsub.f32 1.0, %v4252_v16  ;;  %v2757_v62 = vmul.f32 %v4252_v16, %v5680_v25  ;;  %v4102_v25 = vld [vmem:[%s5885_s14 + $0x28] sm:$0xff]  }
 0xf89   :  { %v2753_v48 = vadd.f32 %v2752_v24, %v1845_v4 }
 0xf8b   :  { %4253 = vtanh.f32 %v2753_v48 }
 0xf95   :  { %v4254_v8 = vpop.eup %4253 }
 0xf96   :  { %v2756_v45 = vmul.f32 %v4254_v8, %v2755_v3 }
 0xf98   :  { %v5772_v43 = vadd.f32 %v2757_v62, %v2756_v45 }
 0xf9a   :  { %v2763_v63 = vpack.c.bf16 %v5772_v43, %v5772_v43 }
 0xf9c   :  { %2797 = vmatmul.mubr.bf16.vlgmr.msra.gmra.mrb[92].mxu0 %v2763_v63  ;;  %3903 = vmatmul.mubr.bf16.vlgmr.msra.gmra.mrb[76].mxu1 %v2763_v63 }
 0xf9d   :  { %3907 = vmatpush3.bf16.msra.mxu0 %v4089_v13  ;;  %3922 = vmatprep.mubr.bf16.mxu0 %v2876_v31 }
 0xf9e   :  { %3908 = vmatprep.subr.bf16.mxu0 %v4090_v5  ;;  %3931 = vmatpush3.bf16.msra.mxu1 %v4097_v42 }
 0xf9f   :  { %3932 = vmatprep.subr.bf16.mxu1 %v4098_v50 }
 0xfa1   :  { %3909 = vmatpush3.bf16.msra.mxu0 %v4090_v5 }
 0xfa2   :  { %3910 = vmatprep.subr.bf16.mxu0 %v4091_v15  ;;  %3933 = vmatpush3.bf16.msra.mxu1 %v4098_v50 }
 0xfa3   :  { %3934 = vmatprep.subr.bf16.mxu1 %v4099_v44 }
 0xfa5   :  { %3911 = vmatpush3.bf16.msra.mxu0 %v4091_v15 }
 0xfa6   :  { %3912 = vmatprep.subr.bf16.mxu0 %v4092_v37  ;;  %3935 = vmatpush3.bf16.msra.mxu1 %v4099_v44 }
 0xfa7   :  { %3936 = vmatprep.subr.bf16.mxu1 %v4100_v6 }
 0xfa9   :  { %3913 = vmatpush3.bf16.msra.mxu0 %v4092_v37 }
 0xfaa   :  { %3914 = vmatprep.subr.bf16.mxu0 %v4093_v34  ;;  %3937 = vmatpush3.bf16.msra.mxu1 %v4100_v6 }
 0xfab   :  { %3938 = vmatprep.subr.bf16.mxu1 %v4101_v22 }
 0xfad   :  { %3915 = vmatpush3.bf16.msra.mxu0 %v4093_v34  ;;  %v3337_v34 = vld [vmem:[%s5887_s15] ss:$0 sm:$0xff] }
 0xfae   :  { %3916 = vmatprep.subr.bf16.mxu0 %v4094_v20  ;;  %3939 = vmatpush3.bf16.msra.mxu1 %v4101_v22 }
 0xfaf   :  { %3940 = vmatprep.subr.bf16.mxu1 %v4102_v25 }
 0xfb1   :  { %3917 = vmatpush3.bf16.msra.mxu0 %v4094_v20 }
 0xfb2   :  { %3918 = vmatprep.subr.bf16.mxu0 %v4095_v17  ;;  %3941 = vmatpush3.bf16.msra.mxu1 %v4102_v25 }
 0xfb3   :  { %3942 = vmatprep.subr.bf16.mxu1 %v4103_v21 }
 0xfb5   :  { %3919 = vmatpush3.bf16.msra.mxu0 %v4095_v17 }
 0xfb6   :  { %3920 = vmatprep.subr.bf16.mxu0 %v4096_v49  ;;  %3943 = vmatpush3.bf16.msra.mxu1 %v4103_v21 }
 0xfb7   :  { %3944 = vmatprep.subr.bf16.mxu1 %v4104_v28 }
 0xfb9   :  { %3921 = vmatpush3.bf16.msra.mxu0 %v4096_v49 }
 0xfba   :  { %3945 = vmatpush3.bf16.msra.mxu1 %v4104_v28 }
 0xfbc   :  { %3923 = vmatmul.mubr.bf16.vlgmr.msra.gmra.mrb[96].mxu0 %v2877_v59 }
 0xfbd   :  { %3926 = vmatprep.mubr.bf16.mxu0 %v2878_v47 }
0x106f   :  { %v2798_v0 = vpop.f32.mrb[92].mxu0  ;;  %v2853_v61 = vpop.f32.mrb[76].mxu1 }
0x1070   :  { %v2805_v12 = vadd.f32 %v2798_v0, %v1782_v2  ;;  %v2800_v56 = vpop.f32.mrb[93].mxu0  ;;  %v3904_v58 = vpop.f32.mrb[77].mxu1  ;;  %v2854_v26 = vadd.f32 %v4310_v9, %v2853_v61 }
0x1071   :  { %v2812_v13 = vadd.f32 %v2800_v56, %v1784_v46  ;;  %v2802_v1 = vpop.f32.mrb[94].mxu0  ;;  %v2856_v14 = vpop.f32.mrb[78].mxu1 }
0x1072   :  { %v3326_v7 = vmul.f32 -1.442695, %v2805_v12  ;;  %v2803_v54 = vpop.f32.mrb[95].mxu0  ;;  %v3905_v11 = vpop.f32.mrb[79].mxu1 }
0x1073   :  { %v3327_v18 = vmul.f32 -1.442695, %v2812_v13 }
0x1074   :  { %4255 = vpow2.f32 %v3326_v7 }
0x1075   :  { %4257 = vpow2.f32 %v3327_v18 }
0x107e   :  { %v4256_v51 = vpop.eup %4255 }
0x107f   :  { %v2809_v10 = vadd.f32 1.0, %v4256_v51  ;;  %v4258_v19 = vpop.eup %4257 }
0x1080   :  { %v2816_v23 = vadd.f32 1.0, %v4258_v19 }
0x1081   :  { %4259 = vrcp.f32 %v2809_v10 }
0x1082   :  { %4261 = vrcp.f32 %v2816_v23 }
0x108b   :  { %v4260_v27 = vpop.eup %4259 }
0x108c   :  { %v2859_v55 = vmul.f32 %v4260_v27, %v2854_v26  ;;  %v4262_v3 = vpop.eup %4261 }
0x108d   :  { %v2862_v62 = vsub.f32 1.0, %v4262_v3  ;;  %v2864_v31 = vmul.f32 %v4262_v3, %v5772_v43 }
0x108e   :  { %v2860_v33 = vadd.f32 %v2859_v55, %v1848_v30 }
0x108f   :  { %v3924_v35 = vpop.f32.mrb[96].mxu0 }
0x1090   :  { %4263 = vtanh.f32 %v2860_v33  ;;  %v2994_v36 = vadd.f32 %v3924_v35, %v3328_v32  ;;  %v2985_v38 = vpop.f32.mrb[97].mxu0 }
0x1091   :  { %v2986_v39 = vadd.f32 %v3328_v32, %v2985_v38  ;;  %v3925_v40 = vpop.f32.mrb[98].mxu0 }
0x1092   :  { %v2997_v41 = vadd.f32 %v3925_v40, %v3328_v32  ;;  %v2988_v53 = vpop.f32.mrb[99].mxu0  ;;  %v3018_v24 = vmax.f32 %v2994_v36, 0.0 }
0x1093   :  { %v2989_v4 = vadd.f32 %v3328_v32, %v2988_v53  ;;  %v3016_v16 = vmax.f32 %v2986_v39, 0.0 }
0x1094   :  { %v3019_v48 = vmax.f32 %v2997_v41, 0.0 }
0x1095   :  { %v3017_v52 = vmax.f32 %v2989_v4, 0.0 }
0x1096   :  { %v3025_v8 = vpack.c.bf16 %v3019_v48, %v3018_v24 }
0x1097   :  { %v3024_v45 = vpack.c.bf16 %v3017_v52, %v3016_v16 }
0x1099   :  { %3946 = vmatprep.mubr.bf16.mxu1 %v3024_v45 }
0x109a   :  { %v4264_v63 = vpop.eup %4263  ;;  %3947 = vmatmul.mubr.bf16.vlgmr.msra.gmra.mrb[80].mxu1 %v3025_v8 }
0x109b   :  { %v2863_v5 = vmul.f32 %v4264_v63, %v2862_v62 }
0x109d   :  { %v2865_v15 = vadd.f32 %v2864_v31, %v2863_v5 }
0x109f   :  { %v2879_v37 = vpack.c.bf16 %v2865_v15, %v5772_v43  ;;  %3178 = vst [vmem:[%s5881_s17 + $0x8] sm:$0xff] %v2865_v15 }
0x10a1   :  { %3927 = vmatmul.mubr.bf16.gmra.mrb[100].mxu0 %v2879_v37 }
0x116d   :  { %v3948_v20 = vpop.f32.mrb[80].mxu1 }
0x116e   :  { %v3142_v17 = vadd.f32 %v3948_v20, %v3337_v34  ;;  %v3133_v49 = vpop.f32.mrb[81].mxu1 }
0x116f   :  { %v3134_v59 = vadd.f32 %v3337_v34, %v3133_v49  ;;  %v3949_v47 = vpop.f32.mrb[82].mxu1 }
0x1170   :  { %3166 = vst [vmem:[%s5888_s16 + $0x10] sm:$0xff] %v3142_v17  ;;  %v3145_v42 = vadd.f32 %v3949_v47, %v3337_v34  ;;  %v3136_v43 = vpop.f32.mrb[83].mxu1 }
0x1171   :  { %3164 = vst [vmem:[%s5888_s16] sm:$0xff] %v3134_v59  ;;  %v3137_v50 = vadd.f32 %v3337_v34, %v3136_v43 }
0x1172   :  { %3167 = vst [vmem:[%s5888_s16 + $0x18] sm:$0xff] %v3145_v42 }
0x1173   :  { %3165 = vst [vmem:[%s5888_s16 + $0x8] sm:$0xff] %v3137_v50 }
0x1174   :  { %v3928_v44 = vpop.f32.mrb[100].mxu0 }
0x1175   :  { %v3010_v6 = vadd.f32 %v3928_v44, %v3328_v32  ;;  %v3001_v22 = vpop.f32.mrb[101].mxu0 }
0x1176   :  { %v3002_v25 = vadd.f32 %v3328_v32, %v3001_v22  ;;  %v3929_v21 = vpop.f32.mrb[102].mxu0 }
0x1177   :  { %v3013_v28 = vadd.f32 %v3929_v21, %v3328_v32  ;;  %v3004_v60 = vpop.f32.mrb[103].mxu0  ;;  %v3022_v57 = vmax.f32 %v3010_v6, 0.0 }
0x1178   :  { %v3005_v2 = vadd.f32 %v3328_v32, %v3004_v60  ;;  %v3020_v0 = vmax.f32 %v3002_v25, 0.0 }
0x1179   :  { %v3023_v46 = vmax.f32 %v3013_v28, 0.0 }
0x117a   :  { %v3021_v61 = vmax.f32 %v3005_v2, 0.0 }
0x117b   :  { %v3027_v12 = vpack.c.bf16 %v3023_v46, %v3022_v57 }
0x117c   :  { %v3026_v56 = vpack.c.bf16 %v3021_v61, %v3020_v0 }
0x117e   :  { %3950 = vmatprep.mubr.bf16.mxu1 %v3026_v56 }
0x117f   :  { %3951 = vmatmul.mubr.bf16.gmra.mrb[84].mxu1 %v3027_v12 }
0x1252   :  { %v3952_v58 = vpop.f32.mrb[84].mxu1 }
0x1253   :  { %v3158_v13 = vadd.f32 %v3952_v58, %v3337_v34  ;;  %v3149_v1 = vpop.f32.mrb[85].mxu1 }
0x1254   :  { %v3150_v14 = vadd.f32 %v3337_v34, %v3149_v1  ;;  %v3953_v7 = vpop.f32.mrb[86].mxu1 }
0x1255   :  { %3170 = vst [vmem:[%s5888_s16 + $0x30] sm:$0xff] %v3158_v13  ;;  %v3161_v54 = vadd.f32 %v3953_v7, %v3337_v34  ;;  %v3152_v11 = vpop.f32.mrb[87].mxu1 }
0x1256   :  { %3168 = vst [vmem:[%s5888_s16 + $0x20] sm:$0xff] %v3150_v14  ;;  %v3153_v18 = vadd.f32 %v3337_v34, %v3152_v11 }
0x1257   :  { %3171 = vst [vmem:[%s5888_s16 + $0x38] sm:$0xff] %v3161_v54 }
0x1258   :  { %3169 = vst [vmem:[%s5888_s16 + $0x28] sm:$0xff] %v3153_v18 }

</bundles_post_ra>
